<compile_context>
chip_gen: v7x
topology: tpu7x:2x2x1
jax: 0.10.0
libtpu: 0.0.40
codegen_flags: <defaults>
</compile_context>

<pallas_src>
import jax
import jax.numpy as jnp
from jax.experimental import pallas as pl
from jax.experimental.pallas import tpu as pltpu

F_IN = 784
F_PAD = 896          # 7 * 128 lane-aligned input features
H = 512
C = 10
C_PAD = 128          # lane-dense class dim
NEG_BIG = -1e30      # pad-class bias -> exp(...) == 0 under softmax


def mlp_kernel(x_ref, w1_ref, b1_ref, w2_ref, b2_ref, w3_ref, b3_ref,
               alpha_ref, o_ref):
    """Fused forward for one batch tile: L1 -> PReLU -> L2 -> PReLU -> L3 -> softmax."""
    a = alpha_ref[0, 0]                              # scalar PReLU slope (f32, SMEM)
    x = x_ref[...]                                   # (TILE_B, 896) bf16

    # L1 + PReLU (bf16 MXU, f32 accumulate)
    h1 = jnp.dot(x, w1_ref[...], preferred_element_type=jnp.float32) + b1_ref[...]
    h1 = jnp.where(h1 > 0, h1, a * h1)

    # L2 + PReLU
    h2 = jnp.dot(h1.astype(jnp.bfloat16), w2_ref[...],
                 preferred_element_type=jnp.float32) + b2_ref[...]
    h2 = jnp.where(h2 > 0, h2, a * h2)

    # L3 logits on a lane-dense 128-wide output (pad classes carry -1e30 bias)
    logits = jnp.dot(h2.astype(jnp.bfloat16), w3_ref[...],
                     preferred_element_type=jnp.float32) + b3_ref[...]

    # Numerically stable softmax over classes; pad lanes contribute exp(-huge)=0.
    m = jnp.max(logits, axis=1, keepdims=True)
    e = jnp.exp(logits - m)
    denom = jnp.sum(e, axis=1, keepdims=True)
    o_ref[...] = e * pl.reciprocal(denom, approx=True)


def mlp_forward(x, w1, b1, w2, b2, w3, b3, alpha, *, tile_b=128):
    """x: (B, 784) f32.  w* are (in, out) f32, b* are (1, out) f32, alpha (1,1) f32."""
    B = x.shape[0]
    b_pad = pl.cdiv(B, tile_b) * tile_b

    # --- host-side layout prep ------------------------------------------------
    # batch pad + feature pad 784 -> 896, cast activations to bf16
    x_p = jnp.zeros((b_pad, F_PAD), jnp.float32).at[:B, :F_IN].set(x)
    x_p = x_p.astype(jnp.bfloat16)

    # weights: bf16, feature/class padded to lane multiples
    w1_p = jnp.zeros((F_PAD, H), jnp.float32).at[:F_IN, :].set(w1).astype(jnp.bfloat16)
    w2_p = w2.astype(jnp.bfloat16)
    w3_p = jnp.zeros((H, C_PAD), jnp.float32).at[:, :C].set(w3).astype(jnp.bfloat16)

    # biases stay f32; pad classes get -1e30 so they vanish under softmax
    b3_p = jnp.full((1, C_PAD), NEG_BIG, jnp.float32).at[:, :C].set(b3)

    grid = (b_pad // tile_b,)
    out = pl.pallas_call(
        mlp_kernel,
        out_shape=jax.ShapeDtypeStruct((b_pad, C_PAD), jnp.float32),
        grid=grid,
        in_specs=[
            pl.BlockSpec((tile_b, F_PAD), lambda i: (i, 0)),   # x tile (pipelined)
            pl.BlockSpec((F_PAD, H), lambda i: (0, 0)),        # w1 (resident)
            pl.BlockSpec((1, H), lambda i: (0, 0)),            # b1
            pl.BlockSpec((H, H), lambda i: (0, 0)),            # w2
            pl.BlockSpec((1, H), lambda i: (0, 0)),            # b2
            pl.BlockSpec((H, C_PAD), lambda i: (0, 0)),        # w3
            pl.BlockSpec((1, C_PAD), lambda i: (0, 0)),        # b3
            pl.BlockSpec(memory_space=pltpu.SMEM),             # alpha scalar
        ],
        out_specs=pl.BlockSpec((tile_b, C_PAD), lambda i: (i, 0)),
        compiler_params=pltpu.CompilerParams(
            dimension_semantics=("parallel",)),
    )(x_p, w1_p, b1, w2, b2, w3_p, b3_p, alpha)

    return out[:B, :C]


# ----------------- deterministic parameter init (mimics the module) ----------

def orthogonal_init(key, rows, cols):
    """Replicates nn.init.orthogonal_ for a (rows, cols)=(out, in) weight."""
    flat = jax.random.normal(key, (rows, cols), dtype=jnp.float32)
    if rows < cols:
        flat = flat.T
    q, r = jnp.linalg.qr(flat)
    q = q * jnp.sign(jnp.diag(r))
    if rows < cols:
        q = q.T
    return q.astype(jnp.float32)


def linear_bias_init(key, fan_in, out_features):
    bound = 1.0 / jnp.sqrt(jnp.float32(fan_in))
    return jax.random.uniform(key, (1, out_features), jnp.float32, -bound, bound)


def ref_mlp(x, w1, b1, w2, b2, w3, b3, a):
    """Pure-JAX f32 reference (same math as the PyTorch module)."""
    h1 = x @ w1 + b1
    h1 = jnp.where(h1 > 0, h1, a * h1)
    h2 = h1 @ w2 + b2
    h2 = jnp.where(h2 > 0, h2, a * h2)
    logits = h2 @ w3 + b3
    return jax.nn.softmax(logits, axis=1)


if __name__ == "__main__":
    key = jax.random.PRNGKey(0)
    k_x, k_w1, k_b1, k_w2, k_b2, k_w3, k_b3 = jax.random.split(key, 7)

    B = 256
    TILE_B = 128   # >= v5e MXU tile; use 256-1024 on v6e/v7x for peak throughput

    x = jax.random.normal(k_x, (B, F_IN), dtype=jnp.float32)

    # PyTorch stores (out, in); orthogonal init, then transpose to (in, out).
    W1 = orthogonal_init(k_w1, H, F_IN)
    W2 = orthogonal_init(k_w2, H, H)
    W3 = orthogonal_init(k_w3, C, H)
    w1, w2, w3 = W1.T, W2.T, W3.T              # (784,512), (512,512), (512,10)

    b1 = linear_bias_init(k_b1, F_IN, H)        # (1, 512)
    b2 = linear_bias_init(k_b2, H, H)           # (1, 512)
    b3 = linear_bias_init(k_b3, H, C)           # (1, 10)

    alpha = jnp.full((1, 1), 0.25, dtype=jnp.float32)   # PReLU default slope

    probs = mlp_forward(x, w1, b1, w2, b2, w3, b3, alpha, tile_b=TILE_B)
    probs = jax.block_until_ready(probs)

    # sanity: shape, valid softmax, close to f32 reference (bf16-weight tolerance)
    assert probs.shape == (B, C)
    assert jnp.allclose(jnp.sum(probs, axis=1), 1.0, atol=2e-2)
    ref = ref_mlp(x, w1, b1, w2, b2, w3, b3, alpha[0, 0])
    assert jnp.allclose(probs, ref, atol=5e-2)

    print("KERNEL_OK")
</pallas_src>

<mosaic_0001>
module attributes {stable_mosaic.version = 11 : i64} {
  func.func @mlp_kernel(%arg0: i32, %arg1: memref<128x896xbf16, #tpu.memory_space<vmem>>, %arg2: memref<896x512xbf16, #tpu.memory_space<vmem>>, %arg3: memref<1x512xf32, #tpu.memory_space<vmem>>, %arg4: memref<512x512xf32, #tpu.memory_space<vmem>>, %arg5: memref<1x512xf32, #tpu.memory_space<vmem>>, %arg6: memref<512x128xbf16, #tpu.memory_space<vmem>>, %arg7: memref<1x128xf32, #tpu.memory_space<vmem>>, %arg8: memref<1x1xf32, #tpu.memory_space<smem>>, %arg9: memref<128x128xf32, #tpu.memory_space<vmem>>) attributes {dimension_semantics = [#tpu.dimension_semantics<parallel>], iteration_bounds = array<i64: 2>, scalar_prefetch = 0 : i64, scratch_operands = 0 : i64, tpu.core_type = #tpu.core_type<tc>, window_params = [{transform_indices = @transform_0, window_bounds = array<i64: 128, 896>}, {pipeline_mode = #tpu.pipeline_mode<synchronous>, transform_indices = @transform_1, window_bounds = array<i64: 896, 512>}, {pipeline_mode = #tpu.pipeline_mode<synchronous>, transform_indices = @transform_2, window_bounds = array<i64: 1, 512>}, {pipeline_mode = #tpu.pipeline_mode<synchronous>, transform_indices = @transform_3, window_bounds = array<i64: 512, 512>}, {pipeline_mode = #tpu.pipeline_mode<synchronous>, transform_indices = @transform_4, window_bounds = array<i64: 1, 512>}, {pipeline_mode = #tpu.pipeline_mode<synchronous>, transform_indices = @transform_5, window_bounds = array<i64: 512, 128>}, {pipeline_mode = #tpu.pipeline_mode<synchronous>, transform_indices = @transform_6, window_bounds = array<i64: 1, 128>}, {transform_indices = @transform_7, window_bounds = array<i64: 1, 1>}, {transform_indices = @transform_8, window_bounds = array<i64: 128, 128>}]} {
    %c0 = arith.constant 0 : index
    %c0_0 = arith.constant 0 : index
    %0 = memref.load %arg8[%c0, %c0_0] : memref<1x1xf32, #tpu.memory_space<smem>>
    %c0_1 = arith.constant 0 : index
    %c0_2 = arith.constant 0 : index
    %1 = vector.load %arg1[%c0_1, %c0_2] : memref<128x896xbf16, #tpu.memory_space<vmem>>, vector<128x896xbf16>
    %c0_3 = arith.constant 0 : index
    %c0_4 = arith.constant 0 : index
    %2 = vector.load %arg2[%c0_3, %c0_4] : memref<896x512xbf16, #tpu.memory_space<vmem>>, vector<896x512xbf16>
    %cst = arith.constant dense<0.000000e+00> : vector<128x512xf32>
    %3 = tpu.matmul %1, %2, %cst {dimension_numbers = #tpu.dot_dimension_numbers<[1], [0], [0], [1], [0, 0, 1, 1], [], []>} : vector<128x896xbf16>, vector<896x512xbf16>, vector<128x512xf32> -> vector<128x512xf32>
    %c0_5 = arith.constant 0 : index
    %c0_6 = arith.constant 0 : index
    %4 = vector.load %arg3[%c0_5, %c0_6] : memref<1x512xf32, #tpu.memory_space<vmem>>, vector<1x512xf32>
    %5 = vector.broadcast %4 : vector<1x512xf32> to vector<128x512xf32>
    %6 = arith.addf %3, %5 : vector<128x512xf32>
    %cst_7 = arith.constant 0.000000e+00 : f32
    %7 = vector.broadcast %cst_7 : f32 to vector<128x512xf32>
    %8 = arith.cmpf ogt, %6, %7 : vector<128x512xf32>
    %9 = vector.broadcast %0 : f32 to vector<128x512xf32>
    %10 = arith.mulf %9, %6 : vector<128x512xf32>
    %11 = arith.select %8, %6, %10 : vector<128x512xi1>, vector<128x512xf32>
    %12 = arith.truncf %11 : vector<128x512xf32> to vector<128x512xbf16>
    %c0_8 = arith.constant 0 : index
    %c0_9 = arith.constant 0 : index
    %13 = vector.load %arg4[%c0_8, %c0_9] : memref<512x512xf32, #tpu.memory_space<vmem>>, vector<512x512xf32>
    %cst_10 = arith.constant dense<0.000000e+00> : vector<128x512xf32>
    %14 = tpu.matmul %12, %13, %cst_10 {dimension_numbers = #tpu.dot_dimension_numbers<[1], [0], [0], [1], [0, 0, 1, 1], [], []>} : vector<128x512xbf16>, vector<512x512xf32>, vector<128x512xf32> -> vector<128x512xf32>
    %c0_11 = arith.constant 0 : index
    %c0_12 = arith.constant 0 : index
    %15 = vector.load %arg5[%c0_11, %c0_12] : memref<1x512xf32, #tpu.memory_space<vmem>>, vector<1x512xf32>
    %16 = vector.broadcast %15 : vector<1x512xf32> to vector<128x512xf32>
    %17 = arith.addf %14, %16 : vector<128x512xf32>
    %cst_13 = arith.constant 0.000000e+00 : f32
    %18 = vector.broadcast %cst_13 : f32 to vector<128x512xf32>
    %19 = arith.cmpf ogt, %17, %18 : vector<128x512xf32>
    %20 = vector.broadcast %0 : f32 to vector<128x512xf32>
    %21 = arith.mulf %20, %17 : vector<128x512xf32>
    %22 = arith.select %19, %17, %21 : vector<128x512xi1>, vector<128x512xf32>
    %23 = arith.truncf %22 : vector<128x512xf32> to vector<128x512xbf16>
    %c0_14 = arith.constant 0 : index
    %c0_15 = arith.constant 0 : index
    %24 = vector.load %arg6[%c0_14, %c0_15] : memref<512x128xbf16, #tpu.memory_space<vmem>>, vector<512x128xbf16>
    %cst_16 = arith.constant dense<0.000000e+00> : vector<128x128xf32>
    %25 = tpu.matmul %23, %24, %cst_16 {dimension_numbers = #tpu.dot_dimension_numbers<[1], [0], [0], [1], [0, 0, 1, 1], [], []>} : vector<128x512xbf16>, vector<512x128xbf16>, vector<128x128xf32> -> vector<128x128xf32>
    %c0_17 = arith.constant 0 : index
    %c0_18 = arith.constant 0 : index
    %26 = vector.load %arg7[%c0_17, %c0_18] : memref<1x128xf32, #tpu.memory_space<vmem>>, vector<1x128xf32>
    %27 = vector.broadcast %26 : vector<1x128xf32> to vector<128x128xf32>
    %28 = arith.addf %25, %27 : vector<128x128xf32>
    %cst_19 = arith.constant dense<0xFF800000> : vector<128xf32>
    %29 = vector.multi_reduction <maximumf>, %28, %cst_19 [1] : vector<128x128xf32> to vector<128xf32>
    %30 = vector.shape_cast %29 : vector<128xf32> to vector<128x1xf32>
    %31 = vector.broadcast %30 : vector<128x1xf32> to vector<128x128xf32>
    %32 = arith.subf %28, %31 : vector<128x128xf32>
    %33 = math.exp %32 : vector<128x128xf32>
    %cst_20 = arith.constant dense<0.000000e+00> : vector<128xf32>
    %34 = vector.multi_reduction <add>, %33, %cst_20 [1] : vector<128x128xf32> to vector<128xf32>
    %35 = vector.shape_cast %34 : vector<128xf32> to vector<128x1xf32>
    %36 = tpu.reciprocal %35 {approx = true} : vector<128x1xf32> -> vector<128x1xf32>
    %37 = vector.broadcast %36 : vector<128x1xf32> to vector<128x128xf32>
    %38 = arith.mulf %33, %37 : vector<128x128xf32>
    %c0_21 = arith.constant 0 : index
    %c0_22 = arith.constant 0 : index
    %39 = vector.load %arg9[%c0_21, %c0_22] : memref<128x128xf32, #tpu.memory_space<vmem>>, vector<128x128xf32>
    tpu.vector_store %arg9[%c0_21, %c0_22], %38 {strides = array<i32>} : memref<128x128xf32, #tpu.memory_space<vmem>>, vector<128x128xf32>,
    return
  }
  func.func @transform_0(%arg0: i32) -> (i32, i32) {
    %c0_i32 = arith.constant 0 : i32
    %c0_i32_0 = arith.constant 0 : i32
    return %arg0, %c0_i32 : i32, i32
  }
  func.func @transform_1(%arg0: i32) -> (i32, i32) {
    %c0_i32 = arith.constant 0 : i32
    %c0_i32_0 = arith.constant 0 : i32
    %c0_i32_1 = arith.constant 0 : i32
    return %c0_i32, %c0_i32_0 : i32, i32
  }
  func.func @transform_2(%arg0: i32) -> (i32, i32) {
    %c0_i32 = arith.constant 0 : i32
    %c0_i32_0 = arith.constant 0 : i32
    %c0_i32_1 = arith.constant 0 : i32
    return %c0_i32, %c0_i32_0 : i32, i32
  }
  func.func @transform_3(%arg0: i32) -> (i32, i32) {
    %c0_i32 = arith.constant 0 : i32
    %c0_i32_0 = arith.constant 0 : i32
    %c0_i32_1 = arith.constant 0 : i32
    return %c0_i32, %c0_i32_0 : i32, i32
  }
  func.func @transform_4(%arg0: i32) -> (i32, i32) {
    %c0_i32 = arith.constant 0 : i32
    %c0_i32_0 = arith.constant 0 : i32
    %c0_i32_1 = arith.constant 0 : i32
    return %c0_i32, %c0_i32_0 : i32, i32
  }
  func.func @transform_5(%arg0: i32) -> (i32, i32) {
    %c0_i32 = arith.constant 0 : i32
    %c0_i32_0 = arith.constant 0 : i32
    %c0_i32_1 = arith.constant 0 : i32
    return %c0_i32, %c0_i32_0 : i32, i32
  }
  func.func @transform_6(%arg0: i32) -> (i32, i32) {
    %c0_i32 = arith.constant 0 : i32
    %c0_i32_0 = arith.constant 0 : i32
    %c0_i32_1 = arith.constant 0 : i32
    return %c0_i32, %c0_i32_0 : i32, i32
  }
  func.func @transform_7(%arg0: i32) -> (i32, i32) {
    %c0_i32 = arith.constant 0 : i32
    %c0_i32_0 = arith.constant 0 : i32
    %c0_i32_1 = arith.constant 0 : i32
    return %c0_i32, %c0_i32_0 : i32, i32
  }
  func.func @transform_8(%arg0: i32) -> (i32, i32) {
    %c0_i32 = arith.constant 0 : i32
    %c0_i32_0 = arith.constant 0 : i32
    return %arg0, %c0_i32 : i32, i32
  }
}

</mosaic_0001>

<bundles_post_ra>
// kernel: tpu_custom_call.1
= control target key start
LH: loop header
LB: loop body
LE: loop exit
PB: predicated region body
PF: predicated region fallthrough
CT: control target
= control target key end

     0   :  { %s9105_s0 = inlined_call_operand.hbm [shape: bf16[256,896], index: 0, kind: input, shape index: {}]   ;;  %s9106_s1 = inlined_call_operand.hbm [shape: bf16[896,512], index: 1, kind: input, shape index: {}]   ;;  %s9107_s2 = inlined_call_operand.vmem [shape: f32[1,512], index: 2, kind: input, shape index: {}]   ;;  %s9108_s3 = inlined_call_operand.hbm [shape: f32[512,512], index: 3, kind: input, shape index: {}]   ;;  %s9109_s4 = inlined_call_operand.vmem [shape: f32[1,512], index: 4, kind: input, shape index: {}]   ;;  %s9110_s5 = inlined_call_operand.hbm [shape: bf16[512,128], index: 5, kind: input, shape index: {}]   ;;  %s9111_s6 = inlined_call_operand.vmem [shape: f32[1,128], index: 6, kind: input, shape index: {}]   ;;  %s9112_s7 = inlined_call_operand.<no memory space> [shape: f32[1,1], index: 7, kind: input, shape index: {}]   ;;  %s9113_s8 = inlined_call_operand.hbm [shape: f32[256,128], index: 8, kind: output, shape index: {}]  }
   0x1   :  { %9226 = sst [smem:[#allocation120_spill]] %s9106_s1 }
   0x2   :  { %13 = sst [smem:[#allocation2]] %s9112_s7 }
   0x3   :  { %14 = vsyncpa [#allocation4], 0 }
   0x4   :  { %16 = vsyncpa [#allocation4 + $0x1], 0 }
   0x5   :  { %17 = vsyncpa [#allocation7], 0 }
   0x6   :  { %18 = vsyncpa [#allocation10], 0 }
   0x7   :  { %19 = vsyncpa [#allocation5], 0 }
   0x8   :  { %21 = vsyncpa [#allocation5 + $0x1], 0  ;;  %s6994_s29 = smov 0   ;;  %s6996_s30 = smov 0  }
   0x9   :  { %s6998_s9 = smov 0   ;;  %s7000_s10 = smov 0  }
   0xa LB: > { %s7015_s7 = sadd.s32 4294967295, %s6928_s10   ;;  %s5036_s11 = sadd.s32 4294967294, %s6928_s10   ;;  %s6928_s10 = sphi %s7000_s10, %s9570_s10   ;;  %s6924_s9 = sphi %s6998_s9, %s9569_s9   ;;  %s6920_s30 = sphi %s6996_s30, %s9568_s30   ;;  %s6916_s29 = sphi %s6994_s29, %s9567_s29  }
   0xb   : > { %p47_p0 = scmp.ne.s32.totalorder %s6920_s30, %s6916_s29  ;;  %p9114_p1 = scmp.eq.s32.totalorder %s7015_s7, 0 }
   0xc   : > { %p224_p3 = scmp.eq.s32.totalorder %s5036_s11, 1  ;;  %p5037_p5 = scmp.ge.s32.totalorder %s6928_s10, 1 }
   0xd   : > { %p7024_p4 = por %p9114_p1, %p47_p0  ;;  %p231_p7 = scmp.lt.s32.totalorder %s6928_s10, 3 }
   0xe   : > { %p7029_p6 = por %p224_p3, %p47_p0  ;;  %s6930_s15 = smov [#allocation6]  }
   0xf   : > { %s9227_s12 = scalar_select %p7024_p4, 1, 0 }
  0x10   : > { %s9228_s13 = scalar_select %p7029_p6, 1, 0 }
  0x11   : > { %p7034_p8 = pnand %p5037_p5, %p231_p7  ;;  %s243_s16 = sshll.u32 %s6930_s15, 4  ;;  %s7038_s16 = int_to_ptr.vmem [resolvable:$true] %s243_s16 }
  0x12   : > { %s6931_s18 = smov [#allocation8]   ;;  %s9231_s1 = sld [smem:[#allocation120_spill]] }
  0x13   : > { %s9229_s14 = scalar_select %p7034_p8, 1, 0 }
  0x14   : > { %p6156_p9 = pneg %p7034_p8  ;;  %s259_s19 = sshll.u32 %s6931_s18, 4  ;;  %s7049_s19 = int_to_ptr.vmem [resolvable:$true] %s259_s19 }
  0x16   : > { %p7045_p11 = pnand %p6156_p9, %p9114_p1 }
  0x18   : > { %s6740_s22 = scalar_lea.hbm %s9231_s1, 28672  ;;  %p7059_p13 = pneg %p7045_p11 }
  0x19   : > { %p6741_p12 = scmp.ne.s32.totalorder %s9231_s1, %s6740_s22  ;;  %p6747_p5 = scmp.lt.u32.totalorder %s6740_s22, %s9231_s1 }
  0x1b   : > { %p6743_p0 = pnand %p7059_p13, %p6741_p12 }
  0x1d   : > { %p6744_p3 = pneg %p6743_p0 }
  0x1f   : > { %p6749_p7 = pnand %p6747_p5, %p6744_p3 }
  0x21   : > { %6752 = shalt.err (!%p6749_p7)
}
  0x22   : > { %s6753_s28 = scalar_lea.vmem %s7038_s16, 28672  ;;  %p6761_p2 = scmp.lt.s32.totalorder %s7038_s16, %s7038_s16 }
  0x23   : > { %p6754_p9 = scmp.ne.s32.totalorder %s7038_s16, %s6753_s28  ;;  %p6762_p6 = scmp.lt.s32.totalorder %s6753_s28, %s6753_s28 }
  0x25   : > { %p6756_p10 = pnand %p6754_p9, %p7059_p13  ;;  %p6763_p12 = por %p6762_p6, %p6761_p2 }
  0x27   : > { %p6757_p1 = pneg %p6756_p10 }
  0x29   : > { %p6764_p0 = pnand %p6763_p12, %p6757_p1 }
  0x2b   : > { %6767 = shalt.err (!%p6764_p0)
}
  0x2c   : > { %s6932_s11 = smov 256   ;;  %s6933_s15 = smov 16  }
  0x2d   : > { %6159 = dma.hbm_to_vmem [thread:$0]  (!%p7045_p11), %s9231_s1, 28672, %s7038_s16, [#allocation7], %s6932_s11, %s6932_s11, %s6933_s15  }
  0x2e   : > { %s6768_s23 = scalar_lea.hbm %s9108_s3, 32768 }
  0x2f   : > { %p6769_p2 = scmp.ne.s32.totalorder %s9108_s3, %s6768_s23  ;;  %p6775_p10 = scmp.lt.u32.totalorder %s6768_s23, %s9108_s3 }
  0x31   : > { %p6771_p1 = pnand %p6769_p2, %p7059_p13 }
  0x33   : > { %p6772_p6 = pneg %p6771_p1 }
  0x35   : > { %p6777_p3 = pnand %p6775_p10, %p6772_p6 }
  0x37   : > { %6780 = shalt.err (!%p6777_p3)
}
  0x38   : > { %s6781_s16 = scalar_lea.vmem %s7049_s19, 32768  ;;  %p6789_p12 = scmp.lt.s32.totalorder %s7049_s19, %s7049_s19 }
  0x39   : > { %p6782_p5 = scmp.ne.s32.totalorder %s7049_s19, %s6781_s16  ;;  %p6790_p0 = scmp.lt.s32.totalorder %s6781_s16, %s6781_s16 }
  0x3b   : > { %p6784_p7 = pnand %p6782_p5, %p7059_p13  ;;  %p6791_p2 = por %p6790_p0, %p6789_p12 }
  0x3d   : > { %p6785_p9 = pneg %p6784_p7 }
  0x3f   : > { %p6792_p1 = pnand %p6791_p2, %p6785_p9 }
  0x41   : > { %6795 = shalt.err (!%p6792_p1)
}
  0x42   : > { %s6934_s11 = smov 512   ;;  %s6935_s15 = smov 32  }
  0x43   : > { %6162 = dma.hbm_to_vmem [thread:$0]  (!%p7045_p11), %s9108_s3, 32768, %s7049_s19, [#allocation7], %s6934_s11, %s6934_s11, %s6935_s15  }
  0x44   : > { %s6936_s21 = smov [#allocation9]   ;;  %s6796_s26 = scalar_lea.hbm %s9110_s5, 4096 }
  0x45   : > { %s275_s22 = sshll.u32 %s6936_s21, 4  ;;  %p6797_p6 = scmp.ne.s32.totalorder %s9110_s5, %s6796_s26  ;;  %s276_s22 = int_to_ptr.vmem [resolvable:$true] %s275_s22 }
  0x46   : > { %p6803_p5 = scmp.lt.u32.totalorder %s6796_s26, %s9110_s5 }
  0x47   : > { %p6799_p10 = pnand %p6797_p6, %p7059_p13 }
  0x49   : > { %p6800_p3 = pneg %p6799_p10 }
  0x4b   : > { %p6805_p7 = pnand %p6803_p5, %p6800_p3 }
  0x4d   : > { %6808 = shalt.err (!%p6805_p7)
}
  0x4e   : > { %s6809_s19 = scalar_lea.vmem %s276_s22, 4096  ;;  %p6817_p2 = scmp.lt.s32.totalorder %s276_s22, %s276_s22 }
  0x4f   : > { %p6810_p9 = scmp.ne.s32.totalorder %s276_s22, %s6809_s19  ;;  %p6818_p1 = scmp.lt.s32.totalorder %s6809_s19, %s6809_s19 }
  0x51   : > { %p6812_p12 = pnand %p6810_p9, %p7059_p13  ;;  %p6819_p4 = por %p6818_p1, %p6817_p2 }
  0x53   : > { %p6813_p0 = pneg %p6812_p12 }
  0x55   : > { %p6820_p8 = pnand %p6819_p4, %p6813_p0 }
  0x57   : > { %6823 = shalt.err (!%p6820_p8)
}
  0x58   : > { %s6937_s11 = smov 64   ;;  %s6938_s1 = smov 4  }
  0x59   : > { %6165 = dma.hbm_to_vmem [thread:$0]  (!%p7045_p11), %s9110_s5, 4096, %s276_s22, [#allocation10], %s6937_s11, %s6937_s11, %s6938_s1  }
  0x5a   : > { %s7122_s18 = sadd.s32 1, %s6928_s10   ;;  %s34_s21 = sadd.s32 1, %s6924_s9 }
  0x5b   : > { %s31_s20 = ssub.s32 %s6928_s10, %s7122_s18  ;;  %p41_p8 = scmp.ne.s32.totalorder %s6924_s9, %s6920_s30 }
  0x5c   : > { %p32_p4 = scmp.eq.s32.totalorder %s31_s20, 0  ;;  %p42_p13 = scmp.eq.s32.totalorder %s6928_s10, 0 }
  0x5d   : > { %p6177_p6 = scmp.lt.s32.totalorder %s6928_s10, 2  ;;  %p9233_p3 = scmp.eq.s32.totalorder %s7015_s7, 1 }
  0x5e   : > { %s7132_s23 = scalar_select %p32_p4, %s6924_s9, %s34_s21  }
  0x5f   : > { %p43_p10 = por %p42_p13, %p41_p8  ;;  %p7136_p5 = por %p9233_p3, %p41_p8 }
  0x60   : > { %s295_s17 = sand.u32 1, %s6924_s9   ;;  %s6138_s26 = smul.u32 7168, %s6928_s10 }
  0x61   : > { %s6137_s22 = smul.u32 448, %s295_s17  ;;  %p7147_p11 = pnand %p6177_p6, %p43_p10 }
  0x62   : > { %s7145_s16 = scalar_lea.hbm %s9105_s0, %s6138_s26  ;;  %s7153_s25 = scalar_lea.sflag [#allocation4], %s295_s17 }
  0x63   : > { %s299_s11 = scalar_lea.vmem [#allocation3], %s6137_s22  ;;  %s6824_s15 = scalar_lea.hbm %s7145_s16, 7168 }
  0x64   : > { %s307_s1 = sshll.u32 %s299_s11, 4  ;;  %p6825_p7 = scmp.ne.s32.totalorder %s7145_s16, %s6824_s15  ;;  %s7151_s1 = int_to_ptr.vmem [resolvable:$true] %s307_s1 }
  0x65   : > { %p6826_p9 = pneg %p7147_p11  ;;  %s6829_s26 = scalar_lea.hbm %s9105_s0, 14336 }
  0x66   : > { %p6830_p2 = scmp.lt.u32.totalorder %s7145_s16, %s9105_s0  ;;  %p6831_p1 = scmp.lt.u32.totalorder %s6829_s26, %s6824_s15 }
  0x67   : > { %p6827_p12 = pnand %p6826_p9, %p6825_p7  ;;  %p6833_p8 = scmp.lt.u32.totalorder %s6824_s15, %s7145_s16 }
  0x68   : > { %p6832_p4 = por %p6831_p1, %p6830_p2 }
  0x69   : > { %p6828_p0 = pneg %p6827_p12 }
  0x6a   : > { %p6834_p13 = por %p6833_p8, %p6832_p4 }
  0x6c   : > { %p6835_p6 = pnand %p6834_p13, %p6828_p0 }
  0x6e   : > { %6838 = shalt.err (!%p6835_p6)
}
  0x6f   : > { %s6839_s17 = scalar_lea.vmem %s7151_s1, 7168  ;;  %s6939_s22 = smov [#allocation3]  }
  0x70   : > { %p6840_p10 = scmp.ne.s32.totalorder %s7151_s1, %s6839_s17  ;;  %s6844_s11 = sshll.u32 %s6939_s22, 4  ;;  %s6845_s11 = int_to_ptr.vmem [resolvable:$false] %s6844_s11 }
  0x71   : > { %s6846_s20 = scalar_lea.vmem %s6845_s11, 14336  ;;  %p6847_p12 = scmp.lt.s32.totalorder %s7151_s1, %s6845_s11 }
  0x72   : > { %p6842_p3 = pnand %p6840_p10, %p6826_p9  ;;  %p6848_p2 = scmp.lt.s32.totalorder %s6846_s20, %s6839_s17 }
  0x74   : > { %p6843_p7 = pneg %p6842_p3  ;;  %p6849_p1 = por %p6848_p2, %p6847_p12 }
  0x76   : > { %p6850_p4 = pnand %p6849_p1, %p6843_p7 }
  0x78   : > { %6853 = shalt.err (!%p6850_p4)
}
  0x79   : > { %s6940_s15 = smov 448   ;;  %s6941_s21 = smov 28  }
  0x7a   : > { %6169 = dma.hbm_to_vmem [thread:$0]  (!%p7147_p11), %s7145_s16, 7168, %s7151_s1, %s7153_s25, %s6940_s15, %s6940_s15, %s6941_s21  }
  0x7b   : > { %p9236_p9 = scmp.ne.s32.totalorder %s9229_s14, 0 }
  0x7d   : > { %319 = sbr.rel (%p9236_p9) target bundleno = 1549 (0x60d), region = 52 }
  0x84   : > { %s7184_s26 = sand.u32 1, %s6920_s30   ;;  %p9237_p0 = scmp.ne.s32.totalorder %s9227_s12, 0 }
  0x85   : > { %s6139_s27 = smul.u32 448, %s7184_s26  ;;  %s322_s28 = scalar_lea.sflag [#allocation4], %s7184_s26 }
  0x87   : > { %s7188_s17 = scalar_lea.vmem [#allocation3], %s6139_s27 }
  0x88   : > { %6899 = dma.done.wait (%p9237_p0), %s322_s28, 7168  }
  0x89   : > { %6901 = vsyncadd (%p9237_p0), %s322_s28, 4294960128  ;;  %p9238_p11 = scmp.eq.s32.totalorder %s7015_s7, 0 }
  0x8b   : > { %6903 = dma.done.wait (%p9238_p11), [#allocation7], 61440   ;;  %p9239_p8 = pmov %p9238_p11 }
  0x8d   : > { %6905 = vsyncadd (%p9239_p8), [#allocation7], 4294905856  ;;  %p9240_p13 = pmov %p9239_p8 }
  0x8e   : > { %p9241_p6 = pmov %p9239_p8 }
  0x8f   : > { %6907 = dma.done.wait (%p9240_p13), [#allocation10], 4096  }
  0x90   : > { %6909 = vsyncadd (%p9241_p6), [#allocation10], 4294963200  ;;  %v6228_v0 = vld [vmem:[#allocation6 + $0x4] ss:$16 sps:$4 sm:$0xff]   ;;  %v6230_v1 = vld [vmem:[#allocation6 + $0xc] ss:$16 sps:$4 sm:$0xff]  }
  0x91   : > { %2092 = vmatprep.subr.bf16.mxu0 %v6228_v0  ;;  %v6232_v2 = vld [vmem:[#allocation6] ss:$16 sps:$4 sm:$0xff]   ;;  %v6233_v3 = vld [vmem:[#allocation6 + $0x8] ss:$16 sps:$4 sm:$0xff]   ;;  %2544 = vmatprep.subr.bf16.mxu1 %v6230_v1  ;;  %v6234_v4 = vld [vmem:[#allocation6 + $0x24] ss:$16 sps:$4 sm:$0xff]  }
  0x92   : > { %2093 = vmatpush1.bf16.msra.mxu0 %v6232_v2  ;;  %2545 = vmatpush1.bf16.msra.mxu1 %v6233_v3  ;;  %v6236_v5 = vld [vmem:[#allocation6 + $0x2c] ss:$16 sps:$4 sm:$0xff]   ;;  %v6238_v6 = vld [vmem:[#allocation6 + $0x20] ss:$16 sps:$4 sm:$0xff]   ;;  %v6239_v7 = vld [vmem:[#allocation6 + $0x28] ss:$16 sps:$4 sm:$0xff]  }
  0x93   : > { %2094 = vmatprep.subr.bf16.mxu0 %v6234_v4  ;;  %2546 = vmatprep.subr.bf16.mxu1 %v6236_v5  ;;  %v6240_v8 = vld [vmem:[#allocation6 + $0x44] ss:$16 sps:$4 sm:$0xff]   ;;  %v6242_v9 = vld [vmem:[#allocation6 + $0x4c] ss:$16 sps:$4 sm:$0xff]   ;;  %v6244_v10 = vld [vmem:[#allocation6 + $0x40] ss:$16 sps:$4 sm:$0xff]  }
  0x94   : > { %v6245_v11 = vld [vmem:[#allocation6 + $0x48] ss:$16 sps:$4 sm:$0xff]   ;;  %v6246_v12 = vld [vmem:[#allocation6 + $0x64] ss:$16 sps:$4 sm:$0xff]   ;;  %v6248_v13 = vld [vmem:[#allocation6 + $0x6c] ss:$16 sps:$4 sm:$0xff]  }
  0x95   : > { %v6250_v14 = vld [vmem:[#allocation6 + $0x60] ss:$16 sps:$4 sm:$0xff]   ;;  %v6251_v15 = vld [vmem:[#allocation6 + $0x68] ss:$16 sps:$4 sm:$0xff]   ;;  %v6252_v16 = vld [vmem:[#allocation6 + $0x84] ss:$16 sps:$4 sm:$0xff]  }
  0x96   : > { %2095 = vmatpush1.bf16.msra.mxu0 %v6238_v6  ;;  %2547 = vmatpush1.bf16.msra.mxu1 %v6239_v7  ;;  %v6254_v17 = vld [vmem:[#allocation6 + $0x8c] ss:$16 sps:$4 sm:$0xff]   ;;  %v6256_v18 = vld [vmem:[#allocation6 + $0x80] ss:$16 sps:$4 sm:$0xff]   ;;  %v6257_v19 = vld [vmem:[#allocation6 + $0x88] ss:$16 sps:$4 sm:$0xff]  }
  0x97   : > { %2096 = vmatprep.subr.bf16.mxu0 %v6240_v8  ;;  %2548 = vmatprep.subr.bf16.mxu1 %v6242_v9  ;;  %v6258_v20 = vld [vmem:[#allocation6 + $0xa4] ss:$16 sps:$4 sm:$0xff]   ;;  %v6260_v21 = vld [vmem:[#allocation6 + $0xac] ss:$16 sps:$4 sm:$0xff]   ;;  %v6262_v22 = vld [vmem:[#allocation6 + $0xa0] ss:$16 sps:$4 sm:$0xff]  }
  0x98   : > { %v6263_v23 = vld [vmem:[#allocation6 + $0xa8] ss:$16 sps:$4 sm:$0xff]   ;;  %v6264_v24 = vld [vmem:[#allocation6 + $0xc4] ss:$16 sps:$4 sm:$0xff]   ;;  %v6266_v25 = vld [vmem:[#allocation6 + $0xcc] ss:$16 sps:$4 sm:$0xff]  }
  0x99   : > { %v6268_v26 = vld [vmem:[#allocation6 + $0xc0] ss:$16 sps:$4 sm:$0xff]   ;;  %v6269_v27 = vld [vmem:[#allocation6 + $0xc8] ss:$16 sps:$4 sm:$0xff]   ;;  %v6270_v28 = vld [vmem:[#allocation6 + $0xe4] ss:$16 sps:$4 sm:$0xff]  }
  0x9a   : > { %2097 = vmatpush1.bf16.msra.mxu0 %v6244_v10  ;;  %2549 = vmatpush1.bf16.msra.mxu1 %v6245_v11  ;;  %v6272_v29 = vld [vmem:[#allocation6 + $0xec] ss:$16 sps:$4 sm:$0xff]   ;;  %v6274_v30 = vld [vmem:[#allocation6 + $0xe0] ss:$16 sps:$4 sm:$0xff]   ;;  %v6275_v31 = vld [vmem:[#allocation6 + $0xe8] ss:$16 sps:$4 sm:$0xff]  }
  0x9b   : > { %2098 = vmatprep.subr.bf16.mxu0 %v6246_v12  ;;  %2550 = vmatprep.subr.bf16.mxu1 %v6248_v13  ;;  %v6276_v32 = vld [vmem:[#allocation6 + $0x104] ss:$16 sps:$4 sm:$0xff]   ;;  %v6278_v33 = vld [vmem:[#allocation6 + $0x10c] ss:$16 sps:$4 sm:$0xff]   ;;  %v6280_v34 = vld [vmem:[#allocation6 + $0x100] ss:$16 sps:$4 sm:$0xff]  }
  0x9c   : > { %v6281_v35 = vld [vmem:[#allocation6 + $0x108] ss:$16 sps:$4 sm:$0xff]   ;;  %v6282_v36 = vld [vmem:[#allocation6 + $0x124] ss:$16 sps:$4 sm:$0xff]   ;;  %v6284_v37 = vld [vmem:[#allocation6 + $0x12c] ss:$16 sps:$4 sm:$0xff]  }
  0x9d   : > { %v6286_v38 = vld [vmem:[#allocation6 + $0x120] ss:$16 sps:$4 sm:$0xff]   ;;  %v6287_v39 = vld [vmem:[#allocation6 + $0x128] ss:$16 sps:$4 sm:$0xff]   ;;  %v6288_v40 = vld [vmem:[#allocation6 + $0x144] ss:$16 sps:$4 sm:$0xff]  }
  0x9e   : > { %2099 = vmatpush1.bf16.msra.mxu0 %v6250_v14  ;;  %2551 = vmatpush1.bf16.msra.mxu1 %v6251_v15  ;;  %v6290_v41 = vld [vmem:[#allocation6 + $0x14c] ss:$16 sps:$4 sm:$0xff]   ;;  %v6292_v42 = vld [vmem:[#allocation6 + $0x140] ss:$16 sps:$4 sm:$0xff]   ;;  %v6293_v43 = vld [vmem:[#allocation6 + $0x148] ss:$16 sps:$4 sm:$0xff]  }
  0x9f   : > { %2100 = vmatprep.subr.bf16.mxu0 %v6252_v16  ;;  %2552 = vmatprep.subr.bf16.mxu1 %v6254_v17  ;;  %v6294_v44 = vld [vmem:[#allocation6 + $0x164] ss:$16 sps:$4 sm:$0xff]   ;;  %v6296_v45 = vld [vmem:[#allocation6 + $0x16c] ss:$16 sps:$4 sm:$0xff]   ;;  %v6298_v46 = vld [vmem:[#allocation6 + $0x160] ss:$16 sps:$4 sm:$0xff]  }
  0xa0   : > { %v6299_v47 = vld [vmem:[#allocation6 + $0x168] ss:$16 sps:$4 sm:$0xff]   ;;  %v6326_v48 = vld [vmem:[%s7188_s17 + $0x4] ss:$28 sps:$4 sm:$0xff]   ;;  %v6302_v50 = vld [vmem:[#allocation6 + $0x18c] ss:$16 sps:$4 sm:$0xff]  }
  0xa1   : > { %v6300_v49 = vld [vmem:[#allocation6 + $0x184] ss:$16 sps:$4 sm:$0xff]   ;;  %2124 = vmatprep.mubr.bf16.mxu0 %v6326_v48  ;;  %2576 = vmatprep.mubr.bf16.mxu1 %v6326_v48  ;;  %v6304_v51 = vld [vmem:[#allocation6 + $0x180] ss:$16 sps:$4 sm:$0xff]   ;;  %v6305_v52 = vld [vmem:[#allocation6 + $0x188] ss:$16 sps:$4 sm:$0xff]  }
  0xa2   : > { %2101 = vmatpush1.bf16.msra.mxu0 %v6256_v18  ;;  %2553 = vmatpush1.bf16.msra.mxu1 %v6257_v19  ;;  %v6306_v53 = vld [vmem:[#allocation6 + $0x1a4] ss:$16 sps:$4 sm:$0xff]   ;;  %v6308_v54 = vld [vmem:[#allocation6 + $0x1ac] ss:$16 sps:$4 sm:$0xff]   ;;  %v6310_v55 = vld [vmem:[#allocation6 + $0x1a0] ss:$16 sps:$4 sm:$0xff]  }
  0xa3   : > { %2102 = vmatprep.subr.bf16.mxu0 %v6258_v20  ;;  %2554 = vmatprep.subr.bf16.mxu1 %v6260_v21  ;;  %v6311_v56 = vld [vmem:[#allocation6 + $0x1a8] ss:$16 sps:$4 sm:$0xff]   ;;  %v6312_v57 = vld [vmem:[#allocation6 + $0x1c4] ss:$16 sps:$4 sm:$0xff]   ;;  %v6314_v58 = vld [vmem:[#allocation6 + $0x1cc] ss:$16 sps:$4 sm:$0xff]  }
  0xa4   : > { %v6316_v59 = vld [vmem:[#allocation6 + $0x1c0] ss:$16 sps:$4 sm:$0xff]   ;;  %v6317_v60 = vld [vmem:[#allocation6 + $0x1c8] ss:$16 sps:$4 sm:$0xff]   ;;  %v6318_v61 = vld [vmem:[#allocation6 + $0x1e4] ss:$16 sps:$4 sm:$0xff]  }
  0xa5   : > { %v6320_v62 = vld [vmem:[#allocation6 + $0x1ec] ss:$16 sps:$4 sm:$0xff]   ;;  %v6322_v63 = vld [vmem:[#allocation6 + $0x1e0] ss:$16 sps:$4 sm:$0xff]   ;;  %v6323_v0 = vld [vmem:[#allocation6 + $0x1e8] ss:$16 sps:$4 sm:$0xff]  }
  0xa6   : > { %2103 = vmatpush1.bf16.msra.mxu0 %v6262_v22  ;;  %2555 = vmatpush1.bf16.msra.mxu1 %v6263_v23  ;;  %v6329_v1 = vld [vmem:[#allocation6 + $0x204] ss:$16 sps:$4 sm:$0xff]   ;;  %v6332_v2 = vld [vmem:[#allocation6 + $0x20c] ss:$16 sps:$4 sm:$0xff]   ;;  %v6327_v4 = vld [vmem:[#allocation6 + $0x200] ss:$16 sps:$4 sm:$0xff]  }
  0xa7   : > { %2104 = vmatprep.subr.bf16.mxu0 %v6264_v24  ;;  %2556 = vmatprep.subr.bf16.mxu1 %v6266_v25  ;;  %v6324_v3 = vld [vmem:[%s7188_s17] ss:$28 sps:$4 sm:$0xff]   ;;  %v6330_v5 = vld [vmem:[#allocation6 + $0x208] ss:$16 sps:$4 sm:$0xff]   ;;  %v6335_v6 = vld [vmem:[#allocation6 + $0x224] ss:$16 sps:$4 sm:$0xff]  }
  0xa8   : > { %v6338_v7 = vld [vmem:[#allocation6 + $0x22c] ss:$16 sps:$4 sm:$0xff]   ;;  %v6333_v9 = vld [vmem:[#allocation6 + $0x220] ss:$16 sps:$4 sm:$0xff]   ;;  %v6336_v10 = vld [vmem:[#allocation6 + $0x228] ss:$16 sps:$4 sm:$0xff]  }
  0xa9   : > { %v6339_v8 = vld [vmem:[%s7188_s17 + $0x3c] ss:$28 sps:$4 sm:$0xff]   ;;  %v6344_v11 = vld [vmem:[#allocation6 + $0x244] ss:$16 sps:$4 sm:$0xff]   ;;  %v6342_v14 = vld [vmem:[#allocation6 + $0x240] ss:$16 sps:$4 sm:$0xff]  }
  0xaa   : > { %2105 = vmatpush1.bf16.msra.mxu0 %v6268_v26  ;;  %2557 = vmatpush1.bf16.msra.mxu1 %v6269_v27  ;;  %v6347_v12 = vld [vmem:[#allocation6 + $0x24c] ss:$16 sps:$4 sm:$0xff]   ;;  %v6341_v13 = vld [vmem:[%s7188_s17 + $0x38] ss:$28 sps:$4 sm:$0xff]   ;;  %v6348_v19 = vld [vmem:[#allocation6 + $0x260] ss:$16 sps:$4 sm:$0xff]  }
  0xab   : > { %2106 = vmatprep.subr.bf16.mxu0 %v6270_v28  ;;  %2558 = vmatprep.subr.bf16.mxu1 %v6272_v29  ;;  %v6345_v15 = vld [vmem:[#allocation6 + $0x248] ss:$16 sps:$4 sm:$0xff]   ;;  %v6350_v16 = vld [vmem:[#allocation6 + $0x264] ss:$16 sps:$4 sm:$0xff]   ;;  %v6353_v17 = vld [vmem:[#allocation6 + $0x26c] ss:$16 sps:$4 sm:$0xff]  }
  0xac   : > { %v6354_v18 = vld [vmem:[%s7188_s17 + $0x74] ss:$28 sps:$4 sm:$0xff]   ;;  %v6351_v20 = vld [vmem:[#allocation6 + $0x268] ss:$16 sps:$4 sm:$0xff]   ;;  %v6362_v22 = vld [vmem:[#allocation6 + $0x28c] ss:$16 sps:$4 sm:$0xff]  }
  0xad   : > { %v6359_v21 = vld [vmem:[#allocation6 + $0x284] ss:$16 sps:$4 sm:$0xff]   ;;  %v6356_v23 = vld [vmem:[%s7188_s17 + $0x70] ss:$28 sps:$4 sm:$0xff]   ;;  %v6360_v25 = vld [vmem:[#allocation6 + $0x288] ss:$16 sps:$4 sm:$0xff]  }
  0xae   : > { %2107 = vmatpush1.bf16.msra.mxu0 %v6274_v30  ;;  %2559 = vmatpush1.bf16.msra.mxu1 %v6275_v31  ;;  %v6357_v24 = vld [vmem:[#allocation6 + $0x280] ss:$16 sps:$4 sm:$0xff]   ;;  %v6365_v26 = vld [vmem:[#allocation6 + $0x2a4] ss:$16 sps:$4 sm:$0xff]   ;;  %v6368_v27 = vld [vmem:[#allocation6 + $0x2ac] ss:$16 sps:$4 sm:$0xff]  }
  0xaf   : > { %2108 = vmatprep.subr.bf16.mxu0 %v6276_v32  ;;  %2560 = vmatprep.subr.bf16.mxu1 %v6278_v33  ;;  %v6369_v28 = vld [vmem:[%s7188_s17 + $0xac] ss:$28 sps:$4 sm:$0xff]   ;;  %v6363_v29 = vld [vmem:[#allocation6 + $0x2a0] ss:$16 sps:$4 sm:$0xff]   ;;  %v6374_v31 = vld [vmem:[#allocation6 + $0x2c4] ss:$16 sps:$4 sm:$0xff]  }
  0xb0   : > { %v6366_v30 = vld [vmem:[#allocation6 + $0x2a8] ss:$16 sps:$4 sm:$0xff]   ;;  %v6377_v32 = vld [vmem:[#allocation6 + $0x2cc] ss:$16 sps:$4 sm:$0xff]   ;;  %s7276_s12 = sld [smem:[#allocation2]]  ;;  %s5049_s11 = sshll.u32 %s7184_s26, 7 }
  0xb1   : > { %v6371_v33 = vld [vmem:[%s7188_s17 + $0xa8] ss:$28 sps:$4 sm:$0xff]   ;;  %v6399_v48 = vld [vmem:[%s7188_s17 + $0x11c] ss:$28 sps:$4 sm:$0xff]   ;;  %s9021_s20 = scalar_lea.vmem [#allocation11], %s5049_s11  ;;  %s5368_s15 = sshll.u32 %s7015_s7, 11 }
  0xb2   : > { %2109 = vmatpush1.bf16.msra.mxu0 %v6280_v34  ;;  %2561 = vmatpush1.bf16.msra.mxu1 %v6281_v35  ;;  %v6372_v34 = vld [vmem:[#allocation6 + $0x2c0] ss:$16 sps:$4 sm:$0xff]   ;;  %v6375_v35 = vld [vmem:[#allocation6 + $0x2c8] ss:$16 sps:$4 sm:$0xff]   ;;  %s4934_s21 = sshll.u32 %s9021_s20, 4  ;;  %s4921_s7 = scalar_lea.sflag [#allocation5], %s7184_s26  ;;  %s9058_s21 = int_to_ptr.vmem [resolvable:$true] %s4934_s21 }
  0xb3   : > { %2110 = vmatprep.subr.bf16.mxu0 %v6282_v36  ;;  %2562 = vmatprep.subr.bf16.mxu1 %v6284_v37  ;;  %v6380_v36 = vld [vmem:[#allocation6 + $0x2e4] ss:$16 sps:$4 sm:$0xff]   ;;  %v6383_v37 = vld [vmem:[#allocation6 + $0x2ec] ss:$16 sps:$4 sm:$0xff]   ;;  %s6943_s14 = smov [#allocation11]  }
  0xb4   : > { %s6858_s16 = sshll.u32 %s6943_s14, 4  ;;  %s6859_s16 = int_to_ptr.vmem [resolvable:$false] %s6858_s16 }
  0xb5   : > { %s6860_s19 = scalar_lea.vmem %s6859_s16, 4096  ;;  %p6861_p12 = scmp.lt.s32.totalorder %s9058_s21, %s6859_s16 }
  0xb6   : > { %2111 = vmatpush1.bf16.msra.mxu0 %v6286_v38  ;;  %2563 = vmatpush1.bf16.msra.mxu1 %v6287_v39  ;;  %v6384_v38 = vld [vmem:[%s7188_s17 + $0xe4] ss:$28 sps:$4 sm:$0xff]  }
  0xb7   : > { %2112 = vmatprep.subr.bf16.mxu0 %v6288_v40  ;;  %2564 = vmatprep.subr.bf16.mxu1 %v6290_v41  ;;  %v6378_v39 = vld [vmem:[#allocation6 + $0x2e0] ss:$16 sps:$4 sm:$0xff]   ;;  %v6381_v40 = vld [vmem:[#allocation6 + $0x2e8] ss:$16 sps:$4 sm:$0xff]   ;;  %v6389_v41 = vld [vmem:[#allocation6 + $0x304] ss:$16 sps:$4 sm:$0xff]  }
  0xba   : > { %2113 = vmatpush1.bf16.msra.mxu0 %v6292_v42  ;;  %2565 = vmatpush1.bf16.msra.mxu1 %v6293_v43  ;;  %v6392_v42 = vld [vmem:[#allocation6 + $0x30c] ss:$16 sps:$4 sm:$0xff]  }
  0xbb   : > { %2114 = vmatprep.subr.bf16.mxu0 %v6294_v44  ;;  %2566 = vmatprep.subr.bf16.mxu1 %v6296_v45  ;;  %v6386_v43 = vld [vmem:[%s7188_s17 + $0xe0] ss:$28 sps:$4 sm:$0xff]   ;;  %v6390_v45 = vld [vmem:[#allocation6 + $0x308] ss:$16 sps:$4 sm:$0xff]  }
  0xbc   : > { %v6387_v44 = vld [vmem:[#allocation6 + $0x300] ss:$16 sps:$4 sm:$0xff]  }
  0xbe   : > { %2115 = vmatpush1.bf16.msra.mxu0 %v6298_v46  ;;  %2567 = vmatpush1.bf16.msra.mxu1 %v6299_v47  ;;  %v6395_v46 = vld [vmem:[#allocation6 + $0x324] ss:$16 sps:$4 sm:$0xff]   ;;  %v6398_v47 = vld [vmem:[#allocation6 + $0x32c] ss:$16 sps:$4 sm:$0xff]  }
  0xbf   : > { %2116 = vmatprep.subr.bf16.mxu0 %v6300_v49  ;;  %2568 = vmatprep.subr.bf16.mxu1 %v6302_v50  ;;  %v6393_v49 = vld [vmem:[#allocation6 + $0x320] ss:$16 sps:$4 sm:$0xff]   ;;  %v6396_v50 = vld [vmem:[#allocation6 + $0x328] ss:$16 sps:$4 sm:$0xff]  }
  0xc2   : > { %2117 = vmatpush1.bf16.msra.mxu0 %v6304_v51  ;;  %2569 = vmatpush1.bf16.msra.mxu1 %v6305_v52  ;;  %v6404_v51 = vld [vmem:[#allocation6 + $0x344] ss:$16 sps:$4 sm:$0xff]   ;;  %v6407_v52 = vld [vmem:[#allocation6 + $0x34c] ss:$16 sps:$4 sm:$0xff]  }
  0xc3   : > { %2118 = vmatprep.subr.bf16.mxu0 %v6306_v53  ;;  %2570 = vmatprep.subr.bf16.mxu1 %v6308_v54  ;;  %v6401_v53 = vld [vmem:[%s7188_s17 + $0x118] ss:$28 sps:$4 sm:$0xff]   ;;  %v6402_v54 = vld [vmem:[#allocation6 + $0x340] ss:$16 sps:$4 sm:$0xff]  }
  0xc6   : > { %2119 = vmatpush1.bf16.msra.mxu0 %v6310_v55  ;;  %2571 = vmatpush1.bf16.msra.mxu1 %v6311_v56  ;;  %v6405_v55 = vld [vmem:[#allocation6 + $0x348] ss:$16 sps:$4 sm:$0xff]   ;;  %v6410_v56 = vld [vmem:[#allocation6 + $0x364] ss:$16 sps:$4 sm:$0xff]  }
  0xc7   : > { %2120 = vmatprep.subr.bf16.mxu0 %v6312_v57  ;;  %2572 = vmatprep.subr.bf16.mxu1 %v6314_v58  ;;  %v6413_v57 = vld [vmem:[#allocation6 + $0x36c] ss:$16 sps:$4 sm:$0xff]   ;;  %v6414_v58 = vld [vmem:[%s7188_s17 + $0x154] ss:$28 sps:$4 sm:$0xff]  }
  0xca   : > { %2121 = vmatpush1.bf16.msra.mxu0 %v6316_v59  ;;  %2573 = vmatpush1.bf16.msra.mxu1 %v6317_v60  ;;  %v6408_v59 = vld [vmem:[#allocation6 + $0x360] ss:$16 sps:$4 sm:$0xff]   ;;  %v6411_v60 = vld [vmem:[#allocation6 + $0x368] ss:$16 sps:$4 sm:$0xff]  }
  0xcb   : > { %2122 = vmatprep.subr.bf16.mxu0 %v6318_v61  ;;  %2574 = vmatprep.subr.bf16.mxu1 %v6320_v62  ;;  %v6419_v61 = vld [vmem:[#allocation6 + $0x384] ss:$16 sps:$4 sm:$0xff]   ;;  %v6422_v62 = vld [vmem:[#allocation6 + $0x38c] ss:$16 sps:$4 sm:$0xff]  }
  0xce   : > { %2123 = vmatpush1.bf16.msra.mxu0 %v6322_v63  ;;  %2575 = vmatpush1.bf16.msra.mxu1 %v6323_v0  ;;  %v6416_v63 = vld [vmem:[%s7188_s17 + $0x150] ss:$28 sps:$4 sm:$0xff]  }
  0xcf   : > { %2205 = vmatprep.subr.bf16.mxu0 %v6329_v1  ;;  %2657 = vmatprep.subr.bf16.mxu1 %v6332_v2  ;;  %v6417_v0 = vld [vmem:[#allocation6 + $0x380] ss:$16 sps:$4 sm:$0xff]   ;;  %v6420_v1 = vld [vmem:[#allocation6 + $0x388] ss:$16 sps:$4 sm:$0xff]   ;;  %v6425_v2 = vld [vmem:[#allocation6 + $0x3a4] ss:$16 sps:$4 sm:$0xff]  }
  0xd1   : > { %2125 = vmatmul.mubr.bf16.vlgmr.msra.gmra.mrb[0].mxu0 %v6324_v3  ;;  %2577 = vmatmul.mubr.bf16.vlgmr.msra.gmra.mrb[0].mxu1 %v6324_v3  ;;  %v6428_v3 = vld [vmem:[#allocation6 + $0x3ac] ss:$16 sps:$4 sm:$0xff]  }
  0xd2   : > { %2206 = vmatpush1.bf16.msra.mxu0 %v6327_v4  ;;  %2658 = vmatpush1.bf16.msra.mxu1 %v6330_v5  ;;  %v6429_v4 = vld [vmem:[%s7188_s17 + $0x18c] ss:$28 sps:$4 sm:$0xff]   ;;  %v6423_v5 = vld [vmem:[#allocation6 + $0x3a0] ss:$16 sps:$4 sm:$0xff]  }
  0xd3   : > { %2207 = vmatprep.subr.bf16.mxu0 %v6335_v6  ;;  %2659 = vmatprep.subr.bf16.mxu1 %v6338_v7  ;;  %v6426_v6 = vld [vmem:[#allocation6 + $0x3a8] ss:$16 sps:$4 sm:$0xff]   ;;  %v6434_v7 = vld [vmem:[#allocation6 + $0x3c4] ss:$16 sps:$4 sm:$0xff]  }
  0xd4   : > { %2134 = vmatprep.mubr.bf16.mxu0 %v6339_v8  ;;  %2586 = vmatprep.mubr.bf16.mxu1 %v6339_v8  ;;  %v6437_v8 = vld [vmem:[#allocation6 + $0x3cc] ss:$16 sps:$4 sm:$0xff]  }
  0xd6   : > { %2208 = vmatpush1.bf16.msra.mxu0 %v6333_v9  ;;  %2660 = vmatpush1.bf16.msra.mxu1 %v6336_v10  ;;  %v6431_v9 = vld [vmem:[%s7188_s17 + $0x188] ss:$28 sps:$4 sm:$0xff]   ;;  %v6432_v10 = vld [vmem:[#allocation6 + $0x3c0] ss:$16 sps:$4 sm:$0xff]  }
  0xd7   : > { %2209 = vmatprep.subr.bf16.mxu0 %v6344_v11  ;;  %2661 = vmatprep.subr.bf16.mxu1 %v6347_v12  ;;  %v6435_v11 = vld [vmem:[#allocation6 + $0x3c8] ss:$16 sps:$4 sm:$0xff]   ;;  %v6440_v12 = vld [vmem:[#allocation6 + $0x3e4] ss:$16 sps:$4 sm:$0xff]  }
  0xd9   : > { %2135 = vmatmul.mubr.bf16.gmra.mrb[4].mxu0 %v6341_v13  ;;  %2587 = vmatmul.mubr.bf16.gmra.mrb[4].mxu1 %v6341_v13  ;;  %v6443_v13 = vld [vmem:[#allocation6 + $0x3ec] ss:$16 sps:$4 sm:$0xff]  }
  0xda   : > { %2210 = vmatpush1.bf16.msra.mxu0 %v6342_v14  ;;  %2662 = vmatpush1.bf16.msra.mxu1 %v6345_v15  ;;  %v6446_v14 = vld [vmem:[%s7188_s17 + $0xc] ss:$28 sps:$4 sm:$0xff]   ;;  %v6438_v15 = vld [vmem:[#allocation6 + $0x3e0] ss:$16 sps:$4 sm:$0xff]  }
  0xdb   : > { %2211 = vmatprep.subr.bf16.mxu0 %v6350_v16  ;;  %2663 = vmatprep.subr.bf16.mxu1 %v6353_v17  ;;  %v6441_v16 = vld [vmem:[#allocation6 + $0x3e8] ss:$16 sps:$4 sm:$0xff]   ;;  %v6449_v17 = vld [vmem:[#allocation6 + $0x404] ss:$16 sps:$4 sm:$0xff]  }
  0xdc   : > { %2144 = vmatprep.mubr.bf16.mxu0 %v6354_v18  ;;  %2596 = vmatprep.mubr.bf16.mxu1 %v6354_v18  ;;  %v6452_v18 = vld [vmem:[#allocation6 + $0x40c] ss:$16 sps:$4 sm:$0xff]  }
  0xde   : > { %2212 = vmatpush1.bf16.msra.mxu0 %v6348_v19  ;;  %2664 = vmatpush1.bf16.msra.mxu1 %v6351_v20  ;;  %v6444_v19 = vld [vmem:[%s7188_s17 + $0x8] ss:$28 sps:$4 sm:$0xff]   ;;  %v6447_v20 = vld [vmem:[#allocation6 + $0x400] ss:$16 sps:$4 sm:$0xff]  }
  0xdf   : > { %2213 = vmatprep.subr.bf16.mxu0 %v6359_v21  ;;  %2665 = vmatprep.subr.bf16.mxu1 %v6362_v22  ;;  %v6450_v21 = vld [vmem:[#allocation6 + $0x408] ss:$16 sps:$4 sm:$0xff]   ;;  %v6455_v22 = vld [vmem:[#allocation6 + $0x424] ss:$16 sps:$4 sm:$0xff]  }
  0xe1   : > { %2145 = vmatmul.mubr.bf16.gmra.mrb[8].mxu0 %v6356_v23  ;;  %2597 = vmatmul.mubr.bf16.gmra.mrb[8].mxu1 %v6356_v23  ;;  %v6458_v23 = vld [vmem:[#allocation6 + $0x42c] ss:$16 sps:$4 sm:$0xff]  }
  0xe2   : > { %2214 = vmatpush1.bf16.msra.mxu0 %v6357_v24  ;;  %2666 = vmatpush1.bf16.msra.mxu1 %v6360_v25  ;;  %v6459_v24 = vld [vmem:[%s7188_s17 + $0x44] ss:$28 sps:$4 sm:$0xff]  }
  0xe3   : > { %2215 = vmatprep.subr.bf16.mxu0 %v6365_v26  ;;  %2667 = vmatprep.subr.bf16.mxu1 %v6368_v27  ;;  %v6453_v25 = vld [vmem:[#allocation6 + $0x420] ss:$16 sps:$4 sm:$0xff]   ;;  %v6456_v26 = vld [vmem:[#allocation6 + $0x428] ss:$16 sps:$4 sm:$0xff]   ;;  %v6464_v27 = vld [vmem:[#allocation6 + $0x444] ss:$16 sps:$4 sm:$0xff]  }
  0xe4   : > { %2154 = vmatprep.mubr.bf16.mxu0 %v6369_v28  ;;  %2606 = vmatprep.mubr.bf16.mxu1 %v6369_v28  ;;  %v6467_v28 = vld [vmem:[#allocation6 + $0x44c] ss:$16 sps:$4 sm:$0xff]  }
  0xe6   : > { %2216 = vmatpush1.bf16.msra.mxu0 %v6363_v29  ;;  %2668 = vmatpush1.bf16.msra.mxu1 %v6366_v30  ;;  %v6461_v29 = vld [vmem:[%s7188_s17 + $0x40] ss:$28 sps:$4 sm:$0xff]  }
  0xe7   : > { %2217 = vmatprep.subr.bf16.mxu0 %v6374_v31  ;;  %2669 = vmatprep.subr.bf16.mxu1 %v6377_v32  ;;  %v6462_v30 = vld [vmem:[#allocation6 + $0x440] ss:$16 sps:$4 sm:$0xff]   ;;  %v6465_v31 = vld [vmem:[#allocation6 + $0x448] ss:$16 sps:$4 sm:$0xff]   ;;  %v6470_v32 = vld [vmem:[#allocation6 + $0x464] ss:$16 sps:$4 sm:$0xff]  }
  0xe9   : > { %2155 = vmatmul.mubr.bf16.gmra.mrb[12].mxu0 %v6371_v33  ;;  %2607 = vmatmul.mubr.bf16.gmra.mrb[12].mxu1 %v6371_v33  ;;  %v6473_v33 = vld [vmem:[#allocation6 + $0x46c] ss:$16 sps:$4 sm:$0xff]  }
  0xea   : > { %2218 = vmatpush1.bf16.msra.mxu0 %v6372_v34  ;;  %2670 = vmatpush1.bf16.msra.mxu1 %v6375_v35  ;;  %v6474_v34 = vld [vmem:[%s7188_s17 + $0x7c] ss:$28 sps:$4 sm:$0xff]   ;;  %v6468_v35 = vld [vmem:[#allocation6 + $0x460] ss:$16 sps:$4 sm:$0xff]  }
  0xeb   : > { %2219 = vmatprep.subr.bf16.mxu0 %v6380_v36  ;;  %2671 = vmatprep.subr.bf16.mxu1 %v6383_v37  ;;  %v6471_v36 = vld [vmem:[#allocation6 + $0x468] ss:$16 sps:$4 sm:$0xff]   ;;  %v6479_v37 = vld [vmem:[#allocation6 + $0x484] ss:$16 sps:$4 sm:$0xff]  }
  0xec   : > { %2164 = vmatprep.mubr.bf16.mxu0 %v6384_v38  ;;  %2616 = vmatprep.mubr.bf16.mxu1 %v6384_v38  ;;  %v6482_v38 = vld [vmem:[#allocation6 + $0x48c] ss:$16 sps:$4 sm:$0xff]  }
  0xee   : > { %2220 = vmatpush1.bf16.msra.mxu0 %v6378_v39  ;;  %2672 = vmatpush1.bf16.msra.mxu1 %v6381_v40  ;;  %v6476_v39 = vld [vmem:[%s7188_s17 + $0x78] ss:$28 sps:$4 sm:$0xff]   ;;  %v6477_v40 = vld [vmem:[#allocation6 + $0x480] ss:$16 sps:$4 sm:$0xff]  }
  0xef   : > { %2221 = vmatprep.subr.bf16.mxu0 %v6389_v41  ;;  %2673 = vmatprep.subr.bf16.mxu1 %v6392_v42  ;;  %v6480_v41 = vld [vmem:[#allocation6 + $0x488] ss:$16 sps:$4 sm:$0xff]   ;;  %v6485_v42 = vld [vmem:[#allocation6 + $0x4a4] ss:$16 sps:$4 sm:$0xff]  }
  0xf1   : > { %2165 = vmatmul.mubr.bf16.gmra.mrb[16].mxu0 %v6386_v43  ;;  %2617 = vmatmul.mubr.bf16.gmra.mrb[16].mxu1 %v6386_v43  ;;  %v6488_v43 = vld [vmem:[#allocation6 + $0x4ac] ss:$16 sps:$4 sm:$0xff]  }
  0xf2   : > { %2222 = vmatpush1.bf16.msra.mxu0 %v6387_v44  ;;  %2674 = vmatpush1.bf16.msra.mxu1 %v6390_v45  ;;  %v6489_v44 = vld [vmem:[%s7188_s17 + $0xb4] ss:$28 sps:$4 sm:$0xff]  }
  0xf3   : > { %2223 = vmatprep.subr.bf16.mxu0 %v6395_v46  ;;  %2675 = vmatprep.subr.bf16.mxu1 %v6398_v47  ;;  %v6483_v45 = vld [vmem:[#allocation6 + $0x4a0] ss:$16 sps:$4 sm:$0xff]   ;;  %v6486_v46 = vld [vmem:[#allocation6 + $0x4a8] ss:$16 sps:$4 sm:$0xff]   ;;  %v6494_v47 = vld [vmem:[#allocation6 + $0x4c4] ss:$16 sps:$4 sm:$0xff]  }
  0xf4   : > { %2174 = vmatprep.mubr.bf16.mxu0 %v6399_v48  ;;  %2626 = vmatprep.mubr.bf16.mxu1 %v6399_v48  ;;  %v6497_v48 = vld [vmem:[#allocation6 + $0x4cc] ss:$16 sps:$4 sm:$0xff]  }
  0xf6   : > { %2224 = vmatpush1.bf16.msra.mxu0 %v6393_v49  ;;  %2676 = vmatpush1.bf16.msra.mxu1 %v6396_v50  ;;  %v6491_v49 = vld [vmem:[%s7188_s17 + $0xb0] ss:$28 sps:$4 sm:$0xff]  }
  0xf7   : > { %2225 = vmatprep.subr.bf16.mxu0 %v6404_v51  ;;  %2677 = vmatprep.subr.bf16.mxu1 %v6407_v52  ;;  %v6492_v50 = vld [vmem:[#allocation6 + $0x4c0] ss:$16 sps:$4 sm:$0xff]   ;;  %v6495_v51 = vld [vmem:[#allocation6 + $0x4c8] ss:$16 sps:$4 sm:$0xff]   ;;  %v6500_v52 = vld [vmem:[#allocation6 + $0x4e4] ss:$16 sps:$4 sm:$0xff]  }
  0xf9   : > { %2175 = vmatmul.mubr.bf16.gmra.mrb[20].mxu0 %v6401_v53  ;;  %2627 = vmatmul.mubr.bf16.gmra.mrb[20].mxu1 %v6401_v53  ;;  %v6503_v53 = vld [vmem:[#allocation6 + $0x4ec] ss:$16 sps:$4 sm:$0xff]  }
  0xfa   : > { %2226 = vmatpush1.bf16.msra.mxu0 %v6402_v54  ;;  %2678 = vmatpush1.bf16.msra.mxu1 %v6405_v55  ;;  %v6504_v54 = vld [vmem:[%s7188_s17 + $0xec] ss:$28 sps:$4 sm:$0xff]   ;;  %v6498_v55 = vld [vmem:[#allocation6 + $0x4e0] ss:$16 sps:$4 sm:$0xff]  }
  0xfb   : > { %2227 = vmatprep.subr.bf16.mxu0 %v6410_v56  ;;  %2679 = vmatprep.subr.bf16.mxu1 %v6413_v57  ;;  %v6501_v56 = vld [vmem:[#allocation6 + $0x4e8] ss:$16 sps:$4 sm:$0xff]   ;;  %v6509_v57 = vld [vmem:[#allocation6 + $0x504] ss:$16 sps:$4 sm:$0xff]  }
  0xfc   : > { %2184 = vmatprep.mubr.bf16.mxu0 %v6414_v58  ;;  %2636 = vmatprep.mubr.bf16.mxu1 %v6414_v58  ;;  %v6512_v58 = vld [vmem:[#allocation6 + $0x50c] ss:$16 sps:$4 sm:$0xff]  }
  0xfe   : > { %2228 = vmatpush1.bf16.msra.mxu0 %v6408_v59  ;;  %2680 = vmatpush1.bf16.msra.mxu1 %v6411_v60  ;;  %v6506_v59 = vld [vmem:[%s7188_s17 + $0xe8] ss:$28 sps:$4 sm:$0xff]   ;;  %v6507_v60 = vld [vmem:[#allocation6 + $0x500] ss:$16 sps:$4 sm:$0xff]  }
  0xff   : > { %2229 = vmatprep.subr.bf16.mxu0 %v6419_v61  ;;  %2681 = vmatprep.subr.bf16.mxu1 %v6422_v62  ;;  %v6510_v61 = vld [vmem:[#allocation6 + $0x508] ss:$16 sps:$4 sm:$0xff]   ;;  %v6515_v62 = vld [vmem:[#allocation6 + $0x524] ss:$16 sps:$4 sm:$0xff]  }
 0x101   : > { %2185 = vmatmul.mubr.bf16.gmra.mrb[24].mxu0 %v6416_v63  ;;  %2637 = vmatmul.mubr.bf16.gmra.mrb[24].mxu1 %v6416_v63  ;;  %v6518_v63 = vld [vmem:[#allocation6 + $0x52c] ss:$16 sps:$4 sm:$0xff]  }
 0x102   : > { %2230 = vmatpush1.bf16.msra.mxu0 %v6417_v0  ;;  %2682 = vmatpush1.bf16.msra.mxu1 %v6420_v1  ;;  %v6519_v0 = vld [vmem:[%s7188_s17 + $0x124] ss:$28 sps:$4 sm:$0xff]  }
 0x103   : > { %2231 = vmatprep.subr.bf16.mxu0 %v6425_v2  ;;  %2683 = vmatprep.subr.bf16.mxu1 %v6428_v3  ;;  %v6513_v1 = vld [vmem:[#allocation6 + $0x520] ss:$16 sps:$4 sm:$0xff]   ;;  %v6516_v2 = vld [vmem:[#allocation6 + $0x528] ss:$16 sps:$4 sm:$0xff]   ;;  %v6524_v3 = vld [vmem:[#allocation6 + $0x544] ss:$16 sps:$4 sm:$0xff]  }
 0x104   : > { %2194 = vmatprep.mubr.bf16.mxu0 %v6429_v4  ;;  %2646 = vmatprep.mubr.bf16.mxu1 %v6429_v4  ;;  %v6527_v4 = vld [vmem:[#allocation6 + $0x54c] ss:$16 sps:$4 sm:$0xff]  }
 0x106   : > { %2232 = vmatpush1.bf16.msra.mxu0 %v6423_v5  ;;  %2684 = vmatpush1.bf16.msra.mxu1 %v6426_v6  ;;  %v6521_v5 = vld [vmem:[%s7188_s17 + $0x120] ss:$28 sps:$4 sm:$0xff]  }
 0x107   : > { %2233 = vmatprep.subr.bf16.mxu0 %v6434_v7  ;;  %2685 = vmatprep.subr.bf16.mxu1 %v6437_v8  ;;  %v6522_v6 = vld [vmem:[#allocation6 + $0x540] ss:$16 sps:$4 sm:$0xff]   ;;  %v6525_v7 = vld [vmem:[#allocation6 + $0x548] ss:$16 sps:$4 sm:$0xff]   ;;  %v6530_v8 = vld [vmem:[#allocation6 + $0x564] ss:$16 sps:$4 sm:$0xff]  }
 0x109   : > { %2195 = vmatmul.mubr.bf16.gmra.mrb[28].mxu0 %v6431_v9  ;;  %2647 = vmatmul.mubr.bf16.gmra.mrb[28].mxu1 %v6431_v9  ;;  %v6533_v9 = vld [vmem:[#allocation6 + $0x56c] ss:$16 sps:$4 sm:$0xff]  }
 0x10a   : > { %2234 = vmatpush1.bf16.msra.mxu0 %v6432_v10  ;;  %2686 = vmatpush1.bf16.msra.mxu1 %v6435_v11  ;;  %v6534_v10 = vld [vmem:[%s7188_s17 + $0x15c] ss:$28 sps:$4 sm:$0xff]   ;;  %v6528_v11 = vld [vmem:[#allocation6 + $0x560] ss:$16 sps:$4 sm:$0xff]  }
 0x10b   : > { %2235 = vmatprep.subr.bf16.mxu0 %v6440_v12  ;;  %2687 = vmatprep.subr.bf16.mxu1 %v6443_v13  ;;  %v6531_v12 = vld [vmem:[#allocation6 + $0x568] ss:$16 sps:$4 sm:$0xff]   ;;  %v6539_v13 = vld [vmem:[#allocation6 + $0x584] ss:$16 sps:$4 sm:$0xff]  }
 0x10c   : > { %2237 = vmatprep.mubr.bf16.mxu0 %v6446_v14  ;;  %2689 = vmatprep.mubr.bf16.mxu1 %v6446_v14  ;;  %v6542_v14 = vld [vmem:[#allocation6 + $0x58c] ss:$16 sps:$4 sm:$0xff]  }
 0x10e   : > { %2236 = vmatpush1.bf16.msra.mxu0 %v6438_v15  ;;  %2688 = vmatpush1.bf16.msra.mxu1 %v6441_v16  ;;  %v6536_v15 = vld [vmem:[%s7188_s17 + $0x158] ss:$28 sps:$4 sm:$0xff]   ;;  %v6537_v16 = vld [vmem:[#allocation6 + $0x580] ss:$16 sps:$4 sm:$0xff]  }
 0x10f   : > { %2318 = vmatprep.subr.bf16.mxu0 %v6449_v17  ;;  %2770 = vmatprep.subr.bf16.mxu1 %v6452_v18  ;;  %v6540_v17 = vld [vmem:[#allocation6 + $0x588] ss:$16 sps:$4 sm:$0xff]   ;;  %v6545_v18 = vld [vmem:[#allocation6 + $0x5a4] ss:$16 sps:$4 sm:$0xff]  }
 0x111   : > { %2238 = vmatmul.mubr.bf16.vlgmr.msra.gmra.mrb[0].mxu0 %v6444_v19  ;;  %2690 = vmatmul.mubr.bf16.vlgmr.msra.gmra.mrb[0].mxu1 %v6444_v19  ;;  %v6548_v19 = vld [vmem:[#allocation6 + $0x5ac] ss:$16 sps:$4 sm:$0xff]  }
 0x112   : > { %2319 = vmatpush1.bf16.msra.mxu0 %v6447_v20  ;;  %2771 = vmatpush1.bf16.msra.mxu1 %v6450_v21  ;;  %v6549_v20 = vld [vmem:[%s7188_s17 + $0x194] ss:$28 sps:$4 sm:$0xff]  }
 0x113   : > { %2320 = vmatprep.subr.bf16.mxu0 %v6455_v22  ;;  %2772 = vmatprep.subr.bf16.mxu1 %v6458_v23  ;;  %v6543_v21 = vld [vmem:[#allocation6 + $0x5a0] ss:$16 sps:$4 sm:$0xff]   ;;  %v6546_v22 = vld [vmem:[#allocation6 + $0x5a8] ss:$16 sps:$4 sm:$0xff]   ;;  %v6554_v23 = vld [vmem:[#allocation6 + $0x5c4] ss:$16 sps:$4 sm:$0xff]  }
 0x114   : > { %2247 = vmatprep.mubr.bf16.mxu0 %v6459_v24  ;;  %2699 = vmatprep.mubr.bf16.mxu1 %v6459_v24  ;;  %v6551_v24 = vld [vmem:[%s7188_s17 + $0x190] ss:$28 sps:$4 sm:$0xff]  }
 0x116   : > { %2321 = vmatpush1.bf16.msra.mxu0 %v6453_v25  ;;  %2773 = vmatpush1.bf16.msra.mxu1 %v6456_v26  ;;  %v6557_v25 = vld [vmem:[#allocation6 + $0x5cc] ss:$16 sps:$4 sm:$0xff]   ;;  %v6552_v26 = vld [vmem:[#allocation6 + $0x5c0] ss:$16 sps:$4 sm:$0xff]  }
 0x117   : > { %2322 = vmatprep.subr.bf16.mxu0 %v6464_v27  ;;  %2774 = vmatprep.subr.bf16.mxu1 %v6467_v28  ;;  %v6555_v27 = vld [vmem:[#allocation6 + $0x5c8] ss:$16 sps:$4 sm:$0xff]   ;;  %v6560_v28 = vld [vmem:[#allocation6 + $0x5e4] ss:$16 sps:$4 sm:$0xff]  }
 0x119   : > { %2248 = vmatmul.mubr.bf16.gmra.mrb[4].mxu0 %v6461_v29  ;;  %2700 = vmatmul.mubr.bf16.gmra.mrb[4].mxu1 %v6461_v29  ;;  %v6563_v29 = vld [vmem:[#allocation6 + $0x5ec] ss:$16 sps:$4 sm:$0xff]  }
 0x11a   : > { %2323 = vmatpush1.bf16.msra.mxu0 %v6462_v30  ;;  %2775 = vmatpush1.bf16.msra.mxu1 %v6465_v31  ;;  %v6566_v30 = vld [vmem:[%s7188_s17 + $0x14] ss:$28 sps:$4 sm:$0xff]  }
 0x11b   : > { %2324 = vmatprep.subr.bf16.mxu0 %v6470_v32  ;;  %2776 = vmatprep.subr.bf16.mxu1 %v6473_v33  ;;  %v6558_v31 = vld [vmem:[#allocation6 + $0x5e0] ss:$16 sps:$4 sm:$0xff]   ;;  %v6561_v32 = vld [vmem:[#allocation6 + $0x5e8] ss:$16 sps:$4 sm:$0xff]   ;;  %v6569_v33 = vld [vmem:[#allocation6 + $0x604] ss:$16 sps:$4 sm:$0xff]  }
 0x11c   : > { %2257 = vmatprep.mubr.bf16.mxu0 %v6474_v34  ;;  %2709 = vmatprep.mubr.bf16.mxu1 %v6474_v34  ;;  %v6596_v34 = vld [vmem:[#allocation6 + $0x60c] ss:$16 sps:$4 sm:$0xff]  }
 0x11e   : > { %2325 = vmatpush1.bf16.msra.mxu0 %v6468_v35  ;;  %2777 = vmatpush1.bf16.msra.mxu1 %v6471_v36  ;;  %v6564_v35 = vld [vmem:[%s7188_s17 + $0x10] ss:$28 sps:$4 sm:$0xff]  }
 0x11f   : > { %2326 = vmatprep.subr.bf16.mxu0 %v6479_v37  ;;  %2778 = vmatprep.subr.bf16.mxu1 %v6482_v38  ;;  %v6567_v36 = vld [vmem:[#allocation6 + $0x600] ss:$16 sps:$4 sm:$0xff]   ;;  %v6570_v37 = vld [vmem:[%s7188_s17 + $0x4c] ss:$28 sps:$4 sm:$0xff]   ;;  %v6575_v38 = vld [vmem:[#allocation6 + $0x624] ss:$16 sps:$4 sm:$0xff]  }
 0x121   : > { %2258 = vmatmul.mubr.bf16.gmra.mrb[8].mxu0 %v6476_v39  ;;  %2710 = vmatmul.mubr.bf16.gmra.mrb[8].mxu1 %v6476_v39  ;;  %v6594_v39 = vld [vmem:[#allocation6 + $0x608] ss:$16 sps:$4 sm:$0xff]  }
 0x122   : > { %2327 = vmatpush1.bf16.msra.mxu0 %v6477_v40  ;;  %2779 = vmatpush1.bf16.msra.mxu1 %v6480_v41  ;;  %v6599_v40 = vld [vmem:[#allocation6 + $0x62c] ss:$16 sps:$4 sm:$0xff]   ;;  %v6573_v41 = vld [vmem:[#allocation6 + $0x620] ss:$16 sps:$4 sm:$0xff]  }
 0x123   : > { %2328 = vmatprep.subr.bf16.mxu0 %v6485_v42  ;;  %2780 = vmatprep.subr.bf16.mxu1 %v6488_v43  ;;  %v6581_v42 = vld [vmem:[#allocation6 + $0x644] ss:$16 sps:$4 sm:$0xff]   ;;  %v6597_v43 = vld [vmem:[#allocation6 + $0x628] ss:$16 sps:$4 sm:$0xff]  }
 0x124   : > { %2267 = vmatprep.mubr.bf16.mxu0 %v6489_v44  ;;  %2719 = vmatprep.mubr.bf16.mxu1 %v6489_v44  ;;  %v6572_v44 = vld [vmem:[%s7188_s17 + $0x48] ss:$28 sps:$4 sm:$0xff]  }
 0x126   : > { %2329 = vmatpush1.bf16.msra.mxu0 %v6483_v45  ;;  %2781 = vmatpush1.bf16.msra.mxu1 %v6486_v46  ;;  %v6576_v45 = vld [vmem:[%s7188_s17 + $0x84] ss:$28 sps:$4 sm:$0xff]  }
 0x127   : > { %2330 = vmatprep.subr.bf16.mxu0 %v6494_v47  ;;  %2782 = vmatprep.subr.bf16.mxu1 %v6497_v48  ;;  %v6579_v46 = vld [vmem:[#allocation6 + $0x640] ss:$16 sps:$4 sm:$0xff]   ;;  %v6608_v47 = vld [vmem:[#allocation6 + $0x64c] ss:$16 sps:$4 sm:$0xff]   ;;  %v6587_v48 = vld [vmem:[#allocation6 + $0x664] ss:$16 sps:$4 sm:$0xff]  }
 0x129   : > { %2268 = vmatmul.mubr.bf16.gmra.mrb[12].mxu0 %v6491_v49  ;;  %2720 = vmatmul.mubr.bf16.gmra.mrb[12].mxu1 %v6491_v49  ;;  %v6606_v49 = vld [vmem:[#allocation6 + $0x648] ss:$16 sps:$4 sm:$0xff]  }
 0x12a   : > { %2331 = vmatpush1.bf16.msra.mxu0 %v6492_v50  ;;  %2783 = vmatpush1.bf16.msra.mxu1 %v6495_v51  ;;  %v6611_v50 = vld [vmem:[#allocation6 + $0x66c] ss:$16 sps:$4 sm:$0xff]   ;;  %v6585_v51 = vld [vmem:[#allocation6 + $0x660] ss:$16 sps:$4 sm:$0xff]  }
 0x12b   : > { %2332 = vmatprep.subr.bf16.mxu0 %v6500_v52  ;;  %2784 = vmatprep.subr.bf16.mxu1 %v6503_v53  ;;  %v6593_v52 = vld [vmem:[#allocation6 + $0x684] ss:$16 sps:$4 sm:$0xff]   ;;  %v6609_v53 = vld [vmem:[#allocation6 + $0x668] ss:$16 sps:$4 sm:$0xff]  }
 0x12c   : > { %2277 = vmatprep.mubr.bf16.mxu0 %v6504_v54  ;;  %2729 = vmatprep.mubr.bf16.mxu1 %v6504_v54  ;;  %v6578_v54 = vld [vmem:[%s7188_s17 + $0x80] ss:$28 sps:$4 sm:$0xff]  }
 0x12e   : > { %2333 = vmatpush1.bf16.msra.mxu0 %v6498_v55  ;;  %2785 = vmatpush1.bf16.msra.mxu1 %v6501_v56  ;;  %v6582_v55 = vld [vmem:[%s7188_s17 + $0xbc] ss:$28 sps:$4 sm:$0xff]   ;;  %v6591_v56 = vld [vmem:[#allocation6 + $0x680] ss:$16 sps:$4 sm:$0xff]  }
 0x12f   : > { %2334 = vmatprep.subr.bf16.mxu0 %v6509_v57  ;;  %2786 = vmatprep.subr.bf16.mxu1 %v6512_v58  ;;  %v6620_v57 = vld [vmem:[#allocation6 + $0x68c] ss:$16 sps:$4 sm:$0xff]   ;;  %v6605_v58 = vld [vmem:[#allocation6 + $0x6a4] ss:$16 sps:$4 sm:$0xff]  }
 0x131   : > { %2278 = vmatmul.mubr.bf16.gmra.mrb[16].mxu0 %v6506_v59  ;;  %2730 = vmatmul.mubr.bf16.gmra.mrb[16].mxu1 %v6506_v59  ;;  %v6618_v59 = vld [vmem:[#allocation6 + $0x688] ss:$16 sps:$4 sm:$0xff]  }
 0x132   : > { %2335 = vmatpush1.bf16.msra.mxu0 %v6507_v60  ;;  %2787 = vmatpush1.bf16.msra.mxu1 %v6510_v61  ;;  %v6623_v60 = vld [vmem:[#allocation6 + $0x6ac] ss:$16 sps:$4 sm:$0xff]   ;;  %v6603_v61 = vld [vmem:[#allocation6 + $0x6a0] ss:$16 sps:$4 sm:$0xff]  }
 0x133   : > { %2336 = vmatprep.subr.bf16.mxu0 %v6515_v62  ;;  %2788 = vmatprep.subr.bf16.mxu1 %v6518_v63  ;;  %v6617_v62 = vld [vmem:[#allocation6 + $0x6c4] ss:$16 sps:$4 sm:$0xff]   ;;  %v6621_v63 = vld [vmem:[#allocation6 + $0x6a8] ss:$16 sps:$4 sm:$0xff]  }
 0x134   : > { %2287 = vmatprep.mubr.bf16.mxu0 %v6519_v0  ;;  %2739 = vmatprep.mubr.bf16.mxu1 %v6519_v0  ;;  %v6584_v0 = vld [vmem:[%s7188_s17 + $0xb8] ss:$28 sps:$4 sm:$0xff]  }
 0x136   : > { %2337 = vmatpush1.bf16.msra.mxu0 %v6513_v1  ;;  %2789 = vmatpush1.bf16.msra.mxu1 %v6516_v2  ;;  %v6588_v1 = vld [vmem:[%s7188_s17 + $0xf4] ss:$28 sps:$4 sm:$0xff]  }
 0x137   : > { %2338 = vmatprep.subr.bf16.mxu0 %v6524_v3  ;;  %2790 = vmatprep.subr.bf16.mxu1 %v6527_v4  ;;  %v6615_v2 = vld [vmem:[#allocation6 + $0x6c0] ss:$16 sps:$4 sm:$0xff]   ;;  %v6632_v3 = vld [vmem:[#allocation6 + $0x6cc] ss:$16 sps:$4 sm:$0xff]   ;;  %v6629_v4 = vld [vmem:[#allocation6 + $0x6e4] ss:$16 sps:$4 sm:$0xff]  }
 0x139   : > { %2288 = vmatmul.mubr.bf16.gmra.mrb[20].mxu0 %v6521_v5  ;;  %2740 = vmatmul.mubr.bf16.gmra.mrb[20].mxu1 %v6521_v5  ;;  %v6630_v5 = vld [vmem:[#allocation6 + $0x6c8] ss:$16 sps:$4 sm:$0xff]  }
 0x13a   : > { %2339 = vmatpush1.bf16.msra.mxu0 %v6522_v6  ;;  %2791 = vmatpush1.bf16.msra.mxu1 %v6525_v7  ;;  %v6635_v6 = vld [vmem:[#allocation6 + $0x6ec] ss:$16 sps:$4 sm:$0xff]  }
 0x13b   : > { %2340 = vmatprep.subr.bf16.mxu0 %v6530_v8  ;;  %2792 = vmatprep.subr.bf16.mxu1 %v6533_v9  ;;  %v3222_v7 = vld [vmem:[#allocation8 + $0x8] sm:$0xff]  ;;  %v6627_v9 = vld [vmem:[#allocation6 + $0x6e0] ss:$16 sps:$4 sm:$0xff]  }
 0x13c   : > { %2297 = vmatprep.mubr.bf16.mxu0 %v6534_v10  ;;  %2749 = vmatprep.mubr.bf16.mxu1 %v6534_v10  ;;  %v3226_v8 = vld [vmem:[#allocation8 + $0x28] sm:$0xff] }
 0x13d   : > { %v6633_v10 = vld [vmem:[#allocation6 + $0x6e8] ss:$16 sps:$4 sm:$0xff]  }
 0x13e   : > { %2341 = vmatpush1.bf16.msra.mxu0 %v6528_v11  ;;  %2793 = vmatpush1.bf16.msra.mxu1 %v6531_v12  ;;  %v5497_v11 = vpack.c.bf16 %v3226_v8, %v3222_v7  ;;  %v3224_v12 = vld [vmem:[#allocation8 + $0x18] sm:$0xff]  ;;  %v3253_v8 = vld [vmem:[#allocation8 + $0x100] sm:$0xff] }
 0x13f   : > { %2342 = vmatprep.subr.bf16.mxu0 %v6539_v13  ;;  %2794 = vmatprep.subr.bf16.mxu1 %v6542_v14  ;;  %v3228_v13 = vld [vmem:[#allocation8 + $0x38] sm:$0xff]  ;;  %v6590_v14 = vld [vmem:[%s7188_s17 + $0xf0] ss:$28 sps:$4 sm:$0xff]  }
 0x141   : > { %2298 = vmatmul.mubr.bf16.gmra.mrb[24].mxu0 %v6536_v15  ;;  %2750 = vmatmul.mubr.bf16.gmra.mrb[24].mxu1 %v6536_v15  ;;  %v6600_v15 = vld [vmem:[%s7188_s17 + $0x12c] ss:$28 sps:$4 sm:$0xff]  }
 0x142   : > { %2343 = vmatpush1.bf16.msra.mxu0 %v6537_v16  ;;  %2795 = vmatpush1.bf16.msra.mxu1 %v6540_v17  ;;  %v5625_v16 = vpack.c.bf16 %v3228_v13, %v3224_v12  ;;  %v6602_v17 = vld [vmem:[%s7188_s17 + $0x128] ss:$28 sps:$4 sm:$0xff]   ;;  %v3255_v12 = vld [vmem:[#allocation8 + $0x110] sm:$0xff] }
 0x143   : > { %2344 = vmatprep.subr.bf16.mxu0 %v6545_v18  ;;  %2796 = vmatprep.subr.bf16.mxu1 %v6548_v19  ;;  %v6612_v18 = vld [vmem:[%s7188_s17 + $0x164] ss:$28 sps:$4 sm:$0xff]   ;;  %v3259_v13 = vld [vmem:[#allocation8 + $0x130] sm:$0xff] }
 0x144   : > { %2307 = vmatprep.mubr.bf16.mxu0 %v6549_v20  ;;  %2759 = vmatprep.mubr.bf16.mxu1 %v6549_v20  ;;  %v6614_v19 = vld [vmem:[%s7188_s17 + $0x160] ss:$28 sps:$4 sm:$0xff]  }
 0x145   : > { %v6624_v20 = vld [vmem:[%s7188_s17 + $0x19c] ss:$28 sps:$4 sm:$0xff]  }
 0x146   : > { %2345 = vmatpush1.bf16.msra.mxu0 %v6543_v21  ;;  %2797 = vmatpush1.bf16.msra.mxu1 %v6546_v22  ;;  %v6626_v21 = vld [vmem:[%s7188_s17 + $0x198] ss:$28 sps:$4 sm:$0xff]   ;;  %v6942_v22 = vmov 0  }
 0x147   : > { %2346 = vmatprep.subr.bf16.mxu0 %v6554_v23  ;;  %2798 = vmatprep.subr.bf16.mxu1 %v6557_v25  ;;  %v6636_v23 = vld [vmem:[%s7188_s17 + $0x18] ss:$28 sps:$4 sm:$0xff]   ;;  %v3225_v25 = vld [vmem:[#allocation8 + $0x20] sm:$0xff] }
 0x149   : > { %2308 = vmatmul.mubr.bf16.gmra.mrb[28].mxu0 %v6551_v24  ;;  %2760 = vmatmul.mubr.bf16.gmra.mrb[28].mxu1 %v6551_v24  ;;  %v3221_v24 = vld [vmem:[#allocation8] sm:$0xff] }
 0x14a   : > { %2347 = vmatpush1.bf16.msra.mxu0 %v6552_v26  ;;  %2799 = vmatpush1.bf16.msra.mxu1 %v6555_v27  ;;  %v3223_v26 = vld [vmem:[#allocation8 + $0x10] sm:$0xff] }
 0x14b   : > { %2348 = vmatprep.subr.bf16.mxu0 %v6560_v28  ;;  %2800 = vmatprep.subr.bf16.mxu1 %v6563_v29  ;;  %v3227_v27 = vld [vmem:[#allocation8 + $0x30] sm:$0xff]  ;;  %v3230_v28 = vld [vmem:[#allocation8 + $0x48] sm:$0xff] }
 0x14c   : > { %2350 = vmatprep.mubr.bf16.mxu0 %v6566_v30  ;;  %2802 = vmatprep.mubr.bf16.mxu1 %v6566_v30  ;;  %v3234_v29 = vld [vmem:[#allocation8 + $0x68] sm:$0xff]  ;;  %v3232_v30 = vld [vmem:[#allocation8 + $0x58] sm:$0xff] }
 0x14e   : > { %2349 = vmatpush1.bf16.msra.mxu0 %v6558_v31  ;;  %2801 = vmatpush1.bf16.msra.mxu1 %v6561_v32  ;;  %v3236_v31 = vld [vmem:[#allocation8 + $0x78] sm:$0xff]  ;;  %v5499_v32 = vpack.c.bf16 %v3225_v25, %v3221_v24  ;;  %v3263_v25 = vld [vmem:[#allocation8 + $0x150] sm:$0xff] }
 0x14f   : > { %2431 = vmatprep.subr.bf16.mxu0 %v6569_v33  ;;  %2883 = vmatprep.subr.bf16.mxu1 %v6596_v34  ;;  %v5627_v33 = vpack.c.bf16 %v3227_v27, %v3223_v26  ;;  %v3229_v34 = vld [vmem:[#allocation8 + $0x40] sm:$0xff]  ;;  %v3267_v26 = vld [vmem:[#allocation8 + $0x170] sm:$0xff]  ;;  %v3270_v27 = vld [vmem:[#allocation8 + $0x188] sm:$0xff] }
 0x151   : > { %2351 = vmatmul.mubr.bf16.vlgmr.msra.gmra.mrb[0].mxu0 %v6564_v35  ;;  %2803 = vmatmul.mubr.bf16.vlgmr.msra.gmra.mrb[0].mxu1 %v6564_v35  ;;  %v3233_v35 = vld [vmem:[#allocation8 + $0x60] sm:$0xff] }
 0x152   : > { %2432 = vmatpush1.bf16.msra.mxu0 %v6567_v36  ;;  %2360 = vmatprep.mubr.bf16.mxu0 %v6570_v37  ;;  %v5501_v36 = vpack.c.bf16 %v3234_v29, %v3230_v28  ;;  %v3274_v28 = vld [vmem:[#allocation8 + $0x1a8] sm:$0xff]  ;;  %v3272_v29 = vld [vmem:[#allocation8 + $0x198] sm:$0xff] }
 0x153   : > { %2812 = vmatprep.mubr.bf16.mxu1 %v6570_v37  ;;  %2433 = vmatprep.subr.bf16.mxu0 %v6575_v38  ;;  %v5629_v37 = vpack.c.bf16 %v3236_v31, %v3232_v30  ;;  %v3231_v38 = vld [vmem:[#allocation8 + $0x50] sm:$0xff]  ;;  %v3276_v30 = vld [vmem:[#allocation8 + $0x1b8] sm:$0xff] }
 0x154   : > { %2884 = vmatpush1.bf16.msra.mxu1 %v6594_v39  ;;  %v3235_v39 = vld [vmem:[#allocation8 + $0x70] sm:$0xff]  ;;  %v6639_v31 = vld [vmem:[%s7188_s17 + $0xc0] ss:$28 sps:$4 sm:$0xff]  }
 0x155   : > { %2885 = vmatprep.subr.bf16.mxu1 %v6599_v40  ;;  %v3238_v40 = vld [vmem:[#allocation8 + $0x88] sm:$0xff] }
 0x156   : > { %2434 = vmatpush1.bf16.msra.mxu0 %v6573_v41  ;;  %v3242_v41 = vld [vmem:[#allocation8 + $0xa8] sm:$0xff] }
 0x157   : > { %2435 = vmatprep.subr.bf16.mxu0 %v6581_v42  ;;  %v3240_v42 = vld [vmem:[#allocation8 + $0x98] sm:$0xff] }
 0x158   : > { %2886 = vmatpush1.bf16.msra.mxu1 %v6597_v43  ;;  %v3244_v43 = vld [vmem:[#allocation8 + $0xb8] sm:$0xff] }
 0x159   : > { %2361 = vmatmul.mubr.bf16.gmra.mrb[4].mxu0 %v6572_v44  ;;  %2813 = vmatmul.mubr.bf16.gmra.mrb[4].mxu1 %v6572_v44  ;;  %v6637_v44 = vld [vmem:[%s7188_s17 + $0x50] ss:$28 sps:$4 sm:$0xff]  }
 0x15a   : > { %2370 = vmatprep.mubr.bf16.mxu0 %v6576_v45  ;;  %2822 = vmatprep.mubr.bf16.mxu1 %v6576_v45  ;;  %v5503_v45 = vpack.c.bf16 %v3233_v35, %v3229_v34  ;;  %v3269_v34 = vld [vmem:[#allocation8 + $0x180] sm:$0xff] }
 0x15b   : > { %2436 = vmatpush1.bf16.msra.mxu0 %v6579_v46  ;;  %2887 = vmatprep.subr.bf16.mxu1 %v6608_v47  ;;  %v5631_v46 = vpack.c.bf16 %v3235_v39, %v3231_v38  ;;  %v3237_v47 = vld [vmem:[#allocation8 + $0x80] sm:$0xff]  ;;  %v3271_v38 = vld [vmem:[#allocation8 + $0x190] sm:$0xff] }
 0x15c   : > { %2437 = vmatprep.subr.bf16.mxu0 %v6587_v48  ;;  %2888 = vmatpush1.bf16.msra.mxu1 %v6606_v49  ;;  %v3241_v48 = vld [vmem:[#allocation8 + $0xa0] sm:$0xff]  ;;  %v5505_v49 = vpack.c.bf16 %v3242_v41, %v3238_v40  ;;  %v3275_v39 = vld [vmem:[#allocation8 + $0x1b0] sm:$0xff]  ;;  %v3278_v40 = vld [vmem:[#allocation8 + $0x1c8] sm:$0xff] }
 0x15d   : > { %2889 = vmatprep.subr.bf16.mxu1 %v6611_v50  ;;  %v5633_v50 = vpack.c.bf16 %v3244_v43, %v3240_v42  ;;  %v3273_v35 = vld [vmem:[#allocation8 + $0x1a0] sm:$0xff]  ;;  %v3282_v41 = vld [vmem:[#allocation8 + $0x1e8] sm:$0xff]  ;;  %v3280_v42 = vld [vmem:[#allocation8 + $0x1d8] sm:$0xff] }
 0x15e   : > { %v3284_v43 = vld [vmem:[#allocation8 + $0x1f8] sm:$0xff] }
 0x15f   : > { %2438 = vmatpush1.bf16.msra.mxu0 %v6585_v51  ;;  %v3239_v51 = vld [vmem:[#allocation8 + $0x90] sm:$0xff] }
 0x160   : > { %2439 = vmatprep.subr.bf16.mxu0 %v6593_v52  ;;  %2890 = vmatpush1.bf16.msra.mxu1 %v6609_v53  ;;  %v3243_v52 = vld [vmem:[#allocation8 + $0xb0] sm:$0xff]  ;;  %v3246_v53 = vld [vmem:[#allocation8 + $0xc8] sm:$0xff] }
 0x161   : > { %2371 = vmatmul.mubr.bf16.gmra.mrb[8].mxu0 %v6578_v54  ;;  %2823 = vmatmul.mubr.bf16.gmra.mrb[8].mxu1 %v6578_v54  ;;  %v3250_v54 = vld [vmem:[#allocation8 + $0xe8] sm:$0xff] }
 0x162   : > { %2380 = vmatprep.mubr.bf16.mxu0 %v6582_v55  ;;  %2832 = vmatprep.mubr.bf16.mxu1 %v6582_v55  ;;  %v3248_v55 = vld [vmem:[#allocation8 + $0xd8] sm:$0xff] }
 0x163   : > { %2440 = vmatpush1.bf16.msra.mxu0 %v6591_v56  ;;  %2891 = vmatprep.subr.bf16.mxu1 %v6620_v57  ;;  %v3252_v56 = vld [vmem:[#allocation8 + $0xf8] sm:$0xff]  ;;  %v5507_v57 = vpack.c.bf16 %v3241_v48, %v3237_v47  ;;  %v3281_v47 = vld [vmem:[#allocation8 + $0x1e0] sm:$0xff]  ;;  %v5525_v48 = vpack.c.bf16 %v3282_v41, %v3278_v40  ;;  %v3322_v40 = vld [vmem:[#allocation8 + $0x328] sm:$0xff] }
 0x164   : > { %2441 = vmatprep.subr.bf16.mxu0 %v6605_v58  ;;  %2892 = vmatpush1.bf16.msra.mxu1 %v6618_v59  ;;  %v5635_v58 = vpack.c.bf16 %v3243_v52, %v3239_v51  ;;  %v3245_v59 = vld [vmem:[#allocation8 + $0xc0] sm:$0xff]  ;;  %v3283_v51 = vld [vmem:[#allocation8 + $0x1f0] sm:$0xff]  ;;  %v3286_v52 = vld [vmem:[#allocation8 + $0x208] sm:$0xff] }
 0x165   : > { %2893 = vmatprep.subr.bf16.mxu1 %v6623_v60  ;;  %v3249_v60 = vld [vmem:[#allocation8 + $0xe0] sm:$0xff]  ;;  %v3320_v41 = vld [vmem:[#allocation8 + $0x318] sm:$0xff] }
 0x167   : > { %2442 = vmatpush1.bf16.msra.mxu0 %v6603_v61  ;;  %v5509_v61 = vpack.c.bf16 %v3250_v54, %v3246_v53  ;;  %v3290_v53 = vld [vmem:[#allocation8 + $0x228] sm:$0xff]  ;;  %v3288_v54 = vld [vmem:[#allocation8 + $0x218] sm:$0xff] }
 0x168   : > { %2443 = vmatprep.subr.bf16.mxu0 %v6617_v62  ;;  %2894 = vmatpush1.bf16.msra.mxu1 %v6621_v63  ;;  %v5637_v62 = vpack.c.bf16 %v3252_v56, %v3248_v55  ;;  %v3247_v63 = vld [vmem:[#allocation8 + $0xd0] sm:$0xff]  ;;  %v3292_v55 = vld [vmem:[#allocation8 + $0x238] sm:$0xff] }
 0x169   : > { %2381 = vmatmul.mubr.bf16.gmra.mrb[12].mxu0 %v6584_v0  ;;  %2833 = vmatmul.mubr.bf16.gmra.mrb[12].mxu1 %v6584_v0  ;;  %v3251_v0 = vld [vmem:[#allocation8 + $0xf0] sm:$0xff] }
 0x16a   : > { %2390 = vmatprep.mubr.bf16.mxu0 %v6588_v1  ;;  %2842 = vmatprep.mubr.bf16.mxu1 %v6588_v1  ;;  %v3254_v1 = vld [vmem:[#allocation8 + $0x108] sm:$0xff]  ;;  %v5639_v7 = vpack.c.bf16 %v3251_v0, %v3247_v63  ;;  %v6640_v56 = vld [vmem:[%s7188_s17 + $0xf8] ss:$28 sps:$4 sm:$0xff]  }
 0x16b   : > { %2444 = vmatpush1.bf16.msra.mxu0 %v6615_v2  ;;  %2895 = vmatprep.subr.bf16.mxu1 %v6632_v3  ;;  %v3258_v2 = vld [vmem:[#allocation8 + $0x128] sm:$0xff]  ;;  %v3256_v3 = vld [vmem:[#allocation8 + $0x118] sm:$0xff]  ;;  %v3287_v63 = vld [vmem:[#allocation8 + $0x210] sm:$0xff] }
 0x16c   : > { %2445 = vmatprep.subr.bf16.mxu0 %v6629_v4  ;;  %2896 = vmatpush1.bf16.msra.mxu1 %v6630_v5  ;;  %v3260_v4 = vld [vmem:[#allocation8 + $0x138] sm:$0xff]  ;;  %v6638_v5 = vld [vmem:[%s7188_s17 + $0x88] ss:$28 sps:$4 sm:$0xff]   ;;  %v3291_v0 = vld [vmem:[#allocation8 + $0x230] sm:$0xff] }
 0x16d   : > { %2897 = vmatprep.subr.bf16.mxu1 %v6635_v6  ;;  %v5511_v6 = vpack.c.bf16 %v3249_v60, %v3245_v59  ;;  %v3285_v59 = vld [vmem:[#allocation8 + $0x200] sm:$0xff] }
 0x16e   : > { %v3289_v60 = vld [vmem:[#allocation8 + $0x220] sm:$0xff] }
 0x16f   : > { %2446 = vmatpush1.bf16.msra.mxu0 %v6627_v9  ;;  %v3257_v9 = vld [vmem:[#allocation8 + $0x120] sm:$0xff] }
 0x170   : > { %2898 = vmatpush1.bf16.msra.mxu1 %v6633_v10  ;;  %5498 = vmatprep.subr.bf16.mxu0 %v5497_v11  ;;  %v5513_v10 = vpack.c.bf16 %v3258_v2, %v3254_v1  ;;  %v5641_v11 = vpack.c.bf16 %v3260_v4, %v3256_v3  ;;  %v3294_v1 = vld [vmem:[#allocation8 + $0x248] sm:$0xff]  ;;  %v3296_v3 = vld [vmem:[#allocation8 + $0x258] sm:$0xff] }
 0x171   : > { %2391 = vmatmul.mubr.bf16.gmra.mrb[16].mxu0 %v6590_v14  ;;  %2843 = vmatmul.mubr.bf16.gmra.mrb[16].mxu1 %v6590_v14  ;;  %v3262_v14 = vld [vmem:[#allocation8 + $0x148] sm:$0xff]  ;;  %v3300_v4 = vld [vmem:[#allocation8 + $0x278] sm:$0xff] }
 0x172   : > { %2400 = vmatprep.mubr.bf16.mxu0 %v6600_v15  ;;  %2852 = vmatprep.mubr.bf16.mxu1 %v6600_v15  ;;  %v3266_v15 = vld [vmem:[#allocation8 + $0x168] sm:$0xff] }
 0x173   : > { %5626 = vmatprep.subr.bf16.mxu1 %v5625_v16  ;;  %v3264_v16 = vld [vmem:[#allocation8 + $0x158] sm:$0xff]  ;;  %v3298_v2 = vld [vmem:[#allocation8 + $0x268] sm:$0xff] }
 0x179   : > { %2401 = vmatmul.mubr.bf16.gmra.mrb[20].mxu0 %v6602_v17  ;;  %2853 = vmatmul.mubr.bf16.gmra.mrb[20].mxu1 %v6602_v17  ;;  %v3268_v17 = vld [vmem:[#allocation8 + $0x178] sm:$0xff] }
 0x17a   : > { %2410 = vmatprep.mubr.bf16.mxu0 %v6612_v18  ;;  %2862 = vmatprep.mubr.bf16.mxu1 %v6612_v18  ;;  %v5515_v18 = vpack.c.bf16 %v3257_v9, %v3253_v8  ;;  %v5645_v24 = vpack.c.bf16 %v3268_v17, %v3264_v16  ;;  %v3297_v8 = vld [vmem:[#allocation8 + $0x260] sm:$0xff]  ;;  %v5533_v9 = vpack.c.bf16 %v3298_v2, %v3294_v1  ;;  %v3308_v16 = vld [vmem:[#allocation8 + $0x2b8] sm:$0xff]  ;;  %v6641_v17 = vld [vmem:[%s7188_s17 + $0x130] ss:$28 sps:$4 sm:$0xff]  }
 0x17b   : > { %v3331_v1 = vld [vmem:[#allocation8 + $0x370] sm:$0xff] }
 0x181   : > { %2411 = vmatmul.mubr.bf16.gmra.mrb[24].mxu0 %v6614_v19  ;;  %2863 = vmatmul.mubr.bf16.gmra.mrb[24].mxu1 %v6614_v19  ;;  %v5643_v19 = vpack.c.bf16 %v3259_v13, %v3255_v12  ;;  %v3299_v12 = vld [vmem:[#allocation8 + $0x270] sm:$0xff]  ;;  %v3302_v13 = vld [vmem:[#allocation8 + $0x288] sm:$0xff] }
 0x182   : > { %2420 = vmatprep.mubr.bf16.mxu0 %v6624_v20  ;;  %2872 = vmatprep.mubr.bf16.mxu1 %v6624_v20  ;;  %v3261_v20 = vld [vmem:[#allocation8 + $0x140] sm:$0xff] }
 0x189   : > { %2421 = vmatmul.mubr.bf16.gmra.mrb[28].mxu0 %v6626_v21  ;;  %2873 = vmatmul.mubr.bf16.gmra.mrb[28].mxu1 %v6626_v21  ;;  %v3265_v21 = vld [vmem:[#allocation8 + $0x160] sm:$0xff] }
 0x18a   : > { %2463 = vmatprep.mubr.bf16.mxu0 %v6942_v22  ;;  %2915 = vmatprep.mubr.bf16.mxu1 %v6942_v22 }
 0x191   : > { %2464 = vmatmul.mubr.bf16.vlgmr.msra.gmra.mrb[0].mxu0 %v6636_v23  ;;  %2916 = vmatmul.mubr.bf16.vlgmr.msra.gmra.mrb[0].mxu1 %v6636_v23  ;;  %v5517_v23 = vpack.c.bf16 %v3266_v15, %v3262_v14  ;;  %v3306_v14 = vld [vmem:[#allocation8 + $0x2a8] sm:$0xff]  ;;  %v3304_v15 = vld [vmem:[#allocation8 + $0x298] sm:$0xff] }
 0x192   : > { %2473 = vmatprep.mubr.bf16.mxu0 %v6942_v22  ;;  %2925 = vmatprep.mubr.bf16.mxu1 %v6942_v22 }
 0x193   : > { %5500 = vmatpush1.bf16.msra.mxu0 %v5499_v32  ;;  %5628 = vmatpush1.bf16.msra.mxu1 %v5627_v33  ;;  %v5519_v32 = vpack.c.bf16 %v3265_v21, %v3261_v20  ;;  %v5647_v33 = vpack.c.bf16 %v3267_v26, %v3263_v25  ;;  %v3301_v20 = vld [vmem:[#allocation8 + $0x280] sm:$0xff]  ;;  %v3303_v25 = vld [vmem:[#allocation8 + $0x290] sm:$0xff] }
 0x194   : > { %5502 = vmatprep.subr.bf16.mxu0 %v5501_v36  ;;  %5630 = vmatprep.subr.bf16.mxu1 %v5629_v37  ;;  %v5521_v36 = vpack.c.bf16 %v3274_v28, %v3270_v27  ;;  %v5649_v37 = vpack.c.bf16 %v3276_v30, %v3272_v29  ;;  %v3305_v21 = vld [vmem:[#allocation8 + $0x2a0] sm:$0xff]  ;;  %v3307_v26 = vld [vmem:[#allocation8 + $0x2b0] sm:$0xff]  ;;  %v3310_v27 = vld [vmem:[#allocation8 + $0x2c8] sm:$0xff] }
 0x195   : > { %v3314_v28 = vld [vmem:[#allocation8 + $0x2e8] sm:$0xff]  ;;  %v3312_v29 = vld [vmem:[#allocation8 + $0x2d8] sm:$0xff] }
 0x196   : > { %v3316_v30 = vld [vmem:[#allocation8 + $0x2f8] sm:$0xff] }
 0x197   : > { %5504 = vmatpush1.bf16.msra.mxu0 %v5503_v45  ;;  %5632 = vmatpush1.bf16.msra.mxu1 %v5631_v46  ;;  %v5651_v45 = vpack.c.bf16 %v3275_v39, %v3271_v38  ;;  %v3277_v46 = vld [vmem:[#allocation8 + $0x1c0] sm:$0xff]  ;;  %v3315_v38 = vld [vmem:[#allocation8 + $0x2f0] sm:$0xff]  ;;  %v3318_v39 = vld [vmem:[#allocation8 + $0x308] sm:$0xff] }
 0x198   : > { %5506 = vmatprep.subr.bf16.mxu0 %v5505_v49  ;;  %5634 = vmatprep.subr.bf16.mxu1 %v5633_v50  ;;  %v5653_v49 = vpack.c.bf16 %v3284_v43, %v3280_v42  ;;  %v3279_v50 = vld [vmem:[#allocation8 + $0x1d0] sm:$0xff]  ;;  %v3324_v42 = vld [vmem:[#allocation8 + $0x338] sm:$0xff] }
 0x199   : > { %2474 = vmatmul.mubr.bf16.gmra.mrb[4].mxu0 %v6637_v44  ;;  %2926 = vmatmul.mubr.bf16.gmra.mrb[4].mxu1 %v6637_v44  ;;  %v5523_v44 = vpack.c.bf16 %v3273_v35, %v3269_v34  ;;  %v3313_v34 = vld [vmem:[#allocation8 + $0x2e0] sm:$0xff]  ;;  %v5541_v35 = vpack.c.bf16 %v3314_v28, %v3310_v27  ;;  %v3350_v27 = vld [vmem:[#allocation8 + $0x408] sm:$0xff] }
 0x19a   : > { %2483 = vmatprep.mubr.bf16.mxu0 %v6942_v22  ;;  %2935 = vmatprep.mubr.bf16.mxu1 %v6942_v22  ;;  %v3354_v28 = vld [vmem:[#allocation8 + $0x428] sm:$0xff] }
 0x19b   : > { %5508 = vmatpush1.bf16.msra.mxu0 %v5507_v57  ;;  %5636 = vmatpush1.bf16.msra.mxu1 %v5635_v58  ;;  %v5527_v57 = vpack.c.bf16 %v3281_v47, %v3277_v46  ;;  %v5655_v58 = vpack.c.bf16 %v3283_v51, %v3279_v50  ;;  %v5545_v46 = vpack.c.bf16 %v3322_v40, %v3318_v39  ;;  %v3323_v50 = vld [vmem:[#allocation8 + $0x330] sm:$0xff]  ;;  %v6642_v51 = vld [vmem:[%s7188_s17 + $0x168] ss:$28 sps:$4 sm:$0xff]  }
 0x19c   : > { %5510 = vmatprep.subr.bf16.mxu0 %v5509_v61  ;;  %5638 = vmatprep.subr.bf16.mxu1 %v5637_v62  ;;  %v5529_v61 = vpack.c.bf16 %v3290_v53, %v3286_v52  ;;  %v5657_v62 = vpack.c.bf16 %v3292_v55, %v3288_v54  ;;  %v5673_v47 = vpack.c.bf16 %v3324_v42, %v3320_v41  ;;  %v6643_v54 = vld [vmem:[%s7188_s17 + $0x1a0] ss:$28 sps:$4 sm:$0xff]   ;;  %v3326_v55 = vld [vmem:[#allocation8 + $0x348] sm:$0xff]  ;;  %v7289_v42 = vld [vmem:[#allocation8 + $0x410] sm:$0xff]  ;;  %s9056_s17 = scalar_lea.hbm %s9113_s8, %s5368_s15 }
 0x19d   : > { %v7285_v40 = vld [vmem:[#allocation8 + $0x400] sm:$0xff] }
 0x19e   : > { %v7287_v41 = vld [vmem:[#allocation8 + $0x420] sm:$0xff] }
 0x19f   : > { %5512 = vmatpush1.bf16.msra.mxu0 %v5511_v6  ;;  %5640 = vmatpush1.bf16.msra.mxu1 %v5639_v7  ;;  %v5659_v6 = vpack.c.bf16 %v3291_v0, %v3287_v63  ;;  %v3293_v7 = vld [vmem:[#allocation8 + $0x240] sm:$0xff]  ;;  %v3327_v0 = vld [vmem:[#allocation8 + $0x350] sm:$0xff] }
 0x1a0   : > { %5514 = vmatprep.subr.bf16.mxu0 %v5513_v10  ;;  %5642 = vmatprep.subr.bf16.mxu1 %v5641_v11  ;;  %v5661_v10 = vpack.c.bf16 %v3300_v4, %v3296_v3  ;;  %v3295_v11 = vld [vmem:[#allocation8 + $0x250] sm:$0xff]  ;;  %v5679_v2 = vpack.c.bf16 %v3331_v1, %v3327_v0  ;;  %v3338_v3 = vld [vmem:[#allocation8 + $0x3a8] sm:$0xff]  ;;  %v3336_v4 = vld [vmem:[#allocation8 + $0x398] sm:$0xff] }
 0x1a1   : > { %2484 = vmatmul.mubr.bf16.gmra.mrb[8].mxu0 %v6638_v5  ;;  %2936 = vmatmul.mubr.bf16.gmra.mrb[8].mxu1 %v6638_v5  ;;  %v5531_v5 = vpack.c.bf16 %v3289_v60, %v3285_v59  ;;  %v3332_v59 = vld [vmem:[#allocation8 + $0x378] sm:$0xff]  ;;  %v3325_v60 = vld [vmem:[#allocation8 + $0x340] sm:$0xff] }
 0x1a2   : > { %2493 = vmatprep.mubr.bf16.mxu0 %v6942_v22  ;;  %2945 = vmatprep.mubr.bf16.mxu1 %v6942_v22  ;;  %v7337_v1 = vld [vmem:[#allocation8 + $0x4c0] sm:$0xff] }
 0x1a3   : > { %5516 = vmatpush1.bf16.msra.mxu0 %v5515_v18  ;;  %5644 = vmatpush1.bf16.msra.mxu1 %v5643_v19  ;;  %v5535_v18 = vpack.c.bf16 %v3297_v8, %v3293_v7  ;;  %v5663_v19 = vpack.c.bf16 %v3299_v12, %v3295_v11  ;;  %v3333_v7 = vld [vmem:[#allocation8 + $0x380] sm:$0xff]  ;;  %v3335_v11 = vld [vmem:[#allocation8 + $0x390] sm:$0xff]  ;;  %9253 = vst [vmem:[#allocation27_spill] sm:$0xff] %v7337_v1 }
 0x1a4   : > { %5518 = vmatprep.subr.bf16.mxu0 %v5517_v23  ;;  %5646 = vmatprep.subr.bf16.mxu1 %v5645_v24  ;;  %v5537_v23 = vpack.c.bf16 %v3306_v14, %v3302_v13  ;;  %v5665_v24 = vpack.c.bf16 %v3308_v16, %v3304_v15  ;;  %v3337_v8 = vld [vmem:[#allocation8 + $0x3a0] sm:$0xff]  ;;  %v3339_v12 = vld [vmem:[#allocation8 + $0x3b0] sm:$0xff]  ;;  %v3342_v14 = vld [vmem:[#allocation8 + $0x3c8] sm:$0xff] }
 0x1a5   : > { %v5683_v13 = vpack.c.bf16 %v3339_v12, %v3335_v11  ;;  %v3346_v15 = vld [vmem:[#allocation8 + $0x3e8] sm:$0xff]  ;;  %v3344_v16 = vld [vmem:[#allocation8 + $0x3d8] sm:$0xff]  ;;  %v7368_v12 = vld [vmem:[#allocation8 + $0x500] sm:$0xff] }
 0x1a6   : > { %v7468_v1 = vld [vmem:[#allocation8 + $0x610] sm:$0xff] }
 0x1a7   : > { %5520 = vmatpush1.bf16.msra.mxu0 %v5519_v32  ;;  %5648 = vmatpush1.bf16.msra.mxu1 %v5647_v33  ;;  %v5667_v32 = vpack.c.bf16 %v3307_v26, %v3303_v25  ;;  %v3309_v33 = vld [vmem:[#allocation8 + $0x2c0] sm:$0xff]  ;;  %v3347_v25 = vld [vmem:[#allocation8 + $0x3f0] sm:$0xff]  ;;  %9287 = vst [vmem:[#allocation61_spill] sm:$0xff] %v7468_v1  ;;  %v7556_v1 = vld [vmem:[#allocation8 + $0x6e8] sm:$0xff] }
 0x1a8   : > { %5522 = vmatprep.subr.bf16.mxu0 %v5521_v36  ;;  %5650 = vmatprep.subr.bf16.mxu1 %v5649_v37  ;;  %v5669_v36 = vpack.c.bf16 %v3316_v30, %v3312_v29  ;;  %v3311_v37 = vld [vmem:[#allocation8 + $0x2d0] sm:$0xff]  ;;  %v5543_v43 = vpack.c.bf16 %v3313_v34, %v3309_v33  ;;  %v3352_v29 = vld [vmem:[#allocation8 + $0x418] sm:$0xff]  ;;  %v5561_v30 = vpack.c.bf16 %v3354_v28, %v3350_v27  ;;  %v664_v33 = vlaneseq }
 0x1a9   : > { %2494 = vmatmul.mubr.bf16.gmra.mrb[12].mxu0 %v6639_v31  ;;  %2946 = vmatmul.mubr.bf16.gmra.mrb[12].mxu1 %v6639_v31  ;;  %v5539_v31 = vpack.c.bf16 %v3305_v21, %v3301_v20  ;;  %v3345_v20 = vld [vmem:[#allocation8 + $0x3e0] sm:$0xff]  ;;  %v7396_v27 = vld [vmem:[#allocation8 + $0x550] sm:$0xff]  ;;  %9306 = vst [vmem:[#allocation80_spill] sm:$0xff] %v7556_v1 }
 0x1aa   : > { %2503 = vmatprep.mubr.bf16.mxu0 %v6942_v22  ;;  %2955 = vmatprep.mubr.bf16.mxu1 %v6942_v22  ;;  %v7274_v34 = vshrl.u32 %v664_v33, 7  ;;  %9266 = vst [vmem:[#allocation40_spill] sm:$0xff] %v7396_v27  ;;  %v7398_v28 = vld [vmem:[#allocation8 + $0x570] sm:$0xff]  ;;  %v7426_v33 = vld [vmem:[#allocation8 + $0x5e8] sm:$0xff] }
 0x1ab   : > { %5524 = vmatpush1.bf16.msra.mxu0 %v5523_v44  ;;  %5652 = vmatpush1.bf16.msra.mxu1 %v5651_v45  ;;  %v5671_v44 = vpack.c.bf16 %v3315_v38, %v3311_v37  ;;  %v3317_v45 = vld [vmem:[#allocation8 + $0x300] sm:$0xff]  ;;  %9274 = vst [vmem:[#allocation48_spill] sm:$0xff] %v7426_v33 }
 0x1ac   : > { %5526 = vmatprep.subr.bf16.mxu0 %v5525_v48  ;;  %5654 = vmatprep.subr.bf16.mxu1 %v5653_v49  ;;  %v3321_v48 = vld [vmem:[#allocation8 + $0x320] sm:$0xff]  ;;  %v3319_v49 = vld [vmem:[#allocation8 + $0x310] sm:$0xff]  ;;  %9242 = vst [vmem:[#allocation16_spill] sm:$0xff] %v7274_v34  ;;  %v9119_v37 = vsub.s32 2, %v7274_v34  ;;  %v9118_v38 = vsub.s32 1, %v7274_v34  ;;  %v9117_v39 = vsub.s32 3, %v7274_v34 }
 0x1ad   : > { %v5547_v52 = vpack.c.bf16 %v3321_v48, %v3317_v45  ;;  %v5675_v53 = vpack.c.bf16 %v3323_v50, %v3319_v49  ;;  %v7295_v45 = vld [vmem:[#allocation8 + $0x468] sm:$0xff]  ;;  %v7301_v48 = vld [vmem:[#allocation8 + $0x440] sm:$0xff]  ;;  %v7305_v50 = vld [vmem:[#allocation8 + $0x450] sm:$0xff] }
 0x1ae   : > { %v7303_v49 = vld [vmem:[#allocation8 + $0x460] sm:$0xff]  ;;  %9243 = vst [vmem:[#allocation17_spill] sm:$0xff] %v7305_v50  ;;  %v7446_v50 = vld [vmem:[#allocation8 + $0x5f0] sm:$0xff] }
 0x1af   : > { %5528 = vmatpush1.bf16.msra.mxu0 %v5527_v57  ;;  %5656 = vmatpush1.bf16.msra.mxu1 %v5655_v58  ;;  %v3328_v57 = vld [vmem:[#allocation8 + $0x358] sm:$0xff]  ;;  %9280 = vst [vmem:[#allocation54_spill] sm:$0xff] %v7446_v50 }
 0x1b0   : > { %5530 = vmatprep.subr.bf16.mxu0 %v5529_v61  ;;  %5658 = vmatprep.subr.bf16.mxu1 %v5657_v62  ;;  %v3329_v61 = vld [vmem:[#allocation8 + $0x360] sm:$0xff]  ;;  %v5677_v62 = vpack.c.bf16 %v3332_v59, %v3328_v57  ;;  %v7323_v59 = vld [vmem:[#allocation8 + $0x4b0] sm:$0xff] }
 0x1b1   : > { %2504 = vmatmul.mubr.bf16.gmra.mrb[16].mxu0 %v6640_v56  ;;  %2956 = vmatmul.mubr.bf16.gmra.mrb[16].mxu1 %v6640_v56  ;;  %v3330_v56 = vld [vmem:[#allocation8 + $0x368] sm:$0xff]  ;;  %v5551_v63 = vpack.c.bf16 %v3329_v61, %v3325_v60  ;;  %v7319_v57 = vld [vmem:[#allocation8 + $0x4a0] sm:$0xff] }
 0x1b2   : > { %2513 = vmatprep.mubr.bf16.mxu0 %v6942_v22  ;;  %2965 = vmatprep.mubr.bf16.mxu1 %v6942_v22  ;;  %v5549_v58 = vpack.c.bf16 %v3330_v56, %v3326_v55  ;;  %v7315_v55 = vld [vmem:[#allocation8 + $0x4b8] sm:$0xff]  ;;  %v7317_v56 = vld [vmem:[#allocation8 + $0x480] sm:$0xff]  ;;  %v7325_v60 = vld [vmem:[#allocation8 + $0x4c8] sm:$0xff] }
 0x1b3   : > { %5532 = vmatpush1.bf16.msra.mxu0 %v5531_v5  ;;  %5660 = vmatpush1.bf16.msra.mxu1 %v5659_v6  ;;  %v3340_v6 = vld [vmem:[#allocation8 + $0x3b8] sm:$0xff]  ;;  %9247 = vst [vmem:[#allocation21_spill] sm:$0xff] %v7315_v55  ;;  %9249 = vst [vmem:[#allocation23_spill] sm:$0xff] %v7325_v60  ;;  %v7327_v61 = vld [vmem:[#allocation8 + $0x4e8] sm:$0xff] }
 0x1b4   : > { %5534 = vmatprep.subr.bf16.mxu0 %v5533_v9  ;;  %5662 = vmatprep.subr.bf16.mxu1 %v5661_v10  ;;  %v5681_v9 = vpack.c.bf16 %v3340_v6, %v3336_v4  ;;  %v5555_v10 = vpack.c.bf16 %v3337_v8, %v3333_v7  ;;  %9250 = vst [vmem:[#allocation24_spill] sm:$0xff] %v7327_v61  ;;  %v7345_v4 = vld [vmem:[#allocation8 + $0x508] sm:$0xff]  ;;  %v7349_v6 = vld [vmem:[#allocation8 + $0x518] sm:$0xff]  ;;  %v7354_v8 = vstv %s7276_s12  ;;  %v7440_v55 = vld [vmem:[#allocation8 + $0x5c0] sm:$0xff]  ;;  %s6854_s12 = scalar_lea.vmem %s9058_s21, 2048 }
 0x1b5   : > { %9257 = vst [vmem:[#allocation31_spill] sm:$0xff] %v7345_v4  ;;  %9259 = vst [vmem:[#allocation33_spill] sm:$0xff] %v7349_v6  ;;  %v7351_v7 = vld [vmem:[#allocation8 + $0x538] sm:$0xff]  ;;  %v7480_v4 = vld [vmem:[#allocation8 + $0x648] sm:$0xff]  ;;  %p6855_p10 = scmp.ne.s32.totalorder %s9058_s21, %s6854_s12  ;;  %p6862_p2 = scmp.lt.s32.totalorder %s6860_s19, %s6854_s12 }
 0x1b6   : > { %9260 = vst [vmem:[#allocation34_spill] sm:$0xff] %v7351_v7  ;;  %9277 = vst [vmem:[#allocation51_spill] sm:$0xff] %v7440_v55  ;;  %v7460_v60 = vld [vmem:[#allocation8 + $0x618] sm:$0xff]  ;;  %v7554_v6 = vld [vmem:[#allocation8 + $0x6c8] sm:$0xff] }
 0x1b7   : > { %5536 = vmatpush1.bf16.msra.mxu0 %v5535_v18  ;;  %5664 = vmatpush1.bf16.msra.mxu1 %v5663_v19  ;;  %v3348_v18 = vld [vmem:[#allocation8 + $0x3f8] sm:$0xff]  ;;  %v3341_v19 = vld [vmem:[#allocation8 + $0x3c0] sm:$0xff]  ;;  %9283 = vst [vmem:[#allocation57_spill] sm:$0xff] %v7460_v60  ;;  %9289 = vst [vmem:[#allocation63_spill] sm:$0xff] %v7480_v4  ;;  %p6856_p3 = pnand %p6855_p10, %p7136_p5  ;;  %p6863_p1 = por %p6862_p2, %p6861_p12 }
 0x1b8   : > { %5538 = vmatprep.subr.bf16.mxu0 %v5537_v23  ;;  %5666 = vmatprep.subr.bf16.mxu1 %v5665_v24  ;;  %v5685_v21 = vpack.c.bf16 %v3348_v18, %v3344_v16  ;;  %v5559_v23 = vpack.c.bf16 %v3345_v20, %v3341_v19  ;;  %v3343_v24 = vld [vmem:[#allocation8 + $0x3d0] sm:$0xff]  ;;  %v7376_v16 = vld [vmem:[#allocation8 + $0x548] sm:$0xff]  ;;  %v7380_v18 = vld [vmem:[#allocation8 + $0x558] sm:$0xff]  ;;  %9305 = vst [vmem:[#allocation79_spill] sm:$0xff] %v7554_v6 }
 0x1b9   : > { %2514 = vmatmul.mubr.bf16.gmra.mrb[20].mxu0 %v6641_v17  ;;  %2966 = vmatmul.mubr.bf16.gmra.mrb[20].mxu1 %v6641_v17  ;;  %v5557_v17 = vpack.c.bf16 %v3346_v15, %v3342_v14  ;;  %v5687_v26 = vpack.c.bf16 %v3347_v25, %v3343_v24  ;;  %v7372_v14 = vld [vmem:[#allocation8 + $0x510] sm:$0xff]  ;;  %9262 = vst [vmem:[#allocation36_spill] sm:$0xff] %v7376_v16  ;;  %9264 = vst [vmem:[#allocation38_spill] sm:$0xff] %v7380_v18  ;;  %v7382_v19 = vld [vmem:[#allocation8 + $0x578] sm:$0xff]  ;;  %p6857_p7 = pneg %p6856_p3 }
 0x1ba   : > { %2523 = vmatprep.mubr.bf16.mxu0 %v6942_v22  ;;  %2975 = vmatprep.mubr.bf16.mxu1 %v6942_v22  ;;  %9261 = vst [vmem:[#allocation35_spill] sm:$0xff] %v7372_v14  ;;  %v7374_v15 = vld [vmem:[#allocation8 + $0x530] sm:$0xff]  ;;  %9265 = vst [vmem:[#allocation39_spill] sm:$0xff] %v7382_v19  ;;  %v7392_v25 = vld [vmem:[#allocation8 + $0x540] sm:$0xff] }
 0x1bb   : > { %5540 = vmatpush1.bf16.msra.mxu0 %v5539_v31  ;;  %5668 = vmatpush1.bf16.msra.mxu1 %v5667_v32  ;;  %v3356_v31 = vld [vmem:[#allocation8 + $0x438] sm:$0xff]  ;;  %v7420_v24 = vld [vmem:[#allocation8 + $0x590] sm:$0xff]  ;;  %v7498_v18 = vld [vmem:[#allocation8 + $0x660] sm:$0xff]  ;;  %p6864_p4 = pnand %p6863_p1, %p6857_p7 }
 0x1bc   : > { %5542 = vmatprep.subr.bf16.mxu0 %v5541_v35  ;;  %5670 = vmatprep.subr.bf16.mxu1 %v5669_v36  ;;  %v5689_v32 = vpack.c.bf16 %v3356_v31, %v3352_v29  ;;  %v662_v35 = vld [vmem:[%s9107_s2] sm:$0xf]  ;;  %v9120_v36 = vsub.s32 0, %v7274_v34  ;;  %v7400_v29 = vld [vmem:[#allocation8 + $0x588] sm:$0xff]  ;;  %v7404_v31 = vld [vmem:[#allocation8 + $0x598] sm:$0xff]  ;;  %9272 = vst [vmem:[#allocation46_spill] sm:$0xff] %v7420_v24 }
 0x1bd   : > { %v7366_v11 = vrot.slane %v662_v35, %v9117_v39  ;;  %9267 = vst [vmem:[#allocation41_spill] sm:$0xff] %v7400_v29  ;;  %9269 = vst [vmem:[#allocation43_spill] sm:$0xff] %v7404_v31  ;;  %v7428_v20 = vld [vmem:[#allocation8 + $0x5d8] sm:$0xff]  ;;  %v7466_v39 = vld [vmem:[#allocation8 + $0x620] sm:$0xff] }
 0x1be   : > { %v7335_v0 = vrot.slane %v662_v35, %v9120_v36  ;;  %v7418_v36 = vld [vmem:[#allocation8 + $0x5a0] sm:$0xff]  ;;  %9275 = vst [vmem:[#allocation49_spill] sm:$0xff] %v7428_v20  ;;  %v7462_v61 = vld [vmem:[#allocation8 + $0x638] sm:$0xff]  ;;  %9286 = vst [vmem:[#allocation60_spill] sm:$0xff] %v7466_v39 }
 0x1bf   : > { %5544 = vmatpush1.bf16.msra.mxu0 %v5543_v43  ;;  %5672 = vmatpush1.bf16.msra.mxu1 %v5671_v44  ;;  %v7291_v43 = vld [vmem:[#allocation8 + $0x430] sm:$0xff]  ;;  %v7293_v44 = vld [vmem:[#allocation8 + $0x448] sm:$0xff]  ;;  %9284 = vst [vmem:[#allocation58_spill] sm:$0xff] %v7462_v61  ;;  %9294 = vst [vmem:[#allocation68_spill] sm:$0xff] %v7498_v18 }
 0x1c0   : > { %5546 = vmatprep.subr.bf16.mxu0 %v5545_v46  ;;  %5674 = vmatprep.subr.bf16.mxu1 %v5673_v47  ;;  %v7297_v46 = vld [vmem:[#allocation8 + $0x458] sm:$0xff]  ;;  %v7500_v19 = vld [vmem:[#allocation8 + $0x650] sm:$0xff]  ;;  %v7512_v31 = vld [vmem:[#allocation8 + $0x688] sm:$0xff] }
 0x1c1   : > { %2524 = vmatmul.mubr.bf16.gmra.mrb[24].mxu0 %v6642_v51  ;;  %2976 = vmatmul.mubr.bf16.gmra.mrb[24].mxu1 %v6642_v51  ;;  %v7299_v47 = vld [vmem:[#allocation8 + $0x478] sm:$0xff]  ;;  %v7307_v51 = vld [vmem:[#allocation8 + $0x470] sm:$0xff]  ;;  %9295 = vst [vmem:[#allocation69_spill] sm:$0xff] %v7500_v19  ;;  %9297 = vst [vmem:[#allocation71_spill] sm:$0xff] %v7512_v31 }
 0x1c2   : > { %2533 = vmatprep.mubr.bf16.mxu0 %v6942_v22  ;;  %2985 = vmatprep.mubr.bf16.mxu1 %v6942_v22  ;;  %v3334_v22 = vld [vmem:[#allocation8 + $0x388] sm:$0xff]  ;;  %v7502_v16 = vld [vmem:[#allocation8 + $0x670] sm:$0xff]  ;;  %v7516_v29 = vld [vmem:[#allocation8 + $0x698] sm:$0xff] }
 0x1c3   : > { %5548 = vmatpush1.bf16.msra.mxu0 %v5547_v52  ;;  %5676 = vmatpush1.bf16.msra.mxu1 %v5675_v53  ;;  %v5553_v5 = vpack.c.bf16 %v3338_v3, %v3334_v22  ;;  %v7309_v52 = vld [vmem:[#allocation8 + $0x488] sm:$0xff]  ;;  %v7341_v22 = vld [vmem:[#allocation8 + $0x4d0] sm:$0xff]  ;;  %9296 = vst [vmem:[#allocation70_spill] sm:$0xff] %v7502_v16  ;;  %9299 = vst [vmem:[#allocation73_spill] sm:$0xff] %v7516_v29 }
 0x1c4   : > { %5550 = vmatprep.subr.bf16.mxu0 %v5549_v58  ;;  %5678 = vmatprep.subr.bf16.mxu1 %v5677_v62  ;;  %9244 = vst [vmem:[#allocation18_spill] sm:$0xff] %v7309_v52  ;;  %v7311_v53 = vld [vmem:[#allocation8 + $0x4a8] sm:$0xff]  ;;  %v7321_v58 = vld [vmem:[#allocation8 + $0x490] sm:$0xff]  ;;  %v7329_v62 = vld [vmem:[#allocation8 + $0x4d8] sm:$0xff] }
 0x1c5   : > { %9245 = vst [vmem:[#allocation19_spill] sm:$0xff] %v7311_v53  ;;  %9248 = vst [vmem:[#allocation22_spill] sm:$0xff] %v7321_v58  ;;  %v7343_v3 = vld [vmem:[#allocation8 + $0x4f0] sm:$0xff]  ;;  %v7442_v52 = vld [vmem:[#allocation8 + $0x5e0] sm:$0xff] }
 0x1c6   : > { %9251 = vst [vmem:[#allocation25_spill] sm:$0xff] %v7329_v62  ;;  %9255 = vst [vmem:[#allocation29_spill] sm:$0xff] %v7341_v22  ;;  %v7444_v53 = vld [vmem:[#allocation8 + $0x5d0] sm:$0xff]  ;;  %v7456_v62 = vld [vmem:[#allocation8 + $0x608] sm:$0xff] }
 0x1c7   : > { %5552 = vmatpush1.bf16.msra.mxu0 %v5551_v63  ;;  %5680 = vmatpush1.bf16.msra.mxu1 %v5679_v2  ;;  %v7331_v63 = vld [vmem:[#allocation8 + $0x4f8] sm:$0xff]  ;;  %v7339_v2 = vld [vmem:[#allocation8 + $0x4e0] sm:$0xff]  ;;  %9256 = vst [vmem:[#allocation30_spill] sm:$0xff] %v7343_v3  ;;  %9278 = vst [vmem:[#allocation52_spill] sm:$0xff] %v7442_v52 }
 0x1c8   : > { %5554 = vmatprep.subr.bf16.mxu0 %v5553_v5  ;;  %5682 = vmatprep.subr.bf16.mxu1 %v5681_v9  ;;  %9252 = vst [vmem:[#allocation26_spill] sm:$0xff] %v7331_v63  ;;  %9254 = vst [vmem:[#allocation28_spill] sm:$0xff] %v7339_v2  ;;  %v7347_v5 = vld [vmem:[#allocation8 + $0x528] sm:$0xff]  ;;  %v7358_v9 = vrot.slane %v662_v35, %v9119_v37  ;;  %v7416_v37 = vld [vmem:[#allocation8 + $0x580] sm:$0xff] }
 0x1c9   : > { %2534 = vmatmul.mubr.bf16.gmra.mrb[28].mxu0 %v6643_v54  ;;  %2986 = vmatmul.mubr.bf16.gmra.mrb[28].mxu1 %v6643_v54  ;;  %v7313_v54 = vld [vmem:[#allocation8 + $0x498] sm:$0xff]  ;;  %9258 = vst [vmem:[#allocation32_spill] sm:$0xff] %v7347_v5  ;;  %9271 = vst [vmem:[#allocation45_spill] sm:$0xff] %v7416_v37  ;;  %v7458_v63 = vld [vmem:[#allocation8 + $0x628] sm:$0xff] }
 0x1ca   : > { %9246 = vst [vmem:[#allocation20_spill] sm:$0xff] %v7313_v54  ;;  %9279 = vst [vmem:[#allocation53_spill] sm:$0xff] %v7444_v53  ;;  %v7464_v58 = vld [vmem:[#allocation8 + $0x600] sm:$0xff]  ;;  %v7482_v5 = vld [vmem:[#allocation8 + $0x668] sm:$0xff] }
 0x1cb   : > { %5556 = vmatpush1.bf16.msra.mxu0 %v5555_v10  ;;  %5684 = vmatpush1.bf16.msra.mxu1 %v5683_v13  ;;  %v7362_v10 = vrot.slane %v662_v35, %v9118_v38  ;;  %v7370_v13 = vld [vmem:[#allocation8 + $0x520] sm:$0xff]  ;;  %v7430_v35 = vld [vmem:[#allocation8 + $0x5f8] sm:$0xff]  ;;  %9281 = vst [vmem:[#allocation55_spill] sm:$0xff] %v7456_v62  ;;  %9282 = vst [vmem:[#allocation56_spill] sm:$0xff] %v7458_v63 }
 0x1cc   : > { %5558 = vmatprep.subr.bf16.mxu0 %v5557_v17  ;;  %5686 = vmatprep.subr.bf16.mxu1 %v5685_v21  ;;  %v7378_v17 = vld [vmem:[#allocation8 + $0x568] sm:$0xff]  ;;  %9276 = vst [vmem:[#allocation50_spill] sm:$0xff] %v7430_v35  ;;  %9285 = vst [vmem:[#allocation59_spill] sm:$0xff] %v7464_v58  ;;  %v7470_v38 = vld [vmem:[#allocation8 + $0x630] sm:$0xff] }
 0x1cd   : > { %9263 = vst [vmem:[#allocation37_spill] sm:$0xff] %v7378_v17  ;;  %v7424_v21 = vld [vmem:[#allocation8 + $0x5c8] sm:$0xff]  ;;  %9288 = vst [vmem:[#allocation62_spill] sm:$0xff] %v7470_v38  ;;  %v7484_v22 = vld [vmem:[#allocation8 + $0x658] sm:$0xff] }
 0x1ce   : > { %9273 = vst [vmem:[#allocation47_spill] sm:$0xff] %v7424_v21  ;;  %9290 = vst [vmem:[#allocation64_spill] sm:$0xff] %v7482_v5  ;;  %v7486_v3 = vld [vmem:[#allocation8 + $0x678] sm:$0xff]  ;;  %v7488_v2 = vld [vmem:[#allocation8 + $0x640] sm:$0xff] }
 0x1cf   : > { %5560 = vmatpush1.bf16.msra.mxu0 %v5559_v23  ;;  %5688 = vmatpush1.bf16.msra.mxu1 %v5687_v26  ;;  %v7394_v26 = vld [vmem:[#allocation8 + $0x560] sm:$0xff]  ;;  %v7422_v23 = vld [vmem:[#allocation8 + $0x5b0] sm:$0xff]  ;;  %9291 = vst [vmem:[#allocation65_spill] sm:$0xff] %v7484_v22  ;;  %9292 = vst [vmem:[#allocation66_spill] sm:$0xff] %v7486_v3 }
 0x1d0   : > { %5562 = vmatprep.subr.bf16.mxu0 %v5561_v30  ;;  %5690 = vmatprep.subr.bf16.mxu1 %v5689_v32  ;;  %v7402_v30 = vld [vmem:[#allocation8 + $0x5a8] sm:$0xff]  ;;  %v7406_v32 = vld [vmem:[#allocation8 + $0x5b8] sm:$0xff]  ;;  %9293 = vst [vmem:[#allocation67_spill] sm:$0xff] %v7488_v2  ;;  %v7528_v20 = vld [vmem:[#allocation8 + $0x680] sm:$0xff] }
 0x1d1   : > { %9268 = vst [vmem:[#allocation42_spill] sm:$0xff] %v7402_v30  ;;  %9270 = vst [vmem:[#allocation44_spill] sm:$0xff] %v7406_v32  ;;  %v7514_v32 = vld [vmem:[#allocation8 + $0x6a8] sm:$0xff]  ;;  %v7526_v7 = vld [vmem:[#allocation8 + $0x6b8] sm:$0xff] }
 0x1d2   : > { %9298 = vst [vmem:[#allocation72_spill] sm:$0xff] %v7514_v32  ;;  %9300 = vst [vmem:[#allocation74_spill] sm:$0xff] %v7526_v7  ;;  %v7530_v35 = vld [vmem:[#allocation8 + $0x6a0] sm:$0xff]  ;;  %v7540_v53 = vld [vmem:[#allocation8 + $0x690] sm:$0xff] }
 0x1d3   : > { %9301 = vst [vmem:[#allocation75_spill] sm:$0xff] %v7528_v20  ;;  %9302 = vst [vmem:[#allocation76_spill] sm:$0xff] %v7530_v35  ;;  %v7552_v58 = vld [vmem:[#allocation8 + $0x6b0] sm:$0xff]  ;;  %v7565_v2 = vld [vmem:[#allocation8 + $0x6d8] sm:$0xff] }
 0x1d4   : > { %9303 = vst [vmem:[#allocation77_spill] sm:$0xff] %v7540_v53  ;;  %9304 = vst [vmem:[#allocation78_spill] sm:$0xff] %v7552_v58  ;;  %v7570_v18 = vld [vmem:[#allocation8 + $0x6f8] sm:$0xff]  ;;  %v7572_v22 = vld [vmem:[#allocation8 + $0x6c0] sm:$0xff] }
 0x1d5   : > { %9307 = vst [vmem:[#allocation81_spill] sm:$0xff] %v7565_v2  ;;  %9308 = vst [vmem:[#allocation82_spill] sm:$0xff] %v7570_v18  ;;  %v7574_v52 = vld [vmem:[#allocation8 + $0x6e0] sm:$0xff]  ;;  %v7581_v35 = vld [vmem:[#allocation8 + $0x6d0] sm:$0xff] }
 0x1d6   : > { %9309 = vst [vmem:[#allocation83_spill] sm:$0xff] %v7572_v22  ;;  %9310 = vst [vmem:[#allocation84_spill] sm:$0xff] %v7574_v52  ;;  %v7589_v31 = vld [vmem:[#allocation8 + $0x728] sm:$0xff]  ;;  %v7603_v3 = vld [vmem:[#allocation8 + $0x700] sm:$0xff] }
 0x1d7   : > { %9311 = vst [vmem:[#allocation85_spill] sm:$0xff] %v7581_v35  ;;  %9314 = vst [vmem:[#allocation88_spill] sm:$0xff] %v7589_v31  ;;  %v7605_v4 = vld [vmem:[#allocation8 + $0x720] sm:$0xff]  ;;  %v7607_v5 = vld [vmem:[#allocation8 + $0x710] sm:$0xff] }
 0x1d8   : > { %9317 = vst [vmem:[#allocation91_spill] sm:$0xff] %v7603_v3  ;;  %9318 = vst [vmem:[#allocation92_spill] sm:$0xff] %v7605_v4  ;;  %v7615_v58 = vld [vmem:[#allocation8 + $0x730] sm:$0xff]  ;;  %v7617_v32 = vld [vmem:[#allocation8 + $0x748] sm:$0xff] }
 0x1d9   : > { %9319 = vst [vmem:[#allocation93_spill] sm:$0xff] %v7607_v5  ;;  %9320 = vst [vmem:[#allocation94_spill] sm:$0xff] %v7615_v58  ;;  %v7619_v22 = vld [vmem:[#allocation8 + $0x768] sm:$0xff]  ;;  %v7704_v31 = vld [vmem:[#allocation8 + $0x7f8] sm:$0xff] }
 0x1da   : > { %9321 = vst [vmem:[#allocation95_spill] sm:$0xff] %v7617_v32  ;;  %9322 = vst [vmem:[#allocation96_spill] sm:$0xff] %v7619_v22  ;;  %v7668_v22 = vld [vmem:[#allocation8 + $0x798] sm:$0xff] }
 0x1db   : > { %9332 = vst [vmem:[#allocation106_spill] sm:$0xff] %v7668_v22  ;;  %9341 = vst [vmem:[#allocation115_spill] sm:$0xff] %v7704_v31  ;;  %v9391_v22 = vld [vmem:[#allocation39_spill] sm:$0xff] }
 0x264   : > { %v2465_v17 = vpop.f32.mrb[0].mxu0  ;;  %v2917_v14 = vpop.f32.mrb[0].mxu1 }
 0x265   : > { %v5753_v30 = vadd.f32 %v2465_v17, %v7335_v0  ;;  %v5785_v27 = vadd.f32 %v2917_v14, %v7358_v9  ;;  %v2467_v34 = vpop.f32.mrb[1].mxu0  ;;  %v7520_v37 = vpop.f32.mrb[1].mxu1  ;;  %v7593_v17 = vld [vmem:[#allocation8 + $0x738] sm:$0xff] }
 0x266   : > { %v2469_v21 = vpop.f32.mrb[2].mxu0  ;;  %v2921_v33 = vpop.f32.mrb[2].mxu1  ;;  %9316 = vst [vmem:[#allocation90_spill] sm:$0xff] %v7593_v17  ;;  %v5754_v6 = vadd.f32 %v2467_v34, %v7362_v10  ;;  %v7683_v32 = vadd.f32 %v7520_v37, %v7366_v11 }
 0x267   : > { %v2471_v50 = vpop.f32.mrb[3].mxu0  ;;  %v7542_v55 = vpop.f32.mrb[3].mxu1  ;;  %v3061_v38 = vmul.f32 %v5753_v30, %v7354_v8  ;;  %vm2996_vm0 = vcmp.gt.f32.partialorder %v5753_v30, 0.0  ;;  %v3063_v54 = vmul.f32 %v5785_v27, %v7354_v8  ;;  %v5755_v19 = vadd.f32 %v2469_v21, %v7335_v0  ;;  %v7583_v21 = vld [vmem:[#allocation8 + $0x6f0] sm:$0xff] }
 0x268   : > { %v5787_v16 = vadd.f32 %v2921_v33, %v7358_v9  ;;  %vm2998_vm1 = vcmp.gt.f32.partialorder %v5785_v27, 0.0  ;;  %v5756_v14 = vadd.f32 %v2471_v50, %v7362_v10  ;;  %9312 = vst [vmem:[#allocation86_spill] sm:$0xff] %v7583_v21  ;;  %v7585_v33 = vld [vmem:[#allocation8 + $0x708] sm:$0xff]  ;;  %v7591_v50 = vld [vmem:[#allocation8 + $0x718] sm:$0xff]  ;;  %vm2997_vm5 = vcmp.gt.f32.partialorder %v5754_v6, 0.0 }
 0x269   : > { %9313 = vst [vmem:[#allocation87_spill] sm:$0xff] %v7585_v33  ;;  %vm3000_vm2 = vcmp.gt.f32.partialorder %v5755_v19, 0.0  ;;  %v3065_v29 = vmul.f32 %v5755_v19, %v7354_v8  ;;  %9315 = vst [vmem:[#allocation89_spill] sm:$0xff] %v7591_v50  ;;  %v3125_v20 = vsel %vm2996_vm0, %v5753_v30, %v3061_v38  ;;  %v3127_v39 = vsel %vm2998_vm1, %v5785_v27, %v3063_v54  ;;  %v7653_v33 = vld [vmem:[#allocation8 + $0x770] sm:$0xff] }
 0x26a   : > { %vm3002_vm3 = vcmp.gt.f32.partialorder %v5787_v16, 0.0  ;;  %v3067_v7 = vmul.f32 %v5787_v16, %v7354_v8  ;;  %v3066_v54 = vmul.f32 %v5756_v14, %v7354_v8  ;;  %vm3001_vm4 = vcmp.gt.f32.partialorder %v5756_v14, 0.0  ;;  %9329 = vst [vmem:[#allocation103_spill] sm:$0xff] %v7653_v33 }
 0x26b   : > { %v3129_v38 = vsel %vm3000_vm2, %v5755_v19, %v3065_v29  ;;  %v3062_v35 = vmul.f32 %v5754_v6, %v7354_v8  ;;  %vm2999_vm10 = vcmp.gt.f32.partialorder %v7683_v32, 0.0 }
 0x26c   : > { %v2475_v1 = vpop.f32.mrb[4].mxu0  ;;  %v7597_v53 = vpop.f32.mrb[4].mxu1  ;;  %v3131_v34 = vsel %vm3002_vm3, %v5787_v16, %v3067_v7  ;;  %v7621_v52 = vpack.c.bf16 %v3129_v38, %v3125_v20  ;;  %v7630_v7 = vld [vmem:[#allocation8 + $0x758] sm:$0xff]  ;;  %v7655_v20 = vld [vmem:[#allocation8 + $0x788] sm:$0xff]  ;;  %v3130_v21 = vsel %vm3001_vm4, %v5756_v14, %v3066_v54  ;;  %v7677_v14 = vld [vmem:[#allocation8 + $0x780] sm:$0xff] }
 0x26d   : > { %v5757_v30 = vadd.f32 %v2475_v1, %v7335_v0  ;;  %v2477_v60 = vpop.f32.mrb[5].mxu0  ;;  %v7613_v61 = vpop.f32.mrb[5].mxu1  ;;  %v7623_v2 = vpack.c.bf16 %v3131_v34, %v3127_v39  ;;  %9324 = vst [vmem:[#allocation98_spill] sm:$0xff] %v7630_v7  ;;  %v7632_v16 = vld [vmem:[#allocation8 + $0x778] sm:$0xff]  ;;  %v7642_v34 = vld [vmem:[#allocation8 + $0x740] sm:$0xff]  ;;  %9330 = vst [vmem:[#allocation104_spill] sm:$0xff] %v7655_v20 }
 0x26e   : > { %v2479_v19 = vpop.f32.mrb[6].mxu0  ;;  %v7626_v27 = vpop.f32.mrb[6].mxu1  ;;  %9325 = vst [vmem:[#allocation99_spill] sm:$0xff] %v7632_v16  ;;  %9326 = vst [vmem:[#allocation100_spill] sm:$0xff] %v7642_v34  ;;  %v7644_v1 = vld [vmem:[#allocation8 + $0x760] sm:$0xff]  ;;  %v7657_v38 = vld [vmem:[#allocation8 + $0x7a8] sm:$0xff]  ;;  %v5758_v4 = vadd.f32 %v2477_v60, %v7362_v10  ;;  %v3126_v34 = vsel %vm2997_vm5, %v5754_v6, %v3062_v35 }
 0x26f   : > { %9323 = vst [vmem:[#allocation97_spill] sm:$0xff] %v7623_v2  ;;  %v2481_v29 = vpop.f32.mrb[7].mxu0  ;;  %v7634_v18 = vpop.f32.mrb[7].mxu1  ;;  %9327 = vst [vmem:[#allocation101_spill] sm:$0xff] %v7644_v1  ;;  %v7646_v2 = vld [vmem:[#allocation8 + $0x750] sm:$0xff]  ;;  %v3069_v3 = vmul.f32 %v5757_v30, %v7354_v8  ;;  %v5759_v50 = vadd.f32 %v2479_v19, %v7335_v0  ;;  %vm3004_vm6 = vcmp.gt.f32.partialorder %v5757_v30, 0.0  ;;  %v3190_v33 = vpack.c.bf16 %v3130_v21, %v3126_v34 }
 0x270   : > { %9328 = vst [vmem:[#allocation102_spill] sm:$0xff] %v7646_v2  ;;  %9331 = vst [vmem:[#allocation105_spill] sm:$0xff] %v7657_v38  ;;  %v5760_v17 = vadd.f32 %v2481_v29, %v7362_v10  ;;  %v7675_v29 = vld [vmem:[#allocation8 + $0x7b8] sm:$0xff]  ;;  %v7679_v54 = vld [vmem:[#allocation8 + $0x7a0] sm:$0xff]  ;;  %v3070_v38 = vmul.f32 %v5758_v4, %v7354_v8  ;;  %vm3005_vm9 = vcmp.gt.f32.partialorder %v5758_v4, 0.0 }
 0x271   : > { %vm3008_vm7 = vcmp.gt.f32.partialorder %v5759_v50, 0.0  ;;  %v3073_v5 = vmul.f32 %v5759_v50, %v7354_v8  ;;  %9333 = vst [vmem:[#allocation107_spill] sm:$0xff] %v7675_v29  ;;  %9334 = vst [vmem:[#allocation108_spill] sm:$0xff] %v7677_v14  ;;  %v7689_v2 = vld [vmem:[#allocation8 + $0x790] sm:$0xff]  ;;  %v7693_v20 = vld [vmem:[#allocation8 + $0x7c8] sm:$0xff]  ;;  %v3133_v16 = vsel %vm3004_vm6, %v5757_v30, %v3069_v3  ;;  %3563 = vmatprep.mubr.bf16.mxu0 %v3190_v33  ;;  %3853 = vmatprep.mubr.bf16.mxu1 %v3190_v33 }
 0x272   : > { %9335 = vst [vmem:[#allocation109_spill] sm:$0xff] %v7679_v54  ;;  %vm3009_vm8 = vcmp.gt.f32.partialorder %v5760_v17, 0.0  ;;  %v3074_v39 = vmul.f32 %v5760_v17, %v7354_v8  ;;  %9336 = vst [vmem:[#allocation110_spill] sm:$0xff] %v7689_v2  ;;  %v7691_v19 = vld [vmem:[#allocation8 + $0x7b0] sm:$0xff]  ;;  %v7700_v6 = vld [vmem:[#allocation8 + $0x7e8] sm:$0xff]  ;;  %3564 = vmatmul.mubr.bf16.vlgmr.msra.gmra.mrb[32].mxu0 %v7621_v52  ;;  %3854 = vmatmul.mubr.bf16.vlgmr.msra.gmra.mrb[32].mxu1 %v7621_v52  ;;  %v9342_v3 = vpack.c.bf16 %v7287_v41, %v7285_v40 }
 0x273   : > { %9337 = vst [vmem:[#allocation111_spill] sm:$0xff] %v7691_v19  ;;  %9338 = vst [vmem:[#allocation112_spill] sm:$0xff] %v7693_v20  ;;  %v3137_v58 = vsel %vm3008_vm7, %v5759_v50, %v3073_v5  ;;  %v7702_v35 = vld [vmem:[#allocation8 + $0x7d8] sm:$0xff]  ;;  %v5788_v5 = vadd.f32 %v7542_v55, %v7366_v11  ;;  %v3134_v52 = vsel %vm3005_vm9, %v5758_v4, %v3070_v38  ;;  %v7738_v21 = vld [vmem:[#allocation8 + $0x7c0] sm:$0xff] }
 0x274   : > { %v2485_v1 = vpop.f32.mrb[8].mxu0  ;;  %v7687_v60 = vpop.f32.mrb[8].mxu1  ;;  %9339 = vst [vmem:[#allocation113_spill] sm:$0xff] %v7700_v6  ;;  %9340 = vst [vmem:[#allocation114_spill] sm:$0xff] %v7702_v35  ;;  %v7708_v24 = vpack.c.bf16 %v3137_v58, %v3133_v16  ;;  %v3138_v34 = vsel %vm3009_vm8, %v5760_v17, %v3074_v39  ;;  %v3064_v16 = vmul.f32 %v7683_v32, %v7354_v8  ;;  %5564 = vmatpush1.bf16.msra.mxu0 %v9342_v3  ;;  %v7752_v4 = vld [vmem:[#allocation8 + $0x7e0] sm:$0xff]  ;;  %v7756_v38 = vld [vmem:[#allocation8 + $0x7f0] sm:$0xff] }
 0x275   : > { %v2487_v7 = vpop.f32.mrb[9].mxu0  ;;  %v7696_v37 = vpop.f32.mrb[9].mxu1  ;;  %v9343_v17 = vpack.c.bf16 %v7291_v43, %v7289_v42  ;;  %9344 = vst [vmem:[#allocation116_spill] sm:$0xff] %v7738_v21  ;;  %v7743_v33 = vadd.f32 %v7597_v53, %v7358_v9  ;;  %v9345_v40 = vpack.c.bf16 %v7295_v45, %v7293_v44  ;;  %v9346_v41 = vpack.c.bf16 %v7299_v47, %v7297_v46  ;;  %v9366_v35 = vld [vmem:[#allocation25_spill] sm:$0xff]  ;;  %v9389_v14 = vld [vmem:[#allocation36_spill] sm:$0xff]  ;;  %v9392_v29 = vld [vmem:[#allocation38_spill] sm:$0xff] }
 0x276   : > { %v2489_v62 = vpop.f32.mrb[10].mxu0  ;;  %v7706_v63 = vpop.f32.mrb[10].mxu1  ;;  %v5762_v39 = vadd.f32 %v2487_v7, %v7362_v10  ;;  %v3194_v43 = vpack.c.bf16 %v3138_v34, %v3134_v52  ;;  %9347 = vst [vmem:[#allocation117_spill] sm:$0xff] %v7752_v4  ;;  %v7754_v7 = vld [vmem:[#allocation8 + $0x7d0] sm:$0xff]  ;;  %9349 = vst [vmem:[#allocation119_spill] sm:$0xff] %v7756_v38  ;;  %vm3003_vm11 = vcmp.gt.f32.partialorder %v5788_v5, 0.0  ;;  %v3068_v53 = vmul.f32 %v5788_v5, %v7354_v8 }
 0x277   : > { %v2491_v50 = vpop.f32.mrb[11].mxu0  ;;  %v7716_v30 = vpop.f32.mrb[11].mxu1  ;;  %5692 = vmatpush1.bf16.msra.mxu1 %v9343_v17  ;;  %5566 = vmatprep.subr.bf16.mxu0 %v9345_v40  ;;  %v5763_v42 = vadd.f32 %v2489_v62, %v7335_v0  ;;  %9348 = vst [vmem:[#allocation118_spill] sm:$0xff] %v7754_v7  ;;  %v7761_v44 = vadd.f32 %v7613_v61, %v7366_v11  ;;  %v9388_v19 = vld [vmem:[#allocation37_spill] sm:$0xff] }
 0x278   : > { %v5764_v58 = vadd.f32 %v2491_v50, %v7362_v10  ;;  %5694 = vmatprep.subr.bf16.mxu1 %v9346_v41  ;;  %v7765_v45 = vadd.f32 %v7626_v27, %v7358_v9  ;;  %v7769_v46 = vadd.f32 %v7634_v18, %v7366_v11  ;;  %v5761_v47 = vadd.f32 %v2485_v1, %v7335_v0  ;;  %v9351_v27 = vld [vmem:[#allocation17_spill] sm:$0xff] }
 0x279   : > { %3573 = vmatprep.mubr.bf16.mxu0 %v3194_v43  ;;  %3863 = vmatprep.mubr.bf16.mxu1 %v3194_v43  ;;  %v3078_v61 = vmul.f32 %v5762_v39, %v7354_v8  ;;  %v9350_v34 = vpack.c.bf16 %v7303_v49, %v7301_v48  ;;  %v9352_v17 = vpack.c.bf16 %v7307_v51, %v9351_v27  ;;  %vm3013_vm13 = vcmp.gt.f32.partialorder %v5762_v39, 0.0  ;;  %v9353_v49 = vld [vmem:[#allocation19_spill] sm:$0xff]  ;;  %v9354_v43 = vld [vmem:[#allocation18_spill] sm:$0xff]  ;;  %v9356_v51 = vld [vmem:[#allocation21_spill] sm:$0xff] }
 0x27a   : > { %vm3017_vm12 = vcmp.gt.f32.partialorder %v5764_v58, 0.0  ;;  %v3082_v62 = vmul.f32 %v5764_v58, %v7354_v8  ;;  %v7786_v41 = vmul.f32 %v7743_v33, %v7354_v8  ;;  %v3081_v48 = vmul.f32 %v5763_v42, %v7354_v8  ;;  %v9357_v27 = vld [vmem:[#allocation20_spill] sm:$0xff]  ;;  %3574 = vmatmul.mubr.bf16.gmra.mrb[36].mxu0 %v7708_v24  ;;  %3864 = vmatmul.mubr.bf16.gmra.mrb[36].mxu1 %v7708_v24 }
 0x27b   : > { %5568 = vmatpush1.bf16.msra.mxu0 %v9350_v34  ;;  %5696 = vmatpush1.bf16.msra.mxu1 %v9352_v17  ;;  %v9355_v34 = vpack.c.bf16 %v9353_v49, %v9354_v43  ;;  %v9358_v17 = vpack.c.bf16 %v9356_v51, %v9357_v27  ;;  %v7798_v40 = vsel %vm2999_vm10, %v7683_v32, %v3064_v16  ;;  %vm3016_vm14 = vcmp.gt.f32.partialorder %v5763_v42, 0.0  ;;  %v9362_v24 = vld [vmem:[#allocation24_spill] sm:$0xff] }
 0x27c   : > { %v2495_v3 = vpop.f32.mrb[12].mxu0  ;;  %v2947_v50 = vpop.f32.mrb[12].mxu1  ;;  %v7802_v7 = vmul.f32 %v7761_v44, %v7354_v8  ;;  %v3146_v49 = vsel %vm3017_vm12, %v5764_v58, %v3082_v62  ;;  %v7806_v43 = vsel %vm3003_vm11, %v5788_v5, %v3068_v53  ;;  %v7814_v32 = vmul.f32 %v7769_v46, %v7354_v8  ;;  %v9360_v62 = vld [vmem:[#allocation22_spill] sm:$0xff] }
 0x27d   : > { %v2497_v18 = vpop.f32.mrb[13].mxu0  ;;  %v2949_v52 = vpop.f32.mrb[13].mxu1  ;;  %5570 = vmatprep.subr.bf16.mxu0 %v9355_v34  ;;  %5698 = vmatprep.subr.bf16.mxu1 %v9358_v17  ;;  %v7810_v34 = vmul.f32 %v7765_v45, %v7354_v8  ;;  %v3077_v16 = vmul.f32 %v5761_v47, %v7354_v8  ;;  %vm3012_vm15 = vcmp.gt.f32.partialorder %v5761_v47, 0.0  ;;  %v7821_v58 = vadd.f32 %v7687_v60, %v7358_v9  ;;  %v9363_v17 = vld [vmem:[#allocation23_spill] sm:$0xff]  ;;  %v9365_v60 = vld [vmem:[#allocation26_spill] sm:$0xff] }
 0x27e   : > { %v2499_v55 = vpop.f32.mrb[14].mxu0  ;;  %v2951_v1 = vpop.f32.mrb[14].mxu1  ;;  %v7825_v5 = vadd.f32 %v7696_v37, %v7366_v11  ;;  %v9359_v53 = vpack.c.bf16 %v7319_v57, %v7317_v56  ;;  %v9361_v51 = vpack.c.bf16 %v7323_v59, %v9360_v62  ;;  %v3142_v27 = vsel %vm3013_vm13, %v5762_v39, %v3078_v61  ;;  %v9368_v61 = vld [vmem:[#allocation28_spill] sm:$0xff] }
 0x27f   : > { %v2501_v38 = vpop.f32.mrb[15].mxu0  ;;  %v2953_v21 = vpop.f32.mrb[15].mxu1  ;;  %v9364_v4 = vpack.c.bf16 %v9362_v24, %v9363_v17  ;;  %v9367_v31 = vpack.c.bf16 %v9365_v60, %v9366_v35  ;;  %v3198_v20 = vpack.c.bf16 %v3146_v49, %v3142_v27  ;;  %v3145_v56 = vsel %vm3016_vm14, %v5763_v42, %v3081_v48  ;;  %v9369_v48 = vld [vmem:[#allocation27_spill] sm:$0xff]  ;;  %v9371_v49 = vld [vmem:[#allocation30_spill] sm:$0xff]  ;;  %v9374_v27 = vld [vmem:[#allocation32_spill] sm:$0xff] }
 0x280   : > { %5572 = vmatpush1.bf16.msra.mxu0 %v9359_v53  ;;  %5700 = vmatpush1.bf16.msra.mxu1 %v9361_v51  ;;  %v5768_v37 = vadd.f32 %v2501_v38, %v7362_v10  ;;  %v7844_v57 = vadd.f32 %v7706_v63, %v7358_v9  ;;  %v7848_v59 = vadd.f32 %v7716_v30, %v7366_v11  ;;  %v9375_v24 = vld [vmem:[#allocation31_spill] sm:$0xff]  ;;  %v9378_v60 = vld [vmem:[#allocation33_spill] sm:$0xff]  ;;  %vm3007_vm12 = vcmp.gt.f32.partialorder %v7761_v44, 0.0 }
 0x281   : > { %5574 = vmatprep.subr.bf16.mxu0 %v9364_v4  ;;  %5702 = vmatprep.subr.bf16.mxu1 %v9367_v31  ;;  %v5765_v39 = vadd.f32 %v2495_v3, %v7335_v0  ;;  %v7852_v4 = vadd.f32 %v2947_v50, %v7358_v9  ;;  %v5766_v31 = vadd.f32 %v2497_v18, %v7362_v10  ;;  %v9372_v3 = vld [vmem:[#allocation29_spill] sm:$0xff]  ;;  %vm3011_vm13 = vcmp.gt.f32.partialorder %v7769_v46, 0.0 }
 0x282   : > { %v7856_v35 = vadd.f32 %v2949_v52, %v7366_v11  ;;  %3583 = vmatprep.mubr.bf16.mxu0 %v3198_v20  ;;  %3873 = vmatprep.mubr.bf16.mxu1 %v3198_v20  ;;  %v3141_v42 = vsel %vm3012_vm15, %v5761_v47, %v3077_v16  ;;  %v9370_v30 = vpack.c.bf16 %v9368_v61, %v9369_v48  ;;  %vm3025_vm0 = vcmp.gt.f32.partialorder %v5768_v37, 0.0 }
 0x283   : > { %v9373_v53 = vpack.c.bf16 %v9371_v49, %v9372_v3  ;;  %v5767_v50 = vadd.f32 %v2499_v55, %v7335_v0  ;;  %v7867_v18 = vadd.f32 %v2951_v1, %v7358_v9  ;;  %v3197_v52 = vpack.c.bf16 %v3145_v56, %v3141_v42  ;;  %v9377_v55 = vld [vmem:[#allocation34_spill] sm:$0xff] }
 0x284   : > { %v2505_v63 = vpop.f32.mrb[16].mxu0  ;;  %v2957_v38 = vpop.f32.mrb[16].mxu1  ;;  %5576 = vmatpush1.bf16.msra.mxu0 %v9370_v30  ;;  %v7871_v47 = vmul.f32 %v7821_v58, %v7354_v8  ;;  %v3090_v16 = vmul.f32 %v5768_v37, %v7354_v8  ;;  %v7875_v51 = vadd.f32 %v2953_v21, %v7366_v11  ;;  %v9376_v17 = vpack.c.bf16 %v9374_v27, %v9375_v24 }
 0x285   : > { %5704 = vmatpush1.bf16.msra.mxu1 %v9373_v53  ;;  %v2507_v62 = vpop.f32.mrb[17].mxu0  ;;  %v2959_v20 = vpop.f32.mrb[17].mxu1  ;;  %v9379_v1 = vpack.c.bf16 %v9377_v55, %v9378_v60  ;;  %v7885_v61 = vmul.f32 %v7825_v5, %v7354_v8  ;;  %v7889_v48 = vmul.f32 %v7844_v57, %v7354_v8  ;;  %v7893_v21 = vmul.f32 %v7848_v59, %v7354_v8 }
 0x286   : > { %5578 = vmatprep.subr.bf16.mxu0 %v9376_v17  ;;  %v2509_v56 = vpop.f32.mrb[18].mxu0  ;;  %v2961_v42 = vpop.f32.mrb[18].mxu1  ;;  %vm3020_vm1 = vcmp.gt.f32.partialorder %v5765_v39, 0.0  ;;  %v3085_v3 = vmul.f32 %v5765_v39, %v7354_v8  ;;  %v7898_v53 = vmul.f32 %v7852_v4, %v7354_v8  ;;  %v3086_v27 = vmul.f32 %v5766_v31, %v7354_v8  ;;  %3584 = vmatmul.mubr.bf16.gmra.mrb[40].mxu0 %v3197_v52 }
 0x287   : > { %5706 = vmatprep.subr.bf16.mxu1 %v9379_v1  ;;  %9380 = vst [vmem:[#allocation17_spill] sm:$0xff] %v7889_v48  ;;  %v2511_v30 = vpop.f32.mrb[19].mxu0  ;;  %v2963_v49 = vpop.f32.mrb[19].mxu1  ;;  %3874 = vmatmul.mubr.bf16.gmra.mrb[40].mxu1 %v3197_v52  ;;  %vm3021_vm2 = vcmp.gt.f32.partialorder %v5766_v31, 0.0  ;;  %v7903_v24 = vmul.f32 %v7856_v35, %v7354_v8  ;;  %v3089_v17 = vmul.f32 %v5767_v50, %v7354_v8  ;;  %v9385_v1 = vld [vmem:[#allocation35_spill] sm:$0xff]  ;;  %vm3024_vm3 = vcmp.gt.f32.partialorder %v5767_v50, 0.0 }
 0x288   : > { %9381 = vst [vmem:[#allocation19_spill] sm:$0xff] %v7898_v53  ;;  %v7908_v55 = vmul.f32 %v7867_v18, %v7354_v8  ;;  %v9384_v60 = vpack.c.bf16 %v7370_v13, %v7368_v12  ;;  %v9386_v6 = vpack.c.bf16 %v7374_v15, %v9385_v1  ;;  %v7918_v52 = vmul.f32 %v7875_v51, %v7354_v8  ;;  %v9428_v53 = vld [vmem:[#allocation57_spill] sm:$0xff] }
 0x289   : > { %9382 = vst [vmem:[#allocation18_spill] sm:$0xff] %v7903_v24  ;;  %v5769_v2 = vadd.f32 %v2505_v63, %v7335_v0  ;;  %v9390_v54 = vpack.c.bf16 %v9388_v19, %v9389_v14  ;;  %v3154_v12 = vsel %vm3025_vm0, %v5768_v37, %v3090_v16  ;;  %v7929_v13 = vadd.f32 %v2957_v38, %v7358_v9  ;;  %v9395_v38 = vld [vmem:[#allocation40_spill] sm:$0xff] }
 0x28a   : > { %9383 = vst [vmem:[#allocation21_spill] sm:$0xff] %v7908_v55  ;;  %5580 = vmatpush1.bf16.msra.mxu0 %v9384_v60  ;;  %5708 = vmatpush1.bf16.msra.mxu1 %v9386_v6  ;;  %9387 = vst [vmem:[#allocation20_spill] sm:$0xff] %v7918_v52  ;;  %v9393_v55 = vpack.c.bf16 %v9391_v22, %v9392_v29  ;;  %v5770_v15 = vadd.f32 %v2507_v62, %v7362_v10  ;;  %vm3006_vm15 = vcmp.gt.f32.partialorder %v7743_v33, 0.0 }
 0x28b   : > { %5582 = vmatprep.subr.bf16.mxu0 %v9390_v54  ;;  %v5771_v6 = vadd.f32 %v2509_v56, %v7335_v0  ;;  %v5772_v60 = vadd.f32 %v2511_v30, %v7362_v10  ;;  %v7935_v63 = vadd.f32 %v2959_v20, %v7366_v11  ;;  %v7938_v19 = vadd.f32 %v2961_v42, %v7358_v9 }
 0x28c   : > { %5710 = vmatprep.subr.bf16.mxu1 %v9393_v55  ;;  %v7941_v22 = vadd.f32 %v2963_v49, %v7366_v11  ;;  %v3150_v29 = vsel %vm3021_vm2, %v5766_v31, %v3086_v27  ;;  %v2515_v14 = vpop.f32.mrb[20].mxu0  ;;  %v2967_v54 = vpop.f32.mrb[20].mxu1  ;;  %v9394_v37 = vpack.c.bf16 %v7394_v26, %v7392_v25  ;;  %v9396_v62 = vpack.c.bf16 %v7398_v28, %v9395_v38  ;;  %v9397_v27 = vld [vmem:[#allocation42_spill] sm:$0xff]  ;;  %v9398_v55 = vld [vmem:[#allocation41_spill] sm:$0xff]  ;;  %v9400_v25 = vld [vmem:[#allocation44_spill] sm:$0xff] }
 0x28d   : > { %v3202_v20 = vpack.c.bf16 %v3154_v12, %v3150_v29  ;;  %v3149_v16 = vsel %vm3020_vm1, %v5765_v39, %v3085_v3  ;;  %v3153_v56 = vsel %vm3024_vm3, %v5767_v50, %v3089_v17  ;;  %v2517_v42 = vpop.f32.mrb[21].mxu0  ;;  %v2969_v30 = vpop.f32.mrb[21].mxu1  ;;  %v3093_v49 = vmul.f32 %v5769_v2, %v7354_v8  ;;  %v9401_v26 = vld [vmem:[#allocation43_spill] sm:$0xff] }
 0x28e   : > { %5584 = vmatpush1.bf16.msra.mxu0 %v9394_v37  ;;  %5712 = vmatpush1.bf16.msra.mxu1 %v9396_v62  ;;  %v3201_v31 = vpack.c.bf16 %v3153_v56, %v3149_v16  ;;  %v9399_v1 = vpack.c.bf16 %v9397_v27, %v9398_v55  ;;  %v9402_v37 = vpack.c.bf16 %v9400_v25, %v9401_v26  ;;  %v2519_v12 = vpop.f32.mrb[22].mxu0  ;;  %v2971_v39 = vpop.f32.mrb[22].mxu1  ;;  %vm3028_vm4 = vcmp.gt.f32.partialorder %v5769_v2, 0.0  ;;  %v9407_v27 = vld [vmem:[#allocation45_spill] sm:$0xff]  ;;  %v9411_v25 = vld [vmem:[#allocation48_spill] sm:$0xff]  ;;  %v9412_v26 = vld [vmem:[#allocation47_spill] sm:$0xff] }
 0x28f   : > { %v7960_v28 = vadd.f32 %v2515_v14, %v7335_v0  ;;  %v7964_v50 = vmul.f32 %v7929_v13, %v7354_v8  ;;  %v3097_v3 = vmul.f32 %v5771_v6, %v7354_v8  ;;  %v3098_v17 = vmul.f32 %v5772_v60, %v7354_v8  ;;  %3593 = vmatprep.mubr.bf16.mxu0 %v3202_v20  ;;  %v2521_v29 = vpop.f32.mrb[23].mxu0  ;;  %v2973_v38 = vpop.f32.mrb[23].mxu1 }
 0x290   : > { %5586 = vmatprep.subr.bf16.mxu0 %v9399_v1  ;;  %5714 = vmatprep.subr.bf16.mxu1 %v9402_v37  ;;  %v3094_v62 = vmul.f32 %v5770_v15, %v7354_v8  ;;  %vm3032_vm5 = vcmp.gt.f32.partialorder %v5771_v6, 0.0  ;;  %vm3033_vm6 = vcmp.gt.f32.partialorder %v5772_v60, 0.0  ;;  %v7970_v14 = vadd.f32 %v2967_v54, %v7358_v9  ;;  %v9409_v54 = vld [vmem:[#allocation46_spill] sm:$0xff] }
 0x291   : > { %9403 = vst [vmem:[#allocation22_spill] sm:$0xff] %v7964_v50  ;;  %3883 = vmatprep.mubr.bf16.mxu1 %v3202_v20  ;;  %3594 = vmatmul.mubr.bf16.gmra.mrb[44].mxu0 %v3201_v31  ;;  %vm3029_vm7 = vcmp.gt.f32.partialorder %v5770_v15, 0.0  ;;  %v7974_v16 = vmul.f32 %v7935_v63, %v7354_v8  ;;  %v7978_v56 = vmul.f32 %v7938_v19, %v7354_v8  ;;  %v9415_v50 = vld [vmem:[#allocation49_spill] sm:$0xff]  ;;  %vm3036_vm11 = vcmp.gt.f32.partialorder %v7960_v28, 0.0 }
 0x292   : > { %3884 = vmatmul.mubr.bf16.gmra.mrb[44].mxu1 %v3201_v31  ;;  %v7982_v20 = vmul.f32 %v7941_v22, %v7354_v8  ;;  %v9408_v55 = vpack.c.bf16 %v7418_v36, %v9407_v27  ;;  %v9410_v31 = vpack.c.bf16 %v7422_v23, %v9409_v54  ;;  %v7992_v1 = vmul.f32 %v7960_v28, %v7354_v8 }
 0x293   : > { %9404 = vst [vmem:[#allocation24_spill] sm:$0xff] %v7974_v16  ;;  %9405 = vst [vmem:[#allocation23_spill] sm:$0xff] %v7978_v56  ;;  %v9413_v37 = vpack.c.bf16 %v9411_v25, %v9412_v26  ;;  %v9414_v56 = vld [vmem:[#allocation50_spill] sm:$0xff]  ;;  %v8002_v36 = vadd.f32 %v2969_v30, %v7366_v11  ;;  %v5775_v23 = vadd.f32 %v2519_v12, %v7335_v0  ;;  %v9418_v12 = vld [vmem:[#allocation52_spill] sm:$0xff]  ;;  %vm3010_vm0 = vcmp.gt.f32.partialorder %v7765_v45, 0.0 }
 0x294   : > { %9406 = vst [vmem:[#allocation26_spill] sm:$0xff] %v7982_v20  ;;  %5588 = vmatpush1.bf16.msra.mxu0 %v9408_v55  ;;  %5716 = vmatpush1.bf16.msra.mxu1 %v9410_v31  ;;  %v9416_v16 = vpack.c.bf16 %v9414_v56, %v9415_v50  ;;  %v5774_v20 = vadd.f32 %v2517_v42, %v7362_v10  ;;  %v2977_v56 = vpop.f32.mrb[24].mxu1  ;;  %v9419_v25 = vld [vmem:[#allocation51_spill] sm:$0xff]  ;;  %vm3015_vm2 = vcmp.gt.f32.partialorder %v7825_v5, 0.0  ;;  %vm3019_vm3 = vcmp.gt.f32.partialorder %v7848_v59, 0.0 }
 0x295   : > { %5590 = vmatprep.subr.bf16.mxu0 %v9413_v37  ;;  %v5776_v27 = vadd.f32 %v2521_v29, %v7362_v10  ;;  %v3162_v55 = vsel %vm3033_vm6, %v5772_v60, %v3098_v17  ;;  %v3161_v54 = vsel %vm3032_vm5, %v5771_v6, %v3097_v3  ;;  %v8010_v31 = vmul.f32 %v7970_v14, %v7354_v8  ;;  %v9421_v60 = vld [vmem:[#allocation54_spill] sm:$0xff]  ;;  %v9422_v17 = vld [vmem:[#allocation53_spill] sm:$0xff] }
 0x296   : > { %5718 = vmatprep.subr.bf16.mxu1 %v9416_v16  ;;  %v8013_v50 = vadd.f32 %v2971_v39, %v7358_v9  ;;  %v3158_v42 = vsel %vm3029_vm7, %v5770_v15, %v3094_v62  ;;  %v3157_v30 = vsel %vm3028_vm4, %v5769_v2, %v3093_v49  ;;  %v2525_v16 = vpop.f32.mrb[24].mxu0  ;;  %v9420_v29 = vpack.c.bf16 %v9418_v12, %v9419_v25  ;;  %v9424_v15 = vld [vmem:[#allocation56_spill] sm:$0xff]  ;;  %v9425_v62 = vld [vmem:[#allocation55_spill] sm:$0xff]  ;;  %v9427_v49 = vld [vmem:[#allocation58_spill] sm:$0xff] }
 0x297   : > { %9417 = vst [vmem:[#allocation25_spill] sm:$0xff] %v8010_v31  ;;  %v9423_v6 = vpack.c.bf16 %v9421_v60, %v9422_v17  ;;  %v8024_v3 = vadd.f32 %v2973_v38, %v7366_v11  ;;  %v3206_v26 = vpack.c.bf16 %v3162_v55, %v3158_v42  ;;  %v3205_v39 = vpack.c.bf16 %v3161_v54, %v3157_v30  ;;  %v2527_v37 = vpop.f32.mrb[25].mxu0  ;;  %v2979_v31 = vpop.f32.mrb[25].mxu1 }
 0x298   : > { %5592 = vmatpush1.bf16.msra.mxu0 %v9420_v29  ;;  %v9426_v2 = vpack.c.bf16 %v9424_v15, %v9425_v62  ;;  %v9429_v52 = vpack.c.bf16 %v9427_v49, %v9428_v53  ;;  %v8033_v12 = vadd.f32 %v2525_v16, %v7335_v0  ;;  %v8036_v25 = vadd.f32 %v2977_v56, %v7358_v9  ;;  %v2529_v55 = vpop.f32.mrb[26].mxu0  ;;  %v2981_v54 = vpop.f32.mrb[26].mxu1  ;;  %v9436_v15 = vld [vmem:[#allocation62_spill] sm:$0xff]  ;;  %v9437_v62 = vld [vmem:[#allocation61_spill] sm:$0xff] }
 0x299   : > { %5720 = vmatpush1.bf16.msra.mxu1 %v9423_v6  ;;  %v8039_v38 = vadd.f32 %v2527_v37, %v7362_v10  ;;  %vm3037_vm8 = vcmp.gt.f32.partialorder %v5774_v20, 0.0  ;;  %v3102_v42 = vmul.f32 %v5774_v20, %v7354_v8  ;;  %v3106_v30 = vmul.f32 %v5776_v27, %v7354_v8  ;;  %3603 = vmatprep.mubr.bf16.mxu0 %v3206_v26  ;;  %v2983_v16 = vpop.f32.mrb[27].mxu1  ;;  %v9433_v6 = vld [vmem:[#allocation60_spill] sm:$0xff] }
 0x29a   : > { %5594 = vmatprep.subr.bf16.mxu0 %v9426_v2  ;;  %5722 = vmatprep.subr.bf16.mxu1 %v9429_v52  ;;  %v8044_v53 = vadd.f32 %v2979_v31, %v7366_v11  ;;  %v2531_v52 = vpop.f32.mrb[27].mxu0  ;;  %v8048_v56 = vmul.f32 %v8002_v36, %v7354_v8  ;;  %v3105_v29 = vmul.f32 %v5775_v23, %v7354_v8  ;;  %vm3041_vm9 = vcmp.gt.f32.partialorder %v5776_v27, 0.0 }
 0x29b   : > { %3893 = vmatprep.mubr.bf16.mxu1 %v3206_v26  ;;  %3604 = vmatmul.mubr.bf16.gmra.mrb[48].mxu0 %v3205_v39  ;;  %v8052_v60 = vadd.f32 %v2529_v55, %v7335_v0  ;;  %vm3040_vm10 = vcmp.gt.f32.partialorder %v5775_v23, 0.0  ;;  %v8056_v17 = vmul.f32 %v8013_v50, %v7354_v8  ;;  %v8060_v31 = vmul.f32 %v8024_v3, %v7354_v8  ;;  %v9434_v26 = vld [vmem:[#allocation59_spill] sm:$0xff] }
 0x29c   : > { %9430 = vst [vmem:[#allocation28_spill] sm:$0xff] %v8048_v56  ;;  %3894 = vmatmul.mubr.bf16.gmra.mrb[48].mxu1 %v3205_v39  ;;  %v9435_v37 = vpack.c.bf16 %v9433_v6, %v9434_v26  ;;  %v9438_v2 = vpack.c.bf16 %v9436_v15, %v9437_v62  ;;  %v8069_v39 = vadd.f32 %v2981_v54, %v7358_v9  ;;  %v9441_v6 = vld [vmem:[#allocation63_spill] sm:$0xff]  ;;  %v9444_v15 = vld [vmem:[#allocation65_spill] sm:$0xff]  ;;  %vm3045_vm14 = vcmp.gt.f32.partialorder %v8039_v38, 0.0 }
 0x29d   : > { %9431 = vst [vmem:[#allocation27_spill] sm:$0xff] %v8056_v17  ;;  %9432 = vst [vmem:[#allocation30_spill] sm:$0xff] %v8060_v31  ;;  %v8074_v49 = vmul.f32 %v8033_v12, %v7354_v8  ;;  %v8078_v55 = vmul.f32 %v8036_v25, %v7354_v8  ;;  %v9440_v17 = vld [vmem:[#allocation64_spill] sm:$0xff]  ;;  %v3110_v54 = vmul.f32 %v8039_v38, %v7354_v8  ;;  %vm3044_vm1 = vcmp.gt.f32.partialorder %v8033_v12, 0.0 }
 0x29e   : > { %5596 = vmatpush1.bf16.msra.mxu0 %v9435_v37  ;;  %5724 = vmatpush1.bf16.msra.mxu1 %v9438_v2  ;;  %v9442_v26 = vpack.c.bf16 %v9440_v17, %v9441_v6  ;;  %v9443_v37 = vld [vmem:[#allocation66_spill] sm:$0xff]  ;;  %v8090_v2 = vmul.f32 %v8044_v53, %v7354_v8  ;;  %v8093_v31 = vadd.f32 %v2531_v52, %v7362_v10  ;;  %v9451_v52 = vld [vmem:[#allocation69_spill] sm:$0xff]  ;;  %vm3048_vm4 = vcmp.gt.f32.partialorder %v8052_v60, 0.0 }
 0x29f   : > { %9439 = vst [vmem:[#allocation29_spill] sm:$0xff] %v8078_v55  ;;  %v9445_v62 = vpack.c.bf16 %v9443_v37, %v9444_v15  ;;  %v3166_v55 = vsel %vm3037_vm8, %v5774_v20, %v3102_v42  ;;  %v3170_v56 = vsel %vm3041_vm9, %v5776_v27, %v3106_v30  ;;  %v8099_v17 = vmul.f32 %v8052_v60, %v7354_v8  ;;  %v2535_v15 = vpop.f32.mrb[28].mxu0  ;;  %v9447_v20 = vld [vmem:[#allocation68_spill] sm:$0xff]  ;;  %v9448_v27 = vld [vmem:[#allocation67_spill] sm:$0xff]  ;;  %v9450_v30 = vld [vmem:[#allocation70_spill] sm:$0xff] }
 0x2a0   : > { %5598 = vmatprep.subr.bf16.mxu0 %v9442_v26  ;;  %9446 = vst [vmem:[#allocation32_spill] sm:$0xff] %v8090_v2  ;;  %v8102_v6 = vadd.f32 %v2983_v16, %v7366_v11  ;;  %v3210_v26 = vpack.c.bf16 %v3170_v56, %v3166_v55  ;;  %v3169_v37 = vsel %vm3040_vm10, %v5775_v23, %v3105_v29  ;;  %v2537_v29 = vpop.f32.mrb[29].mxu0  ;;  %vm3014_vm5 = vcmp.gt.f32.partialorder %v7821_v58, 0.0 }
 0x2a1   : > { %5726 = vmatprep.subr.bf16.mxu1 %v9445_v62  ;;  %v2987_v62 = vpop.f32.mrb[28].mxu1  ;;  %v9449_v42 = vpack.c.bf16 %v9447_v20, %v9448_v27  ;;  %v9452_v2 = vpack.c.bf16 %v9450_v30, %v9451_v52  ;;  %v8116_v16 = vmul.f32 %v8069_v39, %v7354_v8  ;;  %v3114_v23 = vmul.f32 %v8093_v31, %v7354_v8 }
 0x2a2   : > { %v3165_v56 = vsel %vm3036_vm11, %v7960_v28, %v7992_v1  ;;  %v2989_v55 = vpop.f32.mrb[29].mxu1  ;;  %3613 = vmatprep.mubr.bf16.mxu0 %v3210_v26  ;;  %3903 = vmatprep.mubr.bf16.mxu1 %v3210_v26  ;;  %v8128_v20 = vadd.f32 %v2535_v15, %v7335_v0  ;;  %v8131_v27 = vadd.f32 %v2987_v62, %v7358_v9  ;;  %v9454_v28 = vld [vmem:[#allocation72_spill] sm:$0xff]  ;;  %v9455_v1 = vld [vmem:[#allocation71_spill] sm:$0xff]  ;;  %v9457_v26 = vld [vmem:[#allocation74_spill] sm:$0xff]  ;;  %vm3049_vm7 = vcmp.gt.f32.partialorder %v8093_v31, 0.0 }
 0x2a3   : > { %5600 = vmatpush1.bf16.msra.mxu0 %v9449_v42  ;;  %5728 = vmatpush1.bf16.msra.mxu1 %v9452_v2  ;;  %9453 = vst [vmem:[#allocation31_spill] sm:$0xff] %v8116_v16  ;;  %v3209_v2 = vpack.c.bf16 %v3169_v37, %v3165_v56  ;;  %v2539_v42 = vpop.f32.mrb[30].mxu0  ;;  %v2991_v30 = vpop.f32.mrb[30].mxu1  ;;  %v9456_v52 = vpack.c.bf16 %v9454_v28, %v9455_v1  ;;  %v9458_v37 = vld [vmem:[#allocation73_spill] sm:$0xff]  ;;  %v9464_v1 = vld [vmem:[#allocation78_spill] sm:$0xff]  ;;  %vm3034_vm6 = vcmp.gt.f32.partialorder %v7938_v19, 0.0 }
 0x2a4   : > { %v9459_v56 = vpack.c.bf16 %v9457_v26, %v9458_v37  ;;  %v5782_v15 = vadd.f32 %v2537_v29, %v7362_v10  ;;  %v8144_v62 = vadd.f32 %v2989_v55, %v7366_v11  ;;  %v5783_v16 = vadd.f32 %v2539_v42, %v7335_v0  ;;  %v2541_v24 = vpop.f32.mrb[31].mxu0  ;;  %v2993_v48 = vpop.f32.mrb[31].mxu1  ;;  %v9461_v29 = vld [vmem:[#allocation76_spill] sm:$0xff]  ;;  %v9462_v55 = vld [vmem:[#allocation75_spill] sm:$0xff] }
 0x2a5   : > { %5602 = vmatprep.subr.bf16.mxu0 %v9456_v52  ;;  %v8152_v28 = vmul.f32 %v8102_v6, %v7354_v8  ;;  %3614 = vmatmul.mubr.bf16.gmra.mrb[52].mxu0 %v3209_v2  ;;  %vm3052_vm8 = vcmp.gt.f32.partialorder %v8128_v20, 0.0  ;;  %v3174_v0 = vsel %vm3045_vm14, %v8039_v38, %v3110_v54  ;;  %v9463_v42 = vpack.c.bf16 %v9461_v29, %v9462_v55  ;;  %v9465_v52 = vld [vmem:[#allocation77_spill] sm:$0xff]  ;;  %v9468_v37 = vld [vmem:[#allocation80_spill] sm:$0xff]  ;;  %v9471_v55 = vld [vmem:[#allocation82_spill] sm:$0xff] }
 0x2a6   : > { %5730 = vmatprep.subr.bf16.mxu1 %v9459_v56  ;;  %3904 = vmatmul.mubr.bf16.gmra.mrb[52].mxu1 %v3209_v2  ;;  %v9466_v26 = vpack.c.bf16 %v9464_v1, %v9465_v52  ;;  %v3117_v2 = vmul.f32 %v8128_v20, %v7354_v8  ;;  %v8171_v38 = vmul.f32 %v8131_v27, %v7354_v8  ;;  %vm3053_vm14 = vcmp.gt.f32.partialorder %v5782_v15, 0.0  ;;  %v9469_v56 = vld [vmem:[#allocation79_spill] sm:$0xff] }
 0x2a7   : > { %9460 = vst [vmem:[#allocation34_spill] sm:$0xff] %v8152_v28  ;;  %5604 = vmatpush1.bf16.msra.mxu0 %v9463_v42  ;;  %v3118_v54 = vmul.f32 %v5782_v15, %v7354_v8  ;;  %v9470_v29 = vpack.c.bf16 %v9468_v37, %v9469_v56  ;;  %v9472_v42 = vld [vmem:[#allocation81_spill] sm:$0xff]  ;;  %v8184_v52 = vmul.f32 %v8144_v62, %v7354_v8  ;;  %vm3056_vm10 = vcmp.gt.f32.partialorder %v5783_v16, 0.0 }
 0x2a8   : > { %5732 = vmatpush1.bf16.msra.mxu1 %v9466_v26  ;;  %9467 = vst [vmem:[#allocation33_spill] sm:$0xff] %v8171_v38  ;;  %v9473_v1 = vpack.c.bf16 %v9471_v55, %v9472_v42  ;;  %v8187_v26 = vadd.f32 %v2991_v30, %v7358_v9  ;;  %v5784_v38 = vadd.f32 %v2541_v24, %v7362_v10  ;;  %vm3039_vm9 = vcmp.gt.f32.partialorder %v8002_v36, 0.0  ;;  %v9486_v28 = vld [vmem:[#allocation89_spill] sm:$0xff] }
 0x2a9   : > { %5606 = vmatprep.subr.bf16.mxu0 %v9470_v29  ;;  %9474 = vst [vmem:[#allocation35_spill] sm:$0xff] %v8184_v52  ;;  %v3121_v37 = vmul.f32 %v5783_v16, %v7354_v8  ;;  %v8194_v56 = vadd.f32 %v2993_v48, %v7366_v11  ;;  %v3178_v29 = vsel %vm3049_vm7, %v8093_v31, %v3114_v23  ;;  %vm3038_vm7 = vcmp.gt.f32.partialorder %v7970_v14, 0.0  ;;  %v9476_v48 = vld [vmem:[#allocation84_spill] sm:$0xff]  ;;  %v9480_v23 = vld [vmem:[#allocation85_spill] sm:$0xff]  ;;  %v9485_v52 = vld [vmem:[#allocation90_spill] sm:$0xff] }
 0x2aa   : > { %5734 = vmatprep.subr.bf16.mxu1 %v9473_v1  ;;  %v3177_v9 = vsel %vm3048_vm4, %v8052_v60, %v8099_v17  ;;  %v8206_v10 = vmul.f32 %v8187_v26, %v7354_v8  ;;  %vm3057_vm11 = vcmp.gt.f32.partialorder %v5784_v38, 0.0  ;;  %v3122_v24 = vmul.f32 %v5784_v38, %v7354_v8  ;;  %v9477_v60 = vld [vmem:[#allocation83_spill] sm:$0xff]  ;;  %v9479_v17 = vld [vmem:[#allocation86_spill] sm:$0xff] }
 0x2ab   : > { %v3173_v11 = vsel %vm3044_vm1, %v8033_v12, %v8074_v49  ;;  %v9478_v31 = vpack.c.bf16 %v9476_v48, %v9477_v60  ;;  %v9481_v30 = vpack.c.bf16 %v9479_v17, %v9480_v23  ;;  %v8223_v55 = vmul.f32 %v8194_v56, %v7354_v8  ;;  %v9482_v12 = vld [vmem:[#allocation88_spill] sm:$0xff]  ;;  %v9483_v49 = vld [vmem:[#allocation87_spill] sm:$0xff] }
 0x2ac   : > { %9475 = vst [vmem:[#allocation37_spill] sm:$0xff] %v8206_v10  ;;  %v3214_v42 = vpack.c.bf16 %v3178_v29, %v3174_v0  ;;  %v3213_v1 = vpack.c.bf16 %v3177_v9, %v3173_v11  ;;  %v9484_v10 = vpack.c.bf16 %v9482_v12, %v9483_v49  ;;  %v9487_v48 = vpack.c.bf16 %v9485_v52, %v9486_v28  ;;  %v9506_v12 = vld [vmem:[#allocation19_spill] sm:$0xff] }
 0x2ad   : > { %5608 = vmatpush1.bf16.msra.mxu0 %v9478_v31  ;;  %5736 = vmatpush1.bf16.msra.mxu1 %v9481_v30  ;;  %v3182_v60 = vsel %vm3053_vm14, %v5782_v15, %v3118_v54  ;;  %v3186_v31 = vsel %vm3057_vm11, %v5784_v38, %v3122_v24  ;;  %v3181_v17 = vsel %vm3052_vm8, %v8128_v20, %v3117_v2  ;;  %vm3043_vm4 = vcmp.gt.f32.partialorder %v8024_v3, 0.0  ;;  %v9489_v2 = vld [vmem:[#allocation91_spill] sm:$0xff]  ;;  %v9492_v38 = vld [vmem:[#allocation93_spill] sm:$0xff]  ;;  %v9498_v24 = vld [vmem:[#allocation98_spill] sm:$0xff] }
 0x2ae   : > { %5610 = vmatprep.subr.bf16.mxu0 %v9484_v10  ;;  %5738 = vmatprep.subr.bf16.mxu1 %v9487_v48  ;;  %v3218_v0 = vpack.c.bf16 %v3186_v31, %v3182_v60  ;;  %v3185_v29 = vsel %vm3056_vm10, %v5783_v16, %v3121_v37  ;;  %v3192_v9 = vpack.c.bf16 %v7806_v43, %v7798_v40  ;;  %vm3046_vm1 = vcmp.gt.f32.partialorder %v8036_v25, 0.0  ;;  %v9488_v16 = vld [vmem:[#allocation92_spill] sm:$0xff]  ;;  %v9491_v43 = vld [vmem:[#allocation94_spill] sm:$0xff]  ;;  %v9497_v10 = vld [vmem:[#allocation99_spill] sm:$0xff] }
 0x2af   : > { %3623 = vmatprep.mubr.bf16.mxu0 %v3214_v42  ;;  %3913 = vmatprep.mubr.bf16.mxu1 %v3214_v42  ;;  %v3217_v15 = vpack.c.bf16 %v3185_v29, %v3181_v17  ;;  %v3136_v20 = vsel %vm3007_vm12, %v7761_v44, %v7802_v7  ;;  %v3140_v28 = vsel %vm3011_vm13, %v7769_v46, %v7814_v32  ;;  %vm3047_vm8 = vcmp.gt.f32.partialorder %v8044_v53, 0.0  ;;  %v9494_v46 = vld [vmem:[#allocation96_spill] sm:$0xff]  ;;  %v9495_v32 = vld [vmem:[#allocation95_spill] sm:$0xff]  ;;  %v9500_v30 = vld [vmem:[#allocation17_spill] sm:$0xff] }
 0x2b0   : > { %3624 = vmatmul.mubr.bf16.gmra.mrb[56].mxu0 %v3213_v1  ;;  %3914 = vmatmul.mubr.bf16.gmra.mrb[56].mxu1 %v3213_v1  ;;  %v9490_v40 = vpack.c.bf16 %v9488_v16, %v9489_v2  ;;  %v9493_v54 = vpack.c.bf16 %v9491_v43, %v9492_v38  ;;  %v8256_v52 = vpack.c.bf16 %v3140_v28, %v3136_v20  ;;  %vm3050_vm12 = vcmp.gt.f32.partialorder %v8069_v39, 0.0  ;;  %v9502_v42 = vld [vmem:[#allocation18_spill] sm:$0xff]  ;;  %v9511_v48 = vld [vmem:[#allocation103_spill] sm:$0xff]  ;;  %v9514_v17 = vld [vmem:[#allocation21_spill] sm:$0xff] }
 0x2b1   : > { %v3135_v7 = vsel %vm3006_vm15, %v7743_v33, %v7786_v41  ;;  %v3139_v44 = vsel %vm3010_vm0, %v7765_v45, %v7810_v34  ;;  %v9496_v37 = vpack.c.bf16 %v9494_v46, %v9495_v32  ;;  %v9499_v11 = vpack.c.bf16 %v9497_v10, %v9498_v24  ;;  %3633 = vmatprep.mubr.bf16.mxu0 %v3218_v0  ;;  %v9512_v60 = vld [vmem:[#allocation102_spill] sm:$0xff]  ;;  %v9518_v29 = vld [vmem:[#allocation105_spill] sm:$0xff]  ;;  %v9519_v20 = vld [vmem:[#allocation104_spill] sm:$0xff] }
 0x2b2   : > { %5612 = vmatpush1.bf16.msra.mxu0 %v9490_v40  ;;  %5740 = vmatpush1.bf16.msra.mxu1 %v9493_v54  ;;  %v8273_v23 = vpack.c.bf16 %v3139_v44, %v3135_v7  ;;  %v3144_v33 = vsel %vm3015_vm2, %v7825_v5, %v7885_v61  ;;  %v3148_v45 = vsel %vm3019_vm3, %v7848_v59, %v7893_v21  ;;  %vm3051_vm13 = vcmp.gt.f32.partialorder %v8102_v6, 0.0  ;;  %v9504_v21 = vld [vmem:[#allocation20_spill] sm:$0xff]  ;;  %v9521_v16 = vld [vmem:[#allocation107_spill] sm:$0xff]  ;;  %v9522_v2 = vld [vmem:[#allocation106_spill] sm:$0xff] }
 0x2b3   : > { %5614 = vmatprep.subr.bf16.mxu0 %v9496_v37  ;;  %5742 = vmatprep.subr.bf16.mxu1 %v9499_v11  ;;  %v8284_v41 = vpack.c.bf16 %v3148_v45, %v3144_v33  ;;  %v3143_v34 = vsel %vm3014_vm5, %v7821_v58, %v7871_v47  ;;  %vm9501_vm15 = vcmp.gt.f32.partialorder %v7844_v57, 0.0  ;;  %vm9503_vm0 = vcmp.gt.f32.partialorder %v7856_v35, 0.0  ;;  %v9509_v47 = vld [vmem:[#allocation100_spill] sm:$0xff]  ;;  %v9524_v38 = vld [vmem:[#allocation26_spill] sm:$0xff]  ;;  %v9528_v44 = vld [vmem:[#allocation23_spill] sm:$0xff] }
 0x2b4   : > { %3923 = vmatprep.mubr.bf16.mxu1 %v3218_v0  ;;  %v3147_v5 = vsel %vm9501_vm15, %v7844_v57, %v9500_v30  ;;  %v3152_v59 = vsel %vm9503_vm0, %v7856_v35, %v9502_v42  ;;  %vm9505_vm2 = vcmp.gt.f32.partialorder %v7875_v51, 0.0  ;;  %vm9507_vm3 = vcmp.gt.f32.partialorder %v7852_v4, 0.0  ;;  %v9508_v57 = vld [vmem:[#allocation101_spill] sm:$0xff]  ;;  %v9516_v0 = vld [vmem:[#allocation24_spill] sm:$0xff]  ;;  %v9526_v54 = vld [vmem:[#allocation22_spill] sm:$0xff] }
 0x2b5   : > { %v8294_v61 = vpack.c.bf16 %v3147_v5, %v3143_v34  ;;  %v3156_v1 = vsel %vm9505_vm2, %v7875_v51, %v9504_v21  ;;  %v3151_v58 = vsel %vm9507_vm3, %v7852_v4, %v9506_v12  ;;  %vm3054_vm5 = vcmp.gt.f32.partialorder %v8131_v27, 0.0  ;;  %v9529_v32 = vld [vmem:[#allocation28_spill] sm:$0xff]  ;;  %v9530_v10 = vld [vmem:[#allocation30_spill] sm:$0xff]  ;;  %v9531_v11 = vld [vmem:[#allocation25_spill] sm:$0xff] }
 0x2b6   : > { %v9510_v49 = vpack.c.bf16 %v9508_v57, %v9509_v47  ;;  %v9513_v31 = vpack.c.bf16 %v9511_v48, %v9512_v60  ;;  %v8315_v35 = vpack.c.bf16 %v3156_v1, %v3152_v59  ;;  %vm9515_vm10 = vcmp.gt.f32.partialorder %v7867_v18, 0.0  ;;  %v9533_v33 = vld [vmem:[#allocation108_spill] sm:$0xff]  ;;  %v9538_v5 = vld [vmem:[#allocation34_spill] sm:$0xff]  ;;  %v9539_v42 = vld [vmem:[#allocation111_spill] sm:$0xff] }
 0x2b7   : > { %v3155_v51 = vsel %vm9515_vm10, %v7867_v18, %v9514_v17  ;;  %vm9517_vm11 = vcmp.gt.f32.partialorder %v7935_v63, 0.0  ;;  %vm3055_vm14 = vcmp.gt.f32.partialorder %v8144_v62, 0.0  ;;  %v9520_v28 = vpack.c.bf16 %v9518_v29, %v9519_v20  ;;  %v9537_v34 = vld [vmem:[#allocation32_spill] sm:$0xff]  ;;  %v9540_v59 = vld [vmem:[#allocation110_spill] sm:$0xff]  ;;  %v9543_v57 = vld [vmem:[#allocation113_spill] sm:$0xff] }
 0x2b8   : > { %5616 = vmatpush1.bf16.msra.mxu0 %v9510_v49  ;;  %5744 = vmatpush1.bf16.msra.mxu1 %v9513_v31  ;;  %v3160_v4 = vsel %vm9517_vm11, %v7935_v63, %v9516_v0  ;;  %v9523_v40 = vpack.c.bf16 %v9521_v16, %v9522_v2  ;;  %v8332_v43 = vpack.c.bf16 %v3155_v51, %v3151_v58  ;;  %vm9525_vm15 = vcmp.gt.f32.partialorder %v7941_v22, 0.0  ;;  %v9544_v47 = vld [vmem:[#allocation112_spill] sm:$0xff]  ;;  %v9547_v48 = vld [vmem:[#allocation114_spill] sm:$0xff]  ;;  %v9549_v31 = vld [vmem:[#allocation31_spill] sm:$0xff] }
 0x2b9   : > { %5618 = vmatprep.subr.bf16.mxu0 %v9520_v28  ;;  %v3164_v18 = vsel %vm9525_vm15, %v7941_v22, %v9524_v38  ;;  %vm9527_vm0 = vcmp.gt.f32.partialorder %v7929_v13, 0.0  ;;  %v3163_v46 = vsel %vm3034_vm6, %v7938_v19, %v9528_v44  ;;  %v3168_v37 = vsel %vm3039_vm9, %v8002_v36, %v9529_v32  ;;  %3634 = vmatmul.mubr.bf16.gmra.mrb[60].mxu0 %v3217_v15  ;;  %v9532_v36 = vld [vmem:[#allocation109_spill] sm:$0xff]  ;;  %v9550_v17 = vld [vmem:[#allocation35_spill] sm:$0xff]  ;;  %v6646_v0 = vld [vmem:[#allocation9 + $0xc0] sm:$0xff]  }
 0x2ba   : > { %5746 = vmatprep.subr.bf16.mxu1 %v9523_v40  ;;  %v3159_v63 = vsel %vm9527_vm0, %v7929_v13, %v9526_v54  ;;  %v8342_v7 = vpack.c.bf16 %v3164_v18, %v3160_v4  ;;  %v3172_v22 = vsel %vm3043_vm4, %v8024_v3, %v9530_v10  ;;  %vm3059_vm2 = vcmp.gt.f32.partialorder %v8194_v56, 0.0  ;;  %3924 = vmatmul.mubr.bf16.gmra.mrb[60].mxu1 %v3217_v15  ;;  %v9535_v3 = vld [vmem:[#allocation27_spill] sm:$0xff]  ;;  %v9551_v20 = vld [vmem:[#allocation33_spill] sm:$0xff]  ;;  %v9554_v2 = vld [vmem:[#allocation116_spill] sm:$0xff] }
 0x2bb   : > { %v8357_v13 = vpack.c.bf16 %v3163_v46, %v3159_v63  ;;  %v8359_v24 = vpack.c.bf16 %v3172_v22, %v3168_v37  ;;  %v3167_v19 = vsel %vm3038_vm7, %v7970_v14, %v9531_v11  ;;  %vm3058_vm6 = vcmp.gt.f32.partialorder %v8187_v26, 0.0  ;;  %3708 = vmatprep.mubr.bf16.mxu0 %v3192_v9  ;;  %3998 = vmatprep.mubr.bf16.mxu1 %v3192_v9  ;;  %v9552_v28 = vld [vmem:[#allocation37_spill] sm:$0xff]  ;;  %v9557_v38 = vld [vmem:[#allocation118_spill] sm:$0xff]  ;;  %v6645_v54 = vld [vmem:[#allocation9] sm:$0xff]  }
 0x2bc   : > { %v9534_v45 = vpack.c.bf16 %v9532_v36, %v9533_v33  ;;  %vm9536_vm9 = vcmp.gt.f32.partialorder %v8013_v50, 0.0  ;;  %v3176_v30 = vsel %vm3047_vm8, %v8044_v53, %v9537_v34  ;;  %v3180_v14 = vsel %vm3051_vm13, %v8102_v6, %v9538_v5  ;;  %v6644_v53 = vld [vmem:[#allocation9 + $0x40] sm:$0xff]   ;;  %v9546_v6 = vld [vmem:[#allocation115_spill] sm:$0xff]  ;;  %v9553_v16 = vld [vmem:[#allocation117_spill] sm:$0xff] }
 0x2bd   : > { %v3171_v15 = vsel %vm9536_vm9, %v8013_v50, %v9535_v3  ;;  %v9541_v21 = vpack.c.bf16 %v9539_v42, %v9540_v59  ;;  %v8386_v12 = vpack.c.bf16 %v3180_v14, %v3176_v30  ;;  %v9542_v50 = vld [vmem:[#allocation29_spill] sm:$0xff]  ;;  %v9545_v49 = vpack.c.bf16 %v9543_v57, %v9544_v47  ;;  %v6647_v63 = vld [vmem:[#allocation9 + $0x80] sm:$0xff]   ;;  %v6652_v37 = vld [vmem:[#allocation9 + $0x50] sm:$0xff]  }
 0x2be   : > { %5620 = vmatpush1.bf16.msra.mxu0 %v9534_v45  ;;  %v8384_v1 = vpack.c.bf16 %v3171_v15, %v3167_v19  ;;  %v3175_v58 = vsel %vm3046_vm1, %v8036_v25, %v9542_v50  ;;  %v9548_v60 = vpack.c.bf16 %v9546_v6, %v9547_v48  ;;  %v3179_v9 = vsel %vm3050_vm12, %v8069_v39, %v9549_v31  ;;  %v9559_v44 = vld [vmem:[#allocation97_spill] sm:$0xff]  ;;  %v6654_v10 = vld [vmem:[#allocation9 + $0xd0] sm:$0xff]   ;;  %v6656_v19 = vld [vmem:[#allocation9 + $0x58] sm:$0xff]  }
 0x2bf   : > { %5748 = vmatpush1.bf16.msra.mxu1 %v9541_v21  ;;  %5622 = vmatprep.subr.bf16.mxu0 %v9545_v49  ;;  %v3184_v51 = vsel %vm3055_vm14, %v8144_v62, %v9550_v17  ;;  %v3188_v25 = vsel %vm3059_vm2, %v8194_v56, %v8223_v55  ;;  %v8410_v4 = vpack.c.bf16 %v3179_v9, %v3175_v58  ;;  %v9556_v55 = vld [vmem:[#allocation119_spill] sm:$0xff]  ;;  %v6650_v46 = vld [vmem:[#allocation9 + $0xc8] sm:$0xff]   ;;  %v6653_v22 = vld [vmem:[#allocation9 + $0x10] sm:$0xff]  }
 0x2c0   : > { %5750 = vmatprep.subr.bf16.mxu1 %v9548_v60  ;;  %v8412_v29 = vpack.c.bf16 %v3188_v25, %v3184_v51  ;;  %v3183_v39 = vsel %vm3054_vm5, %v8131_v27, %v9551_v20  ;;  %v3187_v62 = vsel %vm3058_vm6, %v8187_v26, %v9552_v28  ;;  %v9555_v40 = vpack.c.bf16 %v9553_v16, %v9554_v2  ;;  %v6648_v27 = vld [vmem:[#allocation9 + $0x48] sm:$0xff]   ;;  %v6655_v11 = vld [vmem:[#allocation9 + $0x90] sm:$0xff]   ;;  %v6658_v36 = vld [vmem:[#allocation9 + $0xd8] sm:$0xff]  }
 0x2c1   : > { %v8425_v56 = vpack.c.bf16 %v3187_v62, %v3183_v39  ;;  %v9558_v18 = vpack.c.bf16 %v9556_v55, %v9557_v38  ;;  %v6649_v26 = vld [vmem:[#allocation9 + $0x8] sm:$0xff]   ;;  %v6659_v33 = vld [vmem:[#allocation9 + $0x98] sm:$0xff]   ;;  %v6660_v45 = vld [vmem:[#allocation9 + $0x60] sm:$0xff]  }
 0x2c2   : > { %5624 = vmatpush1.bf16.msra.mxu0 %v9555_v40  ;;  %v6651_v32 = vld [vmem:[#allocation9 + $0x88] sm:$0xff]   ;;  %v6662_v3 = vld [vmem:[#allocation9 + $0xe0] sm:$0xff]   ;;  %v6668_v14 = vld [vmem:[#allocation9 + $0x70] sm:$0xff]  }
 0x2c3   : > { %5752 = vmatpush1.bf16.msra.mxu1 %v9558_v18  ;;  %5369 = vmatprep.subr.bf16.mxu0 %v6644_v53  ;;  %v6661_v15 = vld [vmem:[#allocation9 + $0x20] sm:$0xff]   ;;  %v6664_v30 = vld [vmem:[#allocation9 + $0x68] sm:$0xff]   ;;  %v6670_v42 = vld [vmem:[#allocation9 + $0xf0] sm:$0xff]  }
 0x2c4   : > { %5433 = vmatprep.subr.bf16.mxu1 %v6646_v0  ;;  %v6663_v34 = vld [vmem:[#allocation9 + $0xa0] sm:$0xff]   ;;  %v6667_v5 = vld [vmem:[#allocation9 + $0xa8] sm:$0xff]   ;;  %v6669_v59 = vld [vmem:[#allocation9 + $0x30] sm:$0xff]  }
 0x2c5   : > { %3709 = vmatmul.mubr.bf16.vlgmr.msra.gmra.mrb[32].mxu0 %v9559_v44  ;;  %v6671_v21 = vld [vmem:[#allocation9 + $0xb0] sm:$0xff]  }
 0x2c6   : > { %3999 = vmatmul.mubr.bf16.vlgmr.msra.gmra.mrb[32].mxu1 %v9559_v44  ;;  %3718 = vmatprep.mubr.bf16.mxu0 %v8256_v52 }
 0x2c7   : > { %4008 = vmatprep.mubr.bf16.mxu1 %v8256_v52  ;;  %5370 = vmatpush3.bf16.msra.mxu0 %v6645_v54  ;;  %v6657_v52 = vld [vmem:[#allocation9 + $0x18] sm:$0xff]  }
 0x2c8   : > { %5434 = vmatpush3.bf16.msra.mxu1 %v6647_v63  ;;  %5371 = vmatprep.subr.bf16.mxu0 %v6648_v27 }
 0x2c9   : > { %5435 = vmatprep.subr.bf16.mxu1 %v6650_v46 }
 0x2cb   : > { %5372 = vmatpush3.bf16.msra.mxu0 %v6649_v26 }
 0x2cc   : > { %5436 = vmatpush3.bf16.msra.mxu1 %v6651_v32  ;;  %5373 = vmatprep.subr.bf16.mxu0 %v6652_v37 }
 0x2cd   : > { %3719 = vmatmul.mubr.bf16.gmra.mrb[36].mxu0 %v8273_v23  ;;  %5437 = vmatprep.subr.bf16.mxu1 %v6654_v10 }
 0x2ce   : > { %4009 = vmatmul.mubr.bf16.gmra.mrb[36].mxu1 %v8273_v23  ;;  %3728 = vmatprep.mubr.bf16.mxu0 %v8284_v41  ;;  %v6666_v23 = vld [vmem:[#allocation9 + $0xe8] sm:$0xff]  }
 0x2cf   : > { %4018 = vmatprep.mubr.bf16.mxu1 %v8284_v41  ;;  %5374 = vmatpush3.bf16.msra.mxu0 %v6653_v22  ;;  %v6665_v41 = vld [vmem:[#allocation9 + $0x28] sm:$0xff]  }
 0x2d0   : > { %5438 = vmatpush3.bf16.msra.mxu1 %v6655_v11  ;;  %5375 = vmatprep.subr.bf16.mxu0 %v6656_v19 }
 0x2d1   : > { %5439 = vmatprep.subr.bf16.mxu1 %v6658_v36 }
 0x2d3   : > { %5376 = vmatpush3.bf16.msra.mxu0 %v6657_v52 }
 0x2d4   : > { %5440 = vmatpush3.bf16.msra.mxu1 %v6659_v33  ;;  %5377 = vmatprep.subr.bf16.mxu0 %v6660_v45 }
 0x2d5   : > { %3729 = vmatmul.mubr.bf16.gmra.mrb[40].mxu0 %v8294_v61  ;;  %5441 = vmatprep.subr.bf16.mxu1 %v6662_v3 }
 0x2d6   : > { %4019 = vmatmul.mubr.bf16.gmra.mrb[40].mxu1 %v8294_v61  ;;  %3738 = vmatprep.mubr.bf16.mxu0 %v8315_v35  ;;  %v6672_v61 = vld [vmem:[#allocation9 + $0x78] sm:$0xff]  }
 0x2d7   : > { %4028 = vmatprep.mubr.bf16.mxu1 %v8315_v35  ;;  %5378 = vmatpush3.bf16.msra.mxu0 %v6661_v15  ;;  %v6673_v35 = vld [vmem:[#allocation9 + $0x38] sm:$0xff]  }
 0x2d8   : > { %5442 = vmatpush3.bf16.msra.mxu1 %v6663_v34  ;;  %5379 = vmatprep.subr.bf16.mxu0 %v6664_v30 }
 0x2d9   : > { %5443 = vmatprep.subr.bf16.mxu1 %v6666_v23 }
 0x2db   : > { %5380 = vmatpush3.bf16.msra.mxu0 %v6665_v41 }
 0x2dc   : > { %5444 = vmatpush3.bf16.msra.mxu1 %v6667_v5  ;;  %5381 = vmatprep.subr.bf16.mxu0 %v6668_v14 }
 0x2dd   : > { %3739 = vmatmul.mubr.bf16.gmra.mrb[44].mxu0 %v8332_v43  ;;  %5445 = vmatprep.subr.bf16.mxu1 %v6670_v42 }
 0x2de   : > { %4029 = vmatmul.mubr.bf16.gmra.mrb[44].mxu1 %v8332_v43  ;;  %3748 = vmatprep.mubr.bf16.mxu0 %v8342_v7  ;;  %v6674_v43 = vld [vmem:[#allocation9 + $0xf8] sm:$0xff]  }
 0x2df   : > { %4038 = vmatprep.mubr.bf16.mxu1 %v8342_v7  ;;  %5382 = vmatpush3.bf16.msra.mxu0 %v6669_v59  ;;  %v6675_v7 = vld [vmem:[#allocation9 + $0xb8] sm:$0xff]  }
 0x2e0   : > { %5446 = vmatpush3.bf16.msra.mxu1 %v6671_v21  ;;  %5383 = vmatprep.subr.bf16.mxu0 %v6672_v61 }
 0x2e1   : > { %5447 = vmatprep.subr.bf16.mxu1 %v6674_v43 }
 0x2e3   : > { %5384 = vmatpush3.bf16.msra.mxu0 %v6673_v35 }
 0x2e4   : > { %5448 = vmatpush3.bf16.msra.mxu1 %v6675_v7 }
 0x2e5   : > { %3749 = vmatmul.mubr.bf16.gmra.mrb[48].mxu0 %v8357_v13 }
 0x2e6   : > { %4039 = vmatmul.mubr.bf16.gmra.mrb[48].mxu1 %v8357_v13  ;;  %3758 = vmatprep.mubr.bf16.mxu0 %v8359_v24  ;;  %v3477_v13 = vld [vmem:[%s9109_s4] sm:$0xf] }
 0x2e7   : > { %4048 = vmatprep.mubr.bf16.mxu1 %v8359_v24  ;;  %v9560_v24 = vld [vmem:[#allocation16_spill] sm:$0xff] }
 0x2e8   : > { %v9562_v50 = vsub.s32 2, %v9560_v24  ;;  %v9563_v49 = vsub.s32 1, %v9560_v24  ;;  %v9564_v17 = vsub.s32 3, %v9560_v24 }
 0x2ea   : > { %v8469_v58 = vrot.slane %v3477_v13, %v9562_v50  ;;  %v8474_v6 = vrot.slane %v3477_v13, %v9563_v49  ;;  %v8479_v51 = vrot.slane %v3477_v13, %v9564_v17 }
 0x2ed   : > { %3759 = vmatmul.mubr.bf16.gmra.mrb[52].mxu0 %v8384_v1 }
 0x2ee   : > { %4049 = vmatmul.mubr.bf16.gmra.mrb[52].mxu1 %v8384_v1  ;;  %3768 = vmatprep.mubr.bf16.mxu0 %v8386_v12  ;;  %v9561_v1 = vsub.s32 0, %v9560_v24 }
 0x2ef   : > { %4058 = vmatprep.mubr.bf16.mxu1 %v8386_v12 }
 0x2f0   : > { %v8465_v12 = vrot.slane %v3477_v13, %v9561_v1 }
 0x2f5   : > { %3769 = vmatmul.mubr.bf16.gmra.mrb[56].mxu0 %v8410_v4 }
 0x2f6   : > { %4059 = vmatmul.mubr.bf16.gmra.mrb[56].mxu1 %v8410_v4  ;;  %3778 = vmatprep.mubr.bf16.mxu0 %v8412_v29 }
 0x2f7   : > { %4068 = vmatprep.mubr.bf16.mxu1 %v8412_v29 }
 0x2fd   : > { %3779 = vmatmul.mubr.bf16.gmra.mrb[60].mxu0 %v8425_v56 }
 0x2fe   : > { %4069 = vmatmul.mubr.bf16.gmra.mrb[60].mxu1 %v8425_v56 }
 0x398   : > { %v3710_v53 = vpop.f32.mrb[32].mxu0 }
 0x399   : > { %v5817_v57 = vadd.f32 %v3710_v53, %v8465_v12  ;;  %v4000_v47 = vpop.f32.mrb[32].mxu1  ;;  %v3712_v48 = vpop.f32.mrb[33].mxu0 }
 0x39a   : > { %v5849_v60 = vadd.f32 %v4000_v47, %v8469_v58  ;;  %v4002_v31 = vpop.f32.mrb[33].mxu1  ;;  %v3714_v9 = vpop.f32.mrb[34].mxu0  ;;  %v5818_v39 = vadd.f32 %v3712_v48, %v8474_v6 }
 0x39b   : > { %v5819_v25 = vadd.f32 %v3714_v9, %v8465_v12  ;;  %v4004_v0 = vpop.f32.mrb[34].mxu1  ;;  %v3716_v4 = vpop.f32.mrb[35].mxu0  ;;  %v4143_v29 = vmul.f32 %v5817_v57, %v7354_v8  ;;  %vm4079_vm7 = vcmp.gt.f32.partialorder %v5817_v57, 0.0  ;;  %v5850_v40 = vadd.f32 %v4002_v31, %v8479_v51 }
 0x39c   : > { %v4006_v20 = vpop.f32.mrb[35].mxu1  ;;  %v4145_v28 = vmul.f32 %v5849_v60, %v7354_v8  ;;  %v5851_v16 = vadd.f32 %v4004_v0, %v8469_v58  ;;  %v5820_v2 = vadd.f32 %v3716_v4, %v8474_v6  ;;  %vm4081_vm4 = vcmp.gt.f32.partialorder %v5849_v60, 0.0 }
 0x39d   : > { %vm4083_vm1 = vcmp.gt.f32.partialorder %v5819_v25, 0.0  ;;  %v4147_v62 = vmul.f32 %v5819_v25, %v7354_v8  ;;  %v5852_v56 = vadd.f32 %v4006_v20, %v8479_v51  ;;  %v4207_v55 = vsel %vm4079_vm7, %v5817_v57, %v4143_v29 }
 0x39e   : > { %vm4085_vm8 = vcmp.gt.f32.partialorder %v5851_v16, 0.0  ;;  %v4149_v18 = vmul.f32 %v5851_v16, %v7354_v8  ;;  %vm4084_vm12 = vcmp.gt.f32.partialorder %v5820_v2, 0.0  ;;  %v4148_v27 = vmul.f32 %v5820_v2, %v7354_v8 }
 0x39f   : > { %v4211_v38 = vsel %vm4083_vm1, %v5819_v25, %v4147_v62  ;;  %v4209_v26 = vsel %vm4081_vm4, %v5849_v60, %v4145_v28  ;;  %v4144_v32 = vmul.f32 %v5818_v39, %v7354_v8  ;;  %vm4080_vm13 = vcmp.gt.f32.partialorder %v5818_v39, 0.0 }
 0x3a0   : > { %v3720_v54 = vpop.f32.mrb[36].mxu0  ;;  %v4271_v63 = vpack.c.bf16 %v4211_v38, %v4207_v55  ;;  %v4213_v37 = vsel %vm4085_vm8, %v5851_v16, %v4149_v18  ;;  %v4150_v19 = vmul.f32 %v5852_v56, %v7354_v8  ;;  %v4146_v33 = vmul.f32 %v5850_v40, %v7354_v8 }
 0x3a1   : > { %v4010_v44 = vpop.f32.mrb[36].mxu1  ;;  %v3722_v46 = vpop.f32.mrb[37].mxu0  ;;  %v4273_v11 = vpack.c.bf16 %v4213_v37, %v4209_v26  ;;  %vm4086_vm3 = vcmp.gt.f32.partialorder %v5852_v56, 0.0  ;;  %v8496_v45 = vadd.f32 %v3720_v54, %v8465_v12  ;;  %v4212_v15 = vsel %vm4084_vm12, %v5820_v2, %v4148_v27 }
 0x3a2   : > { %v4012_v10 = vpop.f32.mrb[37].mxu1  ;;  %v3724_v22 = vpop.f32.mrb[38].mxu0  ;;  %vm4082_vm5 = vcmp.gt.f32.partialorder %v5850_v40, 0.0  ;;  %v5822_v34 = vadd.f32 %v3722_v46, %v8474_v6  ;;  %v8501_v30 = vadd.f32 %v4010_v44, %v8469_v58  ;;  %v4208_v5 = vsel %vm4080_vm13, %v5818_v39, %v4144_v32 }
 0x3a3   : > { %v4014_v36 = vpop.f32.mrb[38].mxu1  ;;  %v3726_v52 = vpop.f32.mrb[39].mxu0  ;;  %v5854_v23 = vadd.f32 %v4012_v10, %v8479_v51  ;;  %v5823_v14 = vadd.f32 %v3724_v22, %v8465_v12  ;;  %v4272_v59 = vpack.c.bf16 %v4212_v15, %v4208_v5  ;;  %v4214_v21 = vsel %vm4086_vm3, %v5852_v56, %v4150_v19 }
 0x3a4   : > { %v4016_v3 = vpop.f32.mrb[39].mxu1  ;;  %v5824_v41 = vadd.f32 %v3726_v52, %v8474_v6  ;;  %vm4087_vm10 = vcmp.gt.f32.partialorder %v8496_v45, 0.0  ;;  %v4210_v35 = vsel %vm4082_vm5, %v5850_v40, %v4146_v33  ;;  %v4151_v7 = vmul.f32 %v8496_v45, %v7354_v8 }
 0x3a5   : > { %v5856_v42 = vadd.f32 %v4016_v3, %v8479_v51  ;;  %v4152_v13 = vmul.f32 %v5822_v34, %v7354_v8  ;;  %v5855_v24 = vadd.f32 %v4014_v36, %v8469_v58  ;;  %4598 = vmatprep.mubr.bf16.mxu0 %v4272_v59  ;;  %v4274_v1 = vpack.c.bf16 %v4214_v21, %v4210_v35 }
 0x3a6   : > { %vm4092_vm11 = vcmp.gt.f32.partialorder %v5824_v41, 0.0  ;;  %v4156_v61 = vmul.f32 %v5824_v41, %v7354_v8  ;;  %vm4089_vm14 = vcmp.gt.f32.partialorder %v8501_v30, 0.0  ;;  %vm4088_vm15 = vcmp.gt.f32.partialorder %v5822_v34, 0.0  ;;  %4599 = vmatmul.mubr.bf16.vlgmr.msra.gmra.mrb[64].mxu0 %v4271_v63 }
 0x3a7   : > { %v4154_v57 = vmul.f32 %v5854_v23, %v7354_v8  ;;  %vm4090_vm0 = vcmp.gt.f32.partialorder %v5854_v23, 0.0  ;;  %v4155_v60 = vmul.f32 %v5823_v14, %v7354_v8  ;;  %v4158_v31 = vmul.f32 %v5856_v42, %v7354_v8  ;;  %4695 = vmatprep.mubr.bf16.mxu1 %v4274_v1 }
 0x3a8   : > { %v3730_v43 = vpop.f32.mrb[40].mxu0  ;;  %v4220_v25 = vsel %vm4092_vm11, %v5824_v41, %v4156_v61  ;;  %vm4091_vm2 = vcmp.gt.f32.partialorder %v5823_v14, 0.0  ;;  %vm4094_vm6 = vcmp.gt.f32.partialorder %v5856_v42, 0.0  ;;  %4696 = vmatmul.mubr.bf16.vlgmr.msra.gmra.mrb[64].mxu1 %v4273_v11  ;;  %v4153_v20 = vmul.f32 %v8501_v30, %v7354_v8 }
 0x3a9   : > { %v4020_v50 = vpop.f32.mrb[40].mxu1  ;;  %v3732_v53 = vpop.f32.mrb[41].mxu0  ;;  %v8516_v47 = vadd.f32 %v3730_v43, %v8465_v12  ;;  %vm4093_vm9 = vcmp.gt.f32.partialorder %v5855_v24, 0.0  ;;  %v4157_v39 = vmul.f32 %v5855_v24, %v7354_v8  ;;  %v4216_v28 = vsel %vm4088_vm15, %v5822_v34, %v4152_v13 }
 0x3aa   : > { %v4022_v49 = vpop.f32.mrb[41].mxu1  ;;  %v3734_v48 = vpop.f32.mrb[42].mxu0  ;;  %v8522_v0 = vadd.f32 %v4020_v50, %v8469_v58  ;;  %v8525_v4 = vadd.f32 %v3732_v53, %v8474_v6  ;;  %v4276_v2 = vpack.c.bf16 %v4220_v25, %v4216_v28  ;;  %v4218_v40 = vsel %vm4090_vm0, %v5854_v23, %v4154_v57 }
 0x3ab   : > { %v4024_v9 = vpop.f32.mrb[42].mxu1  ;;  %v3736_v17 = vpop.f32.mrb[43].mxu0  ;;  %v8533_v62 = vmul.f32 %v8516_v47, %v7354_v8  ;;  %vm4095_vm7 = vcmp.gt.f32.partialorder %v8516_v47, 0.0  ;;  %v5858_v56 = vadd.f32 %v4022_v49, %v8479_v51  ;;  %v8540_v55 = vadd.f32 %v3734_v48, %v8465_v12 }
 0x3ac   : > { %v4026_v29 = vpop.f32.mrb[43].mxu1  ;;  %v5828_v16 = vadd.f32 %v3736_v17, %v8474_v6  ;;  %v4222_v38 = vsel %vm4094_vm6, %v5856_v42, %v4158_v31  ;;  %v4219_v18 = vsel %vm4091_vm2, %v5823_v14, %v4155_v60  ;;  %vm4097_vm1 = vcmp.gt.f32.partialorder %v8522_v0, 0.0  ;;  %4606 = vmatprep.mubr.bf16.mxu0 %v4276_v2 }
 0x3ad   : > { %v4161_v54 = vmul.f32 %v8522_v0, %v7354_v8  ;;  %v4160_v63 = vmul.f32 %v8525_v4, %v7354_v8  ;;  %v4215_v27 = vsel %vm4087_vm10, %v8496_v45, %v4151_v7  ;;  %v5859_v46 = vadd.f32 %v4024_v9, %v8469_v58 }
 0x3ae   : > { %v5860_v26 = vadd.f32 %v4026_v29, %v8479_v51  ;;  %v4278_v32 = vpack.c.bf16 %v4222_v38, %v4218_v40  ;;  %v4275_v37 = vpack.c.bf16 %v4219_v18, %v4215_v27  ;;  %v4164_v11 = vmul.f32 %v5828_v16, %v7354_v8 }
 0x3af   : > { %v4217_v19 = vsel %vm4089_vm14, %v8501_v30, %v4153_v20  ;;  %v4221_v36 = vsel %vm4093_vm9, %v5855_v24, %v4157_v39  ;;  %vm4096_vm4 = vcmp.gt.f32.partialorder %v8525_v4, 0.0  ;;  %vm4098_vm8 = vcmp.gt.f32.partialorder %v5858_v56, 0.0 }
 0x3b0   : > { %v3740_v44 = vpop.f32.mrb[44].mxu0  ;;  %4703 = vmatprep.mubr.bf16.mxu1 %v4278_v32  ;;  %4607 = vmatmul.mubr.bf16.gmra.mrb[68].mxu0 %v4275_v37  ;;  %v4277_v3 = vpack.c.bf16 %v4221_v36, %v4217_v19  ;;  %v4162_v41 = vmul.f32 %v5858_v56, %v7354_v8  ;;  %vm4100_vm12 = vcmp.gt.f32.partialorder %v5828_v16, 0.0  ;;  %vm4099_vm13 = vcmp.gt.f32.partialorder %v8540_v55, 0.0 }
 0x3b1   : > { %v4030_v10 = vpop.f32.mrb[44].mxu1  ;;  %v3742_v22 = vpop.f32.mrb[45].mxu0  ;;  %v8560_v52 = vadd.f32 %v3740_v44, %v8465_v12  ;;  %v4163_v42 = vmul.f32 %v8540_v55, %v7354_v8  ;;  %vm4101_vm3 = vcmp.gt.f32.partialorder %v5859_v46, 0.0  ;;  %v4166_v59 = vmul.f32 %v5860_v26, %v7354_v8 }
 0x3b2   : > { %v4032_v33 = vpop.f32.mrb[45].mxu1  ;;  %v3744_v45 = vpop.f32.mrb[46].mxu0  ;;  %v8564_v15 = vadd.f32 %v4030_v10, %v8469_v58  ;;  %v8567_v34 = vadd.f32 %v3742_v22, %v8474_v6  ;;  %4704 = vmatmul.mubr.bf16.gmra.mrb[68].mxu1 %v4277_v3  ;;  %v4165_v21 = vmul.f32 %v5859_v46, %v7354_v8  ;;  %vm4102_vm5 = vcmp.gt.f32.partialorder %v5860_v26, 0.0 }
 0x3b3   : > { %v4034_v23 = vpop.f32.mrb[46].mxu1  ;;  %v3746_v30 = vpop.f32.mrb[47].mxu0  ;;  %v8571_v5 = vadd.f32 %v4032_v33, %v8479_v51  ;;  %v8580_v61 = vmul.f32 %v8560_v52, %v7354_v8  ;;  %v8583_v35 = vadd.f32 %v3744_v45, %v8465_v12  ;;  %v4228_v13 = vsel %vm4100_vm12, %v5828_v16, %v4164_v11 }
 0x3b4   : > { %v4036_v14 = vpop.f32.mrb[47].mxu1  ;;  %v8587_v43 = vmul.f32 %v8564_v15, %v7354_v8  ;;  %vm4104_vm10 = vcmp.gt.f32.partialorder %v8567_v34, 0.0  ;;  %v4168_v7 = vmul.f32 %v8567_v34, %v7354_v8  ;;  %vm4103_vm11 = vcmp.gt.f32.partialorder %v8560_v52, 0.0 }
 0x3b5   : > { %vm4105_vm14 = vcmp.gt.f32.partialorder %v8564_v15, 0.0  ;;  %vm4106_vm15 = vcmp.gt.f32.partialorder %v8571_v5, 0.0  ;;  %v8596_v24 = vadd.f32 %v4034_v23, %v8469_v58  ;;  %v5832_v1 = vadd.f32 %v3746_v30, %v8474_v6 }
 0x3b6   : > { %v4224_v50 = vsel %vm4096_vm4, %v8525_v4, %v4160_v63  ;;  %v5864_v57 = vadd.f32 %v4036_v14, %v8479_v51  ;;  %v4226_v48 = vsel %vm4098_vm8, %v5858_v56, %v4162_v41  ;;  %v4230_v60 = vsel %vm4102_vm5, %v5860_v26, %v4166_v59 }
 0x3b7   : > { %v4280_v49 = vpack.c.bf16 %v4228_v13, %v4224_v50  ;;  %v4282_v17 = vpack.c.bf16 %v4230_v60, %v4226_v48  ;;  %v4223_v25 = vsel %vm4095_vm7, %v8516_v47, %v8533_v62  ;;  %v4227_v4 = vsel %vm4099_vm13, %v8540_v55, %v4163_v42 }
 0x3b8   : > { %v3750_v53 = vpop.f32.mrb[48].mxu0  ;;  %v4225_v29 = vsel %vm4097_vm1, %v8522_v0, %v4161_v54  ;;  %v4279_v28 = vpack.c.bf16 %v4227_v4, %v4223_v25  ;;  %v4229_v16 = vsel %vm4101_vm3, %v5859_v46, %v4165_v21  ;;  %v4172_v56 = vmul.f32 %v5832_v1, %v7354_v8 }
 0x3b9   : > { %v4040_v31 = vpop.f32.mrb[48].mxu1  ;;  %v3752_v9 = vpop.f32.mrb[49].mxu0  ;;  %4614 = vmatprep.mubr.bf16.mxu0 %v4280_v49  ;;  %v8617_v2 = vadd.f32 %v3750_v53, %v8465_v12  ;;  %4711 = vmatprep.mubr.bf16.mxu1 %v4282_v17  ;;  %v4281_v55 = vpack.c.bf16 %v4229_v16, %v4225_v29  ;;  %v4170_v54 = vmul.f32 %v8571_v5, %v7354_v8  ;;  %vm4107_vm0 = vcmp.gt.f32.partialorder %v8583_v35, 0.0 }
 0x3ba   : > { %v4042_v20 = vpop.f32.mrb[49].mxu1  ;;  %v3754_v39 = vpop.f32.mrb[50].mxu0  ;;  %v8620_v40 = vadd.f32 %v4040_v31, %v8469_v58  ;;  %v8624_v0 = vadd.f32 %v3752_v9, %v8474_v6  ;;  %vm4108_vm2 = vcmp.gt.f32.partialorder %v5832_v1, 0.0  ;;  %4615 = vmatmul.mubr.bf16.gmra.mrb[72].mxu0 %v4279_v28  ;;  %v4171_v27 = vmul.f32 %v8583_v35, %v7354_v8 }
 0x3bb   : > { %v4044_v47 = vpop.f32.mrb[50].mxu1  ;;  %v3756_v62 = vpop.f32.mrb[51].mxu0  ;;  %v8627_v38 = vadd.f32 %v4042_v20, %v8479_v51  ;;  %v8633_v63 = vadd.f32 %v3754_v39, %v8465_v12  ;;  %vm4109_vm6 = vcmp.gt.f32.partialorder %v8596_v24, 0.0  ;;  %v4173_v44 = vmul.f32 %v8596_v24, %v7354_v8  ;;  %4712 = vmatmul.mubr.bf16.gmra.mrb[72].mxu1 %v4281_v55 }
 0x3bc   : > { %v4046_v18 = vpop.f32.mrb[51].mxu1  ;;  %v4174_v46 = vmul.f32 %v5864_v57, %v7354_v8  ;;  %vm4110_vm9 = vcmp.gt.f32.partialorder %v5864_v57, 0.0  ;;  %v8643_v26 = vmul.f32 %v8617_v2, %v7354_v8  ;;  %v8647_v32 = vmul.f32 %v8620_v40, %v7354_v8 }
 0x3bd   : > { %vm4112_vm7 = vcmp.gt.f32.partialorder %v8624_v0, 0.0  ;;  %v8652_v37 = vmul.f32 %v8624_v0, %v7354_v8  ;;  %vm4114_vm1 = vcmp.gt.f32.partialorder %v8627_v38, 0.0  ;;  %v4178_v10 = vmul.f32 %v8627_v38, %v7354_v8 }
 0x3be   : > { %v4236_v22 = vsel %vm4108_vm2, %v5832_v1, %v4172_v56  ;;  %vm4111_vm4 = vcmp.gt.f32.partialorder %v8617_v2, 0.0  ;;  %vm4113_vm8 = vcmp.gt.f32.partialorder %v8620_v40, 0.0  ;;  %vm4115_vm12 = vcmp.gt.f32.partialorder %v8633_v63, 0.0 }
 0x3bf   : > { %v8661_v19 = vadd.f32 %v4044_v47, %v8469_v58  ;;  %v5836_v36 = vadd.f32 %v3756_v62, %v8474_v6  ;;  %v4232_v33 = vsel %vm4104_vm10, %v8567_v34, %v4168_v7  ;;  %v5868_v23 = vadd.f32 %v4046_v18, %v8479_v51 }
 0x3c0   : > { %v3760_v11 = vpop.f32.mrb[52].mxu0  ;;  %v4284_v30 = vpack.c.bf16 %v4236_v22, %v4232_v33  ;;  %v4234_v41 = vsel %vm4106_vm15, %v8571_v5, %v4170_v54  ;;  %v4238_v14 = vsel %vm4110_vm9, %v5864_v57, %v4174_v46  ;;  %v4231_v13 = vsel %vm4103_vm11, %v8560_v52, %v8580_v61 }
 0x3c1   : > { %v4050_v45 = vpop.f32.mrb[52].mxu1  ;;  %v3762_v3 = vpop.f32.mrb[53].mxu0  ;;  %v4286_v21 = vpack.c.bf16 %v4238_v14, %v4234_v41  ;;  %v4235_v34 = vsel %vm4107_vm0, %v8583_v35, %v4171_v27  ;;  %v4233_v7 = vsel %vm4105_vm14, %v8564_v15, %v8587_v43  ;;  %v4237_v53 = vsel %vm4109_vm6, %v8596_v24, %v4173_v44 }
 0x3c2   : > { %v4052_v42 = vpop.f32.mrb[53].mxu1  ;;  %v3764_v59 = vpop.f32.mrb[54].mxu0  ;;  %4622 = vmatprep.mubr.bf16.mxu0 %v4284_v30  ;;  %v4283_v50 = vpack.c.bf16 %v4235_v34, %v4231_v13  ;;  %v8687_v57 = vadd.f32 %v3760_v11, %v8465_v12  ;;  %v8690_v52 = vadd.f32 %v4050_v45, %v8469_v58  ;;  %v4180_v35 = vmul.f32 %v5836_v36, %v7354_v8 }
 0x3c3   : > { %v4054_v5 = vpop.f32.mrb[54].mxu1  ;;  %v3766_v1 = vpop.f32.mrb[55].mxu0  ;;  %4719 = vmatprep.mubr.bf16.mxu1 %v4286_v21  ;;  %v4285_v49 = vpack.c.bf16 %v4237_v53, %v4233_v7  ;;  %v8694_v15 = vadd.f32 %v3762_v3, %v8474_v6  ;;  %v8697_v43 = vadd.f32 %v4052_v42, %v8479_v51  ;;  %v4179_v24 = vmul.f32 %v8633_v63, %v7354_v8 }
 0x3c4   : > { %v4056_v61 = vpop.f32.mrb[55].mxu1  ;;  %vm4117_vm13 = vcmp.gt.f32.partialorder %v8661_v19, 0.0  ;;  %vm4116_vm3 = vcmp.gt.f32.partialorder %v5836_v36, 0.0  ;;  %4623 = vmatmul.mubr.bf16.gmra.mrb[76].mxu0 %v4283_v50  ;;  %v8703_v48 = vadd.f32 %v3764_v59, %v8465_v12  ;;  %v4181_v60 = vmul.f32 %v8661_v19, %v7354_v8 }
 0x3c5   : > { %vm4118_vm5 = vcmp.gt.f32.partialorder %v5868_v23, 0.0  ;;  %v4182_v31 = vmul.f32 %v5868_v23, %v7354_v8  ;;  %4720 = vmatmul.mubr.bf16.gmra.mrb[76].mxu1 %v4285_v49  ;;  %v8710_v9 = vmul.f32 %v8687_v57, %v7354_v8  ;;  %v8714_v17 = vmul.f32 %v8690_v52, %v7354_v8 }
 0x3c6   : > { %vm4120_vm10 = vcmp.gt.f32.partialorder %v8694_v15, 0.0  ;;  %v8718_v25 = vadd.f32 %v4054_v5, %v8469_v58  ;;  %v5840_v4 = vadd.f32 %v3766_v1, %v8474_v6  ;;  %v4184_v20 = vmul.f32 %v8694_v15, %v7354_v8 }
 0x3c7   : > { %vm4122_vm11 = vcmp.gt.f32.partialorder %v8697_v43, 0.0  ;;  %v8726_v39 = vmul.f32 %v8697_v43, %v7354_v8  ;;  %v4244_v28 = vsel %vm4116_vm3, %v5836_v36, %v4180_v35  ;;  %vm4119_vm14 = vcmp.gt.f32.partialorder %v8687_v57, 0.0 }
 0x3c8   : > { %v3770_v29 = vpop.f32.mrb[56].mxu0  ;;  %vm4121_vm15 = vcmp.gt.f32.partialorder %v8690_v52, 0.0  ;;  %vm4123_vm0 = vcmp.gt.f32.partialorder %v8703_v48, 0.0  ;;  %v8734_v62 = vmul.f32 %v8703_v48, %v7354_v8  ;;  %v8737_v56 = vadd.f32 %v4056_v61, %v8479_v51 }
 0x3c9   : > { %v4060_v16 = vpop.f32.mrb[56].mxu1  ;;  %v3772_v47 = vpop.f32.mrb[57].mxu0  ;;  %v4240_v55 = vsel %vm4112_vm7, %v8624_v0, %v8652_v37  ;;  %v4242_v18 = vsel %vm4114_vm1, %v8627_v38, %v4178_v10  ;;  %vm4125_vm2 = vcmp.gt.f32.partialorder %v8718_v25, 0.0  ;;  %v4188_v44 = vmul.f32 %v5840_v4, %v7354_v8 }
 0x3ca   : > { %v4062_v54 = vpop.f32.mrb[57].mxu1  ;;  %v3774_v27 = vpop.f32.mrb[58].mxu0  ;;  %v4288_v46 = vpack.c.bf16 %v4244_v28, %v4240_v55  ;;  %v4246_v22 = vsel %vm4118_vm5, %v5868_v23, %v4182_v31  ;;  %v4239_v0 = vsel %vm4111_vm4, %v8617_v2, %v8643_v26  ;;  %v4243_v38 = vsel %vm4115_vm12, %v8633_v63, %v4179_v24 }
 0x3cb   : > { %v4064_v11 = vpop.f32.mrb[58].mxu1  ;;  %v3776_v36 = vpop.f32.mrb[59].mxu0  ;;  %v4290_v33 = vpack.c.bf16 %v4246_v22, %v4242_v18  ;;  %v4241_v37 = vsel %vm4113_vm8, %v8620_v40, %v8647_v32  ;;  %v4287_v45 = vpack.c.bf16 %v4243_v38, %v4239_v0  ;;  %v4245_v3 = vsel %vm4117_vm13, %v8661_v19, %v4181_v60 }
 0x3cc   : > { %v4066_v10 = vpop.f32.mrb[59].mxu1  ;;  %4630 = vmatprep.mubr.bf16.mxu0 %v4288_v46  ;;  %v8764_v23 = vadd.f32 %v3770_v29, %v8465_v12  ;;  %v8767_v2 = vadd.f32 %v4060_v16, %v8469_v58  ;;  %v4289_v63 = vpack.c.bf16 %v4245_v3, %v4241_v37  ;;  %v8770_v26 = vadd.f32 %v3772_v47, %v8474_v6 }
 0x3cd   : > { %4727 = vmatprep.mubr.bf16.mxu1 %v4290_v33  ;;  %v8773_v40 = vadd.f32 %v4062_v54, %v8479_v51  ;;  %v8776_v32 = vadd.f32 %v3774_v27, %v8465_v12  ;;  %v4189_v19 = vmul.f32 %v8718_v25, %v7354_v8  ;;  %vm4124_vm6 = vcmp.gt.f32.partialorder %v5840_v4, 0.0  ;;  %4631 = vmatmul.mubr.bf16.gmra.mrb[80].mxu0 %v4287_v45 }
 0x3ce   : > { %vm4126_vm9 = vcmp.gt.f32.partialorder %v8737_v56, 0.0  ;;  %v4190_v30 = vmul.f32 %v8737_v56, %v7354_v8  ;;  %4728 = vmatmul.mubr.bf16.gmra.mrb[80].mxu1 %v4289_v63  ;;  %v8785_v41 = vmul.f32 %v8764_v23, %v7354_v8  ;;  %v8789_v14 = vmul.f32 %v8767_v2, %v7354_v8 }
 0x3cf   : > { %vm4128_vm7 = vcmp.gt.f32.partialorder %v8770_v26, 0.0  ;;  %v4192_v42 = vmul.f32 %v8770_v26, %v7354_v8  ;;  %vm4130_vm1 = vcmp.gt.f32.partialorder %v8773_v40, 0.0  ;;  %v4194_v21 = vmul.f32 %v8773_v40, %v7354_v8 }
 0x3d0   : > { %v3780_v59 = vpop.f32.mrb[60].mxu0  ;;  %v8798_v13 = vadd.f32 %v4064_v11, %v8469_v58  ;;  %v5844_v34 = vadd.f32 %v3776_v36, %v8474_v6  ;;  %v8803_v1 = vmul.f32 %v8776_v32, %v7354_v8  ;;  %v5876_v50 = vadd.f32 %v4066_v10, %v8479_v51 }
 0x3d1   : > { %v4070_v7 = vpop.f32.mrb[60].mxu1  ;;  %v3782_v5 = vpop.f32.mrb[61].mxu0  ;;  %v4248_v53 = vsel %vm4120_vm10, %v8694_v15, %v4184_v20  ;;  %v4252_v61 = vsel %vm4124_vm6, %v5840_v4, %v4188_v44  ;;  %vm4127_vm4 = vcmp.gt.f32.partialorder %v8764_v23, 0.0  ;;  %vm4129_vm8 = vcmp.gt.f32.partialorder %v8767_v2, 0.0 }
 0x3d2   : > { %v4072_v35 = vpop.f32.mrb[61].mxu1  ;;  %v3784_v49 = vpop.f32.mrb[62].mxu0  ;;  %vm4131_vm12 = vcmp.gt.f32.partialorder %v8776_v32, 0.0  ;;  %v4197_v24 = vmul.f32 %v8798_v13, %v7354_v8  ;;  %vm4132_vm13 = vcmp.gt.f32.partialorder %v5844_v34, 0.0  ;;  %v4196_v60 = vmul.f32 %v5844_v34, %v7354_v8 }
 0x3d3   : > { %v4250_v15 = vsel %vm4122_vm11, %v8697_v43, %v8726_v39  ;;  %v4074_v31 = vpop.f32.mrb[62].mxu1  ;;  %v3786_v4 = vpop.f32.mrb[63].mxu0  ;;  %vm4133_vm3 = vcmp.gt.f32.partialorder %v8798_v13, 0.0  ;;  %vm4134_vm5 = vcmp.gt.f32.partialorder %v5876_v50, 0.0  ;;  %v4198_v29 = vmul.f32 %v5876_v50, %v7354_v8 }
 0x3d4   : > { %v4292_v20 = vpack.c.bf16 %v4252_v61, %v4248_v53  ;;  %v4254_v28 = vsel %vm4126_vm9, %v8737_v56, %v4190_v30  ;;  %v4076_v16 = vpop.f32.mrb[63].mxu1  ;;  %v4247_v55 = vsel %vm4119_vm14, %v8687_v57, %v8710_v9  ;;  %v4251_v43 = vsel %vm4123_vm0, %v8703_v48, %v8734_v62 }
 0x3d5   : > { %v4294_v47 = vpack.c.bf16 %v4254_v28, %v4250_v15  ;;  %v4249_v39 = vsel %vm4121_vm15, %v8690_v52, %v8714_v17  ;;  %v4291_v18 = vpack.c.bf16 %v4251_v43, %v4247_v55  ;;  %v4253_v56 = vsel %vm4125_vm2, %v8718_v25, %v4189_v19 }
 0x3d6   : > { %4638 = vmatprep.mubr.bf16.mxu0 %v4292_v20  ;;  %v5845_v54 = vadd.f32 %v3780_v59, %v8465_v12  ;;  %v5877_v57 = vadd.f32 %v4070_v7, %v8469_v58  ;;  %v4293_v9 = vpack.c.bf16 %v4253_v56, %v4249_v39  ;;  %v5846_v27 = vadd.f32 %v3782_v5, %v8474_v6  ;;  %v8889_v5 = vld [vmem:[%s9111_s6] ss:$0 sm:$0xff] }
 0x3d7   : > { %4735 = vmatprep.mubr.bf16.mxu1 %v4294_v47  ;;  %v5878_v48 = vadd.f32 %v4072_v35, %v8479_v51  ;;  %v5847_v62 = vadd.f32 %v3784_v49, %v8465_v12  ;;  %4639 = vmatmul.mubr.bf16.gmra.mrb[84].mxu0 %v4291_v18  ;;  %v5879_v22 = vadd.f32 %v4074_v31, %v8469_v58 }
 0x3d8   : > { %vm4135_vm10 = vcmp.gt.f32.partialorder %v5845_v54, 0.0  ;;  %v4199_v52 = vmul.f32 %v5845_v54, %v7354_v8  ;;  %vm4137_vm11 = vcmp.gt.f32.partialorder %v5877_v57, 0.0  ;;  %v4201_v17 = vmul.f32 %v5877_v57, %v7354_v8  ;;  %4736 = vmatmul.mubr.bf16.gmra.mrb[84].mxu1 %v4293_v9 }
 0x3d9   : > { %vm4136_vm14 = vcmp.gt.f32.partialorder %v5846_v27, 0.0  ;;  %v4200_v25 = vmul.f32 %v5846_v27, %v7354_v8  ;;  %vm4138_vm15 = vcmp.gt.f32.partialorder %v5878_v48, 0.0  ;;  %v4202_v44 = vmul.f32 %v5878_v48, %v7354_v8 }
 0x3da   : > { %vm4139_vm0 = vcmp.gt.f32.partialorder %v5847_v62, 0.0  ;;  %v4203_v46 = vmul.f32 %v5847_v62, %v7354_v8  ;;  %v5848_v12 = vadd.f32 %v3786_v4, %v8474_v6  ;;  %v5880_v11 = vadd.f32 %v4076_v16, %v8479_v51 }
 0x3db   : > { %v4256_v36 = vsel %vm4128_vm7, %v8770_v26, %v4192_v42  ;;  %v4260_v33 = vsel %vm4132_vm13, %v5844_v34, %v4196_v60  ;;  %v4258_v0 = vsel %vm4130_vm1, %v8773_v40, %v4194_v21  ;;  %vm4141_vm2 = vcmp.gt.f32.partialorder %v5879_v22, 0.0 }
 0x3dc   : > { %v4205_v38 = vmul.f32 %v5879_v22, %v7354_v8  ;;  %vm4140_vm6 = vcmp.gt.f32.partialorder %v5848_v12, 0.0  ;;  %v4204_v58 = vmul.f32 %v5848_v12, %v7354_v8  ;;  %vm4142_vm9 = vcmp.gt.f32.partialorder %v5880_v11, 0.0 }
 0x3dd   : > { %v4206_v6 = vmul.f32 %v5880_v11, %v7354_v8  ;;  %v4296_v51 = vpack.c.bf16 %v4260_v33, %v4256_v36  ;;  %v4262_v37 = vsel %vm4134_vm5, %v5876_v50, %v4198_v29  ;;  %v4255_v45 = vsel %vm4127_vm4, %v8764_v23, %v8785_v41 }
 0x3de   : > { %v4298_v10 = vpack.c.bf16 %v4262_v37, %v4258_v0  ;;  %v4259_v3 = vsel %vm4131_vm12, %v8776_v32, %v8803_v1  ;;  %v4257_v63 = vsel %vm4129_vm8, %v8767_v2, %v8789_v14  ;;  %v4261_v26 = vsel %vm4133_vm3, %v8798_v13, %v4197_v24 }
 0x3df   : > { %4646 = vmatprep.mubr.bf16.mxu0 %v4296_v51  ;;  %v4295_v8 = vpack.c.bf16 %v4259_v3, %v4255_v45  ;;  %v4264_v40 = vsel %vm4136_vm14, %v5846_v27, %v4200_v25  ;;  %v4268_v19 = vsel %vm4140_vm6, %v5848_v12, %v4204_v58  ;;  %v4297_v23 = vpack.c.bf16 %v4261_v26, %v4257_v63 }
 0x3e0   : > { %4743 = vmatprep.mubr.bf16.mxu1 %v4298_v10  ;;  %v4300_v30 = vpack.c.bf16 %v4268_v19, %v4264_v40  ;;  %v4266_v41 = vsel %vm4138_vm15, %v5878_v48, %v4202_v44  ;;  %v4270_v32 = vsel %vm4142_vm9, %v5880_v11, %v4206_v6  ;;  %v4263_v2 = vsel %vm4135_vm10, %v5845_v54, %v4199_v52 }
 0x3e1   : > { %4647 = vmatmul.mubr.bf16.gmra.mrb[88].mxu0 %v4295_v8  ;;  %v4302_v42 = vpack.c.bf16 %v4270_v32, %v4266_v41  ;;  %v4267_v14 = vsel %vm4139_vm0, %v5847_v62, %v4203_v46  ;;  %4744 = vmatmul.mubr.bf16.gmra.mrb[88].mxu1 %v4297_v23  ;;  %v4265_v21 = vsel %vm4137_vm11, %v5877_v57, %v4201_v17 }
 0x3e2   : > { %4654 = vmatprep.mubr.bf16.mxu0 %v4300_v30  ;;  %v4299_v59 = vpack.c.bf16 %v4267_v14, %v4263_v2  ;;  %v4269_v13 = vsel %vm4141_vm2, %v5879_v22, %v4205_v38 }
 0x3e3   : > { %4751 = vmatprep.mubr.bf16.mxu1 %v4302_v42  ;;  %v4301_v34 = vpack.c.bf16 %v4269_v13, %v4265_v21 }
 0x3e9   : > { %4655 = vmatmul.mubr.bf16.gmra.mrb[92].mxu0 %v4299_v59  ;;  %4752 = vmatmul.mubr.bf16.gmra.mrb[92].mxu1 %v4301_v34 }
 0x479   : > { %v5385_v7 = vpop.f32.mrb[64].mxu0 }
 0x47a   : > { %v5386_v1 = vpop.f32.mrb[65].mxu0 }
 0x47b   : > { %v5449_v50 = vpop.f32.mrb[64].mxu1  ;;  %v5387_v53 = vadd.f32 %v5386_v1, %v5385_v7  ;;  %v5388_v61 = vpop.f32.mrb[66].mxu0 }
 0x47c   : > { %v5450_v35 = vpop.f32.mrb[65].mxu1  ;;  %v5389_v49 = vpop.f32.mrb[67].mxu0 }
 0x47d   : > { %v4601_v24 = vadd.f32 %v5387_v53, %v8889_v5  ;;  %v5451_v60 = vadd.f32 %v5450_v35, %v5449_v50  ;;  %v5452_v15 = vpop.f32.mrb[66].mxu1  ;;  %v5390_v31 = vadd.f32 %v5389_v49, %v5388_v61 }
 0x47e   : > { %v5453_v4 = vpop.f32.mrb[67].mxu1 }
 0x47f   : > { %v4604_v29 = vadd.f32 %v5390_v31, %v8889_v5  ;;  %v5454_v20 = vadd.f32 %v5453_v4, %v5452_v15  ;;  %v8893_v28 = vadd.f32 %v5451_v60, %v4601_v24 }
 0x481   : > { %4760 = vmax.xlane.f32.xlu0 %v8893_v28  ;;  %v8896_v16 = vadd.f32 %v5454_v20, %v4604_v29 }
 0x483   : > { %v5391_v47 = vpop.f32.mrb[68].mxu0 }
 0x484   : > { %v5392_v55 = vpop.f32.mrb[69].mxu0 }
 0x485   : > { %v5455_v43 = vpop.f32.mrb[68].mxu1  ;;  %v5393_v39 = vadd.f32 %v5392_v55, %v5391_v47  ;;  %v5394_v18 = vpop.f32.mrb[70].mxu0  ;;  %4762 = vmax.xlane.f32.xlu0 %v8896_v16 }
 0x486   : > { %v5456_v56 = vpop.f32.mrb[69].mxu1  ;;  %v5395_v54 = vpop.f32.mrb[71].mxu0 }
 0x487   : > { %v4609_v57 = vadd.f32 %v5393_v39, %v8889_v5  ;;  %v5457_v9 = vadd.f32 %v5456_v56, %v5455_v43  ;;  %v5458_v27 = vpop.f32.mrb[70].mxu1  ;;  %v5396_v48 = vadd.f32 %v5395_v54, %v5394_v18 }
 0x488   : > { %v5459_v62 = vpop.f32.mrb[71].mxu1 }
 0x489   : > { %v4612_v52 = vadd.f32 %v5396_v48, %v8889_v5  ;;  %v5460_v17 = vadd.f32 %v5459_v62, %v5458_v27  ;;  %v8901_v25 = vadd.f32 %v5457_v9, %v4609_v57 }
 0x48b   : > { %4764 = vmax.xlane.f32.xlu1 %v8901_v25  ;;  %v8904_v44 = vadd.f32 %v5460_v17, %v4612_v52 }
 0x48d   : > { %v5397_v46 = vpop.f32.mrb[72].mxu0 }
 0x48e   : > { %v5461_v22 = vpop.f32.mrb[72].mxu1  ;;  %v5398_v12 = vpop.f32.mrb[73].mxu0 }
 0x48f   : > { %v5399_v11 = vadd.f32 %v5398_v12, %v5397_v46  ;;  %v5462_v36 = vpop.f32.mrb[73].mxu1  ;;  %v5400_v33 = vpop.f32.mrb[74].mxu0  ;;  %4766 = vmax.xlane.f32.xlu1 %v8904_v44 }
 0x490   : > { %v5463_v0 = vadd.f32 %v5462_v36, %v5461_v22  ;;  %v5464_v38 = vpop.f32.mrb[74].mxu1  ;;  %v5401_v58 = vpop.f32.mrb[75].mxu0 }
 0x491   : > { %v4617_v6 = vadd.f32 %v5399_v11, %v8889_v5  ;;  %v5402_v51 = vadd.f32 %v5401_v58, %v5400_v33  ;;  %v5465_v37 = vpop.f32.mrb[75].mxu1 }
 0x492   : > { %v5466_v10 = vadd.f32 %v5465_v37, %v5464_v38 }
 0x493   : > { %v4620_v45 = vadd.f32 %v5402_v51, %v8889_v5  ;;  %v8909_v3 = vadd.f32 %v5463_v0, %v4617_v6 }
 0x495   : > { %4768 = vmax.xlane.f32.xlu0 %v8909_v3  ;;  %v8912_v63 = vadd.f32 %v5466_v10, %v4620_v45 }
 0x497   : > { %v5403_v8 = vpop.f32.mrb[76].mxu0  ;;  %4770 = vmax.xlane.f32.xlu1 %v8912_v63 }
 0x498   : > { %v5467_v26 = vpop.f32.mrb[76].mxu1  ;;  %v5404_v40 = vpop.f32.mrb[77].mxu0 }
 0x499   : > { %v5405_v19 = vadd.f32 %v5404_v40, %v5403_v8  ;;  %v5468_v23 = vpop.f32.mrb[77].mxu1  ;;  %v5406_v30 = vpop.f32.mrb[78].mxu0 }
 0x49a   : > { %v5469_v41 = vadd.f32 %v5468_v23, %v5467_v26  ;;  %v5470_v32 = vpop.f32.mrb[78].mxu1  ;;  %v5407_v42 = vpop.f32.mrb[79].mxu0 }
 0x49b   : > { %v4625_v2 = vadd.f32 %v5405_v19, %v8889_v5  ;;  %v5408_v14 = vadd.f32 %v5407_v42, %v5406_v30  ;;  %v5471_v59 = vpop.f32.mrb[79].mxu1 }
 0x49c   : > { %v5472_v21 = vadd.f32 %v5471_v59, %v5470_v32 }
 0x49d   : > { %v4628_v13 = vadd.f32 %v5408_v14, %v8889_v5  ;;  %v8917_v34 = vadd.f32 %v5469_v41, %v4625_v2 }
 0x49f   : > { %4772 = vmax.xlane.f32.xlu0 %v8917_v34  ;;  %v8920_v7 = vadd.f32 %v5472_v21, %v4628_v13 }
 0x4a0   : > { %v5409_v1 = vpop.f32.mrb[80].mxu0 }
 0x4a1   : > { %v5473_v50 = vpop.f32.mrb[80].mxu1  ;;  %v5410_v53 = vpop.f32.mrb[81].mxu0  ;;  %4774 = vmax.xlane.f32.xlu1 %v8920_v7 }
 0x4a2   : > { %v5411_v61 = vadd.f32 %v5410_v53, %v5409_v1  ;;  %v5474_v35 = vpop.f32.mrb[81].mxu1  ;;  %v5412_v49 = vpop.f32.mrb[82].mxu0 }
 0x4a3   : > { %v5475_v24 = vadd.f32 %v5474_v35, %v5473_v50  ;;  %v5476_v60 = vpop.f32.mrb[82].mxu1  ;;  %v5413_v15 = vpop.f32.mrb[83].mxu0 }
 0x4a4   : > { %v4633_v31 = vadd.f32 %v5411_v61, %v8889_v5  ;;  %v5414_v4 = vadd.f32 %v5413_v15, %v5412_v49  ;;  %v5477_v29 = vpop.f32.mrb[83].mxu1 }
 0x4a5   : > { %v5478_v20 = vadd.f32 %v5477_v29, %v5476_v60 }
 0x4a6   : > { %v4636_v47 = vadd.f32 %v5414_v4, %v8889_v5  ;;  %v8925_v55 = vadd.f32 %v5475_v24, %v4633_v31 }
 0x4a8   : > { %4776 = vmax.xlane.f32.xlu0 %v8925_v55  ;;  %v8928_v43 = vadd.f32 %v5478_v20, %v4636_v47 }
 0x4aa   : > { %v5415_v39 = vpop.f32.mrb[84].mxu0  ;;  %4778 = vmax.xlane.f32.xlu1 %v8928_v43 }
 0x4ab   : > { %v5479_v18 = vpop.f32.mrb[84].mxu1  ;;  %v5416_v56 = vpop.f32.mrb[85].mxu0 }
 0x4ac   : > { %v5417_v54 = vadd.f32 %v5416_v56, %v5415_v39  ;;  %v5480_v57 = vpop.f32.mrb[85].mxu1  ;;  %v5418_v9 = vpop.f32.mrb[86].mxu0 }
 0x4ad   : > { %v5481_v27 = vadd.f32 %v5480_v57, %v5479_v18  ;;  %v5482_v48 = vpop.f32.mrb[86].mxu1  ;;  %v5419_v62 = vpop.f32.mrb[87].mxu0 }
 0x4ae   : > { %v4641_v52 = vadd.f32 %v5417_v54, %v8889_v5  ;;  %v5420_v17 = vadd.f32 %v5419_v62, %v5418_v9  ;;  %v5483_v46 = vpop.f32.mrb[87].mxu1 }
 0x4af   : > { %v5484_v22 = vadd.f32 %v5483_v46, %v5482_v48 }
 0x4b0   : > { %v4644_v12 = vadd.f32 %v5420_v17, %v8889_v5  ;;  %v8933_v11 = vadd.f32 %v5481_v27, %v4641_v52 }
 0x4b2   : > { %4780 = vmax.xlane.f32.xlu0 %v8933_v11  ;;  %v8936_v36 = vadd.f32 %v5484_v22, %v4644_v12 }
 0x4b4   : > { %v5421_v33 = vpop.f32.mrb[88].mxu0  ;;  %v5485_v0 = vpop.f32.mrb[88].mxu1  ;;  %4782 = vmax.xlane.f32.xlu1 %v8936_v36 }
 0x4b5   : > { %v5422_v38 = vpop.f32.mrb[89].mxu0  ;;  %v5486_v6 = vpop.f32.mrb[89].mxu1 }
 0x4b6   : > { %v5423_v58 = vadd.f32 %v5422_v38, %v5421_v33  ;;  %v5424_v51 = vpop.f32.mrb[90].mxu0  ;;  %v5487_v37 = vadd.f32 %v5486_v6, %v5485_v0  ;;  %v5488_v10 = vpop.f32.mrb[90].mxu1 }
 0x4b7   : > { %v5425_v45 = vpop.f32.mrb[91].mxu0  ;;  %v5489_v40 = vpop.f32.mrb[91].mxu1 }
 0x4b8   : > { %v4649_v8 = vadd.f32 %v5423_v58, %v8889_v5  ;;  %v5426_v26 = vadd.f32 %v5425_v45, %v5424_v51  ;;  %v5490_v19 = vadd.f32 %v5489_v40, %v5488_v10 }
 0x4ba   : > { %v4652_v23 = vadd.f32 %v5426_v26, %v8889_v5  ;;  %v8941_v30 = vadd.f32 %v5487_v37, %v4649_v8 }
 0x4bc   : > { %v5427_v41 = vpop.f32.mrb[92].mxu0  ;;  %4784 = vmax.xlane.f32.xlu0 %v8941_v30  ;;  %v8944_v32 = vadd.f32 %v5490_v19, %v4652_v23  ;;  %v5491_v42 = vpop.f32.mrb[92].mxu1 }
 0x4bd   : > { %v5428_v2 = vpop.f32.mrb[93].mxu0  ;;  %v5492_v59 = vpop.f32.mrb[93].mxu1 }
 0x4be   : > { %v5429_v14 = vadd.f32 %v5428_v2, %v5427_v41  ;;  %v5430_v21 = vpop.f32.mrb[94].mxu0  ;;  %4786 = vmax.xlane.f32.xlu1 %v8944_v32  ;;  %v5493_v13 = vadd.f32 %v5492_v59, %v5491_v42  ;;  %v5494_v1 = vpop.f32.mrb[94].mxu1 }
 0x4bf   : > { %v5431_v50 = vpop.f32.mrb[95].mxu0  ;;  %v5495_v35 = vpop.f32.mrb[95].mxu1 }
 0x4c0   : > { %v4657_v53 = vadd.f32 %v5429_v14, %v8889_v5  ;;  %v5432_v61 = vadd.f32 %v5431_v50, %v5430_v21  ;;  %v5496_v49 = vadd.f32 %v5495_v35, %v5494_v1 }
 0x4c2   : > { %v4660_v24 = vadd.f32 %v5432_v61, %v8889_v5  ;;  %v8949_v60 = vadd.f32 %v5493_v13, %v4657_v53 }
 0x4c4   : > { %4788 = vmax.xlane.f32.xlu0 %v8949_v60  ;;  %v8952_v15 = vadd.f32 %v5496_v49, %v4660_v24 }
 0x4c6   : > { %4790 = vmax.xlane.f32.xlu1 %v8952_v15 }
 0x50e   : > { %v4761_v31 = vpop.xlane.xlu0 %4760 }
 0x50f   : > { %v4792_v4 = vsub.f32 %v8893_v28, %v4761_v31 }
 0x511   : > { %v4808_v29 = vmul.f32 1.442695, %v4792_v4 }
 0x512   : > { %v4763_v20 = vpop.xlane.xlu0 %4762 }
 0x513   : > { %6676 = vpow2.f32 %v4808_v29  ;;  %v4793_v47 = vsub.f32 %v8896_v16, %v4763_v20 }
 0x515   : > { %v4810_v39 = vmul.f32 1.442695, %v4793_v47 }
 0x517   : > { %6678 = vpow2.f32 %v4810_v39 }
 0x518   : > { %v4765_v18 = vpop.xlane.xlu1 %4764 }
 0x519   : > { %v4794_v5 = vsub.f32 %v8901_v25, %v4765_v18 }
 0x51b   : > { %v4812_v56 = vmul.f32 1.442695, %v4794_v5 }
 0x51c   : > { %v4767_v54 = vpop.xlane.xlu1 %4766 }
 0x51d   : > { %6680 = vpow2.f32 %v4812_v56  ;;  %v4795_v57 = vsub.f32 %v8904_v44, %v4767_v54  ;;  %v8959_v9 = vpop.eup %6676 }
 0x51e   : > { %4840 = vadd.xlane.f32.xlu0 %v8959_v9 }
 0x51f   : > { %v4814_v27 = vmul.f32 1.442695, %v4795_v57 }
 0x521   : > { %6682 = vpow2.f32 %v4814_v27  ;;  %v8962_v28 = vpop.eup %6678 }
 0x522   : > { %v4769_v48 = vpop.xlane.xlu0 %4768  ;;  %4842 = vadd.xlane.f32.xlu1 %v8962_v28 }
 0x523   : > { %v4796_v16 = vsub.f32 %v8909_v3, %v4769_v48 }
 0x524   : > { %v4771_v62 = vpop.xlane.xlu1 %4770 }
 0x525   : > { %v4816_v25 = vmul.f32 1.442695, %v4796_v16  ;;  %v4797_v52 = vsub.f32 %v8912_v63, %v4771_v62 }
 0x527   : > { %v8967_v17 = vpop.eup %6680  ;;  %6684 = vpow2.f32 %v4816_v25  ;;  %v4818_v44 = vmul.f32 1.442695, %v4797_v52 }
 0x528   : > { %4844 = vadd.xlane.f32.xlu0 %v8967_v17 }
 0x529   : > { %6686 = vpow2.f32 %v4818_v44 }
 0x52b   : > { %v8970_v46 = vpop.eup %6682 }
 0x52c   : > { %v4773_v22 = vpop.xlane.xlu0 %4772  ;;  %4846 = vadd.xlane.f32.xlu1 %v8970_v46 }
 0x52d   : > { %v4798_v12 = vsub.f32 %v8917_v34, %v4773_v22 }
 0x52e   : > { %v4775_v3 = vpop.xlane.xlu1 %4774 }
 0x52f   : > { %v4820_v33 = vmul.f32 1.442695, %v4798_v12  ;;  %v4799_v0 = vsub.f32 %v8920_v7, %v4775_v3 }
 0x531   : > { %6688 = vpow2.f32 %v4820_v33  ;;  %v4822_v63 = vmul.f32 1.442695, %v4799_v0  ;;  %v8975_v38 = vpop.eup %6684 }
 0x532   : > { %4848 = vadd.xlane.f32.xlu0 %v8975_v38 }
 0x533   : > { %6690 = vpow2.f32 %v4822_v63  ;;  %v8978_v58 = vpop.eup %6686 }
 0x534   : > { %4850 = vadd.xlane.f32.xlu1 %v8978_v58 }
 0x535   : > { %v4777_v6 = vpop.xlane.xlu0 %4776 }
 0x536   : > { %v4800_v34 = vsub.f32 %v8925_v55, %v4777_v6 }
 0x537   : > { %v4779_v51 = vpop.xlane.xlu1 %4778 }
 0x538   : > { %v4824_v37 = vmul.f32 1.442695, %v4800_v34  ;;  %v4801_v10 = vsub.f32 %v8928_v43, %v4779_v51 }
 0x53a   : > { %6692 = vpow2.f32 %v4824_v37  ;;  %v4826_v7 = vmul.f32 1.442695, %v4801_v10 }
 0x53b   : > { %v8983_v45 = vpop.eup %6688 }
 0x53c   : > { %6694 = vpow2.f32 %v4826_v7  ;;  %4852 = vadd.xlane.f32.xlu0 %v8983_v45 }
 0x53d   : > { %v8986_v8 = vpop.eup %6690 }
 0x53e   : > { %4854 = vadd.xlane.f32.xlu1 %v8986_v8 }
 0x53f   : > { %v4781_v26 = vpop.xlane.xlu0 %4780 }
 0x540   : > { %v4802_v40 = vsub.f32 %v8933_v11, %v4781_v26 }
 0x541   : > { %v4783_v19 = vpop.xlane.xlu1 %4782 }
 0x542   : > { %v4828_v55 = vmul.f32 1.442695, %v4802_v40  ;;  %v4803_v23 = vsub.f32 %v8936_v36, %v4783_v19 }
 0x544   : > { %6696 = vpow2.f32 %v4828_v55  ;;  %v4830_v43 = vmul.f32 1.442695, %v4803_v23  ;;  %v8991_v41 = vpop.eup %6692 }
 0x545   : > { %4856 = vadd.xlane.f32.xlu0 %v8991_v41 }
 0x546   : > { %6698 = vpow2.f32 %v4830_v43  ;;  %v8994_v42 = vpop.eup %6694 }
 0x547   : > { %4858 = vadd.xlane.f32.xlu1 %v8994_v42 }
 0x549   : > { %v4785_v2 = vpop.xlane.xlu0 %4784 }
 0x54a   : > { %v4804_v14 = vsub.f32 %v8941_v30, %v4785_v2 }
 0x54b   : > { %v4787_v59 = vpop.xlane.xlu1 %4786 }
 0x54c   : > { %v4832_v11 = vmul.f32 1.442695, %v4804_v14  ;;  %v4805_v21 = vsub.f32 %v8944_v32, %v4787_v59 }
 0x54e   : > { %6700 = vpow2.f32 %v4832_v11  ;;  %v4834_v36 = vmul.f32 1.442695, %v4805_v21  ;;  %v8999_v13 = vpop.eup %6696 }
 0x54f   : > { %4860 = vadd.xlane.f32.xlu0 %v8999_v13 }
 0x550   : > { %6702 = vpow2.f32 %v4834_v36  ;;  %v9002_v1 = vpop.eup %6698 }
 0x551   : > { %v4789_v50 = vpop.xlane.xlu0 %4788  ;;  %4862 = vadd.xlane.f32.xlu1 %v9002_v1 }
 0x552   : > { %v4806_v53 = vsub.f32 %v8949_v60, %v4789_v50 }
 0x553   : > { %v4791_v61 = vpop.xlane.xlu1 %4790 }
 0x554   : > { %v4836_v30 = vmul.f32 1.442695, %v4806_v53  ;;  %v4807_v35 = vsub.f32 %v8952_v15, %v4791_v61 }
 0x556   : > { %6704 = vpow2.f32 %v4836_v30  ;;  %v4838_v32 = vmul.f32 1.442695, %v4807_v35 }
 0x558   : > { %v9007_v49 = vpop.eup %6700  ;;  %6706 = vpow2.f32 %v4838_v32 }
 0x559   : > { %4864 = vadd.xlane.f32.xlu0 %v9007_v49 }
 0x55a   : > { %v9010_v24 = vpop.eup %6702 }
 0x55b   : > { %4866 = vadd.xlane.f32.xlu1 %v9010_v24 }
 0x560   : > { %v9013_v31 = vpop.eup %6704 }
 0x561   : > { %4868 = vadd.xlane.f32.xlu0 %v9013_v31 }
 0x562   : > { %v9016_v60 = vpop.eup %6706 }
 0x563   : > { %4870 = vadd.xlane.f32.xlu1 %v9016_v60 }
 0x5ab   : > { %v4841_v15 = vpop.xlane.xlu0 %4840 }
 0x5ac   : > { %6708 = vrcp.f32 %v4841_v15 }
 0x5af   : > { %v4843_v4 = vpop.xlane.xlu1 %4842 }
 0x5b0   : > { %6710 = vrcp.f32 %v4843_v4 }
 0x5b5   : > { %v4845_v29 = vpop.xlane.xlu0 %4844 }
 0x5b6   : > { %6712 = vrcp.f32 %v4845_v29  ;;  %v6709_v20 = vpop.eup %6708 }
 0x5b7   : > { %v4888_v47 = vmul.f32 %v6709_v20, %v8959_v9 }
 0x5b9   : > { %v4847_v39 = vpop.xlane.xlu1 %4846  ;;  %4904 = vst [vmem:[%s9021_s20] sm:$0xff] %v4888_v47 }
 0x5ba   : > { %6714 = vrcp.f32 %v4847_v39  ;;  %v6711_v18 = vpop.eup %6710 }
 0x5bb   : > { %v4889_v5 = vmul.f32 %v6711_v18, %v8962_v28 }
 0x5bd   : > { %4905 = vst [vmem:[%s9021_s20 + $0x8] sm:$0xff] %v4889_v5 }
 0x5bf   : > { %v4849_v56 = vpop.xlane.xlu0 %4848 }
 0x5c0   : > { %v6713_v54 = vpop.eup %6712  ;;  %6716 = vrcp.f32 %v4849_v56 }
 0x5c1   : > { %v4890_v57 = vmul.f32 %v6713_v54, %v8967_v17  ;;  %v4851_v9 = vpop.xlane.xlu1 %4850 }
 0x5c2   : > { %6718 = vrcp.f32 %v4851_v9 }
 0x5c3   : > { %4906 = vst [vmem:[%s9021_s20 + $0x10] sm:$0xff] %v4890_v57 }
 0x5c4   : > { %v6715_v27 = vpop.eup %6714 }
 0x5c5   : > { %v4891_v48 = vmul.f32 %v6715_v27, %v8970_v46 }
 0x5c7   : > { %4907 = vst [vmem:[%s9021_s20 + $0x18] sm:$0xff] %v4891_v48 }
 0x5c9   : > { %v4853_v16 = vpop.xlane.xlu0 %4852 }
 0x5ca   : > { %6720 = vrcp.f32 %v4853_v16  ;;  %v6717_v62 = vpop.eup %6716 }
 0x5cb   : > { %v4855_v28 = vpop.xlane.xlu1 %4854  ;;  %v4892_v25 = vmul.f32 %v6717_v62, %v8975_v38 }
 0x5cc   : > { %6722 = vrcp.f32 %v4855_v28  ;;  %v6719_v52 = vpop.eup %6718 }
 0x5cd   : > { %4908 = vst [vmem:[%s9021_s20 + $0x20] sm:$0xff] %v4892_v25  ;;  %v4893_v17 = vmul.f32 %v6719_v52, %v8978_v58 }
 0x5cf   : > { %4909 = vst [vmem:[%s9021_s20 + $0x28] sm:$0xff] %v4893_v17 }
 0x5d2   : > { %v4857_v44 = vpop.xlane.xlu0 %4856 }
 0x5d3   : > { %6724 = vrcp.f32 %v4857_v44 }
 0x5d4   : > { %v6721_v22 = vpop.eup %6720  ;;  %v4859_v46 = vpop.xlane.xlu1 %4858 }
 0x5d5   : > { %v4894_v12 = vmul.f32 %v6721_v22, %v8983_v45  ;;  %6726 = vrcp.f32 %v4859_v46 }
 0x5d6   : > { %v6723_v3 = vpop.eup %6722 }
 0x5d7   : > { %4910 = vst [vmem:[%s9021_s20 + $0x30] sm:$0xff] %v4894_v12  ;;  %v4895_v33 = vmul.f32 %v6723_v3, %v8986_v8 }
 0x5d9   : > { %4911 = vst [vmem:[%s9021_s20 + $0x38] sm:$0xff] %v4895_v33 }
 0x5dc   : > { %v4861_v0 = vpop.xlane.xlu0 %4860 }
 0x5dd   : > { %6728 = vrcp.f32 %v4861_v0  ;;  %v6725_v63 = vpop.eup %6724 }
 0x5de   : > { %v4863_v38 = vpop.xlane.xlu1 %4862  ;;  %v4896_v58 = vmul.f32 %v6725_v63, %v8991_v41 }
 0x5df   : > { %6730 = vrcp.f32 %v4863_v38  ;;  %v6727_v6 = vpop.eup %6726 }
 0x5e0   : > { %4912 = vst [vmem:[%s9021_s20 + $0x40] sm:$0xff] %v4896_v58  ;;  %v4897_v34 = vmul.f32 %v6727_v6, %v8994_v42 }
 0x5e2   : > { %4913 = vst [vmem:[%s9021_s20 + $0x48] sm:$0xff] %v4897_v34 }
 0x5e6   : > { %v4865_v51 = vpop.xlane.xlu0 %4864 }
 0x5e7   : > { %6732 = vrcp.f32 %v4865_v51  ;;  %v6729_v37 = vpop.eup %6728 }
 0x5e8   : > { %v4867_v10 = vpop.xlane.xlu1 %4866  ;;  %v4898_v7 = vmul.f32 %v6729_v37, %v8999_v13 }
 0x5e9   : > { %6734 = vrcp.f32 %v4867_v10  ;;  %v6731_v45 = vpop.eup %6730 }
 0x5ea   : > { %4914 = vst [vmem:[%s9021_s20 + $0x50] sm:$0xff] %v4898_v7  ;;  %v4899_v8 = vmul.f32 %v6731_v45, %v9002_v1 }
 0x5ec   : > { %4915 = vst [vmem:[%s9021_s20 + $0x58] sm:$0xff] %v4899_v8 }
 0x5ee   : > { %v4869_v26 = vpop.xlane.xlu0 %4868 }
 0x5ef   : > { %6736 = vrcp.f32 %v4869_v26 }
 0x5f0   : > { %v4871_v40 = vpop.xlane.xlu1 %4870 }
 0x5f1   : > { %v6733_v19 = vpop.eup %6732  ;;  %6738 = vrcp.f32 %v4871_v40 }
 0x5f2   : > { %v4900_v55 = vmul.f32 %v6733_v19, %v9007_v49 }
 0x5f3   : > { %v6735_v23 = vpop.eup %6734 }
 0x5f4   : > { %4916 = vst [vmem:[%s9021_s20 + $0x60] sm:$0xff] %v4900_v55  ;;  %v4901_v43 = vmul.f32 %v6735_v23, %v9010_v24 }
 0x5f6   : > { %4917 = vst [vmem:[%s9021_s20 + $0x68] sm:$0xff] %v4901_v43 }
 0x5f9   : > { %v6737_v41 = vpop.eup %6736 }
 0x5fa   : > { %v4902_v42 = vmul.f32 %v6737_v41, %v9013_v31 }
 0x5fb   : > { %v6739_v2 = vpop.eup %6738 }
 0x5fc   : > { %4918 = vst [vmem:[%s9021_s20 + $0x70] sm:$0xff] %v4902_v42  ;;  %v4903_v14 = vmul.f32 %v6739_v2, %v9016_v60 }
 0x5fe   : > { %4919 = vst [vmem:[%s9021_s20 + $0x78] sm:$0xff] %v4903_v14 }
 0x5ff   : > { %6867 = shalt.err (!%p6864_p4)
}
 0x600   : > { %s6868_s1 = scalar_lea.hbm %s9056_s17, 2048  ;;  %s6872_s11 = scalar_lea.hbm %s9113_s8, 4096 }
 0x601   : > { %p6869_p9 = scmp.ne.s32.totalorder %s9056_s17, %s6868_s1  ;;  %p6873_p8 = scmp.lt.u32.totalorder %s9056_s17, %s9113_s8 }
 0x602   : > { %p6874_p13 = scmp.lt.u32.totalorder %s6872_s11, %s6868_s1  ;;  %p6876_p10 = scmp.lt.u32.totalorder %s6868_s1, %s9056_s17 }
 0x603   : > { %p6870_p0 = pnand %p6869_p9, %p7136_p5 }
 0x604   : > { %p6875_p6 = por %p6874_p13, %p6873_p8 }
 0x605   : > { %p6871_p11 = pneg %p6870_p0 }
 0x606   : > { %p6877_p3 = por %p6876_p10, %p6875_p6 }
 0x608   : > { %p6878_p7 = pnand %p6877_p3, %p6871_p11 }
 0x60a   : > { %6881 = shalt.err (!%p6878_p7)
}
 0x60b   : > { %s6944_s27 = smov 128   ;;  %s6945_s28 = smov 8  }
 0x60c   : > { %6154 = dma.vmem_to_hbm [thread:$0]  (%p7136_p5), %s9058_s21, 2048, %s9056_s17, %s4921_s7, %s6944_s27, %s6944_s27, %s6945_s28  }
 0x60d PF: > { %s4949_s12 = sand.u32 1, %s6916_s29   ;;  %p9565_p12 = scmp.ne.s32.totalorder %s9228_s13, 0 }
 0x60e   : > { %p9566_p2 = scmp.ge.s32.totalorder %s6928_s10, 2  ;;  %s4950_s14 = scalar_lea.sflag [#allocation5], %s4949_s12 }
 0x610   : > { %p6171_p1 = pnand %p9566_p2, %p9565_p12 }
 0x612   : > { %6911 = dma.done.wait (!%p6171_p1), %s4950_s14, 2048  }
 0x613   : > { %6913 = vsyncadd (!%p6171_p1), %s4950_s14, 4294965248  ;;  %p24_p4 = scmp.ge.s32.totalorder %s7122_s18, 4   ;;  %s9567_s29 = smov %s6920_s30 }
 0x614   : > { %s9568_s30 = smov %s6924_s9  ;;  %s9569_s9 = smov %s7132_s23 }
 0x615   : > { %s9570_s10 = smov %s7122_s18  ;;  %26 = sbr.rel (!%p24_p4) target bundleno = 10 (0xa), region = 109 }
 0x61c   :  { %4955 = vsyncpa [#allocation4], 1 }
 0x61d   :  { %4957 = vsyncpa [#allocation4 + $0x1], 1 }
 0x61e   :  { %4958 = vsyncpa [#allocation7], 1 }
 0x61f   :  { %4959 = vsyncpa [#allocation10], 1 }
 0x620   :  { %4960 = vsyncpa [#allocation5], 1 }
 0x621   :  { %4962 = vsyncpa [#allocation5 + $0x1], 1 }

</bundles_post_ra>
